<compile_context>
chip_gen: v7x
topology: tpu7x:2x2x1
jax: 0.10.0
libtpu: 0.0.40
codegen_flags: <defaults>
</compile_context>

<pallas_src>
import jax
import jax.numpy as jnp
import numpy as np
from jax.experimental import pallas as pl
from jax.experimental.pallas import tpu as pltpu


# ----------------------------------------------------------------------------
# Fused normalize + head(3x3) + skip(5x5) kernel (shared transposed im2col)
# ----------------------------------------------------------------------------

def _head_skip_call(xn_pad, pad_mask, hs_w, *, H, W, n_feats, out_feats):
    B = xn_pad.shape[0]
    Wp = W + 4
    HWp = H * Wp
    pad_flat = xn_pad.shape[2]                    # (H + 6) * Wp
    n_out = n_feats + out_feats

    def kernel(xn_ref, mask_ref, w_ref, h_ref, s_ref, cols_ref):
        xn = xn_ref[0]                            # (3, (H+6)*Wp), zero-padded
        # transposed im2col: row = tap*3 + channel, full 320-lane row writes.
        for ky in range(5):
            for kx in range(5):
                off = (ky + 1) * Wp + (kx - 2)    # always > 0
                t = ky * 5 + kx
                cols_ref[3 * t:3 * t + 3, :] = xn[:, off:off + HWp]
        # ONE MXU matmul for head (embedded 3x3) and skip (5x5) together:
        # (n_feats + out_feats, 75) @ (75, H*Wp) -> lane-dense (N = 320).
        out = jnp.dot(w_ref[...], cols_ref[...],
                      preferred_element_type=jnp.float32)
        # h must keep zero x-pad lanes (the body depthwise windows rely on it).
        h_ref[0] = (out[:n_feats] * mask_ref[...]).astype(h_ref.dtype)
        s_ref[0] = out[n_feats:].astype(s_ref.dtype)

    return pl.pallas_call(
        kernel,
        out_shape=(jax.ShapeDtypeStruct((B, n_feats, HWp), jnp.float32),
                   jax.ShapeDtypeStruct((B, out_feats, HWp), jnp.float32)),
        grid=(B,),
        in_specs=[pl.BlockSpec((1, 3, pad_flat), lambda b: (b, 0, 0)),
                  pl.BlockSpec((1, HWp), lambda b: (0, 0)),
                  pl.BlockSpec((n_out, 75), lambda b: (0, 0))],
        out_specs=[pl.BlockSpec((1, n_feats, HWp), lambda b: (b, 0, 0)),
                   pl.BlockSpec((1, out_feats, HWp), lambda b: (b, 0, 0))],
        scratch_shapes=[pltpu.VMEM((75, HWp), jnp.float32)],
        compiler_params=pltpu.CompilerParams(dimension_semantics=("parallel",)),
    )(xn_pad, pad_mask, hs_w)


# ----------------------------------------------------------------------------
# ALL residual blocks in one pallas_call: grid=(B, n_resblocks), h carried in
# the resident output VMEM block across the (arbitrary) block axis.
# ----------------------------------------------------------------------------

def _body_call(h0, pad_mask, bw, *, H, W):
    B, C, HWp = h0.shape
    Wp = W + 4
    C_half = C // 2
    R = bw['dw3_w'].shape[0]
    mid = bw['dw3_w'].shape[1]
    OFF = 3 * Wp                                   # 3 zero halo rows each side
    PADW = HWp + 2 * OFF
    inv_hw = 1.0 / float(H * W)

    def kernel(mask_ref, h0_ref, in_w_ref, dw3_w_ref, dw3_b_ref,
               dw5_w_ref, dw5_b_ref, fc_w_ref, fc_b_ref,
               fcs_w_ref, fcs_b_ref, c2_w_ref, h_ref, pbuf_ref):
        r = pl.program_id(1)

        @pl.when(r == 0)
        def _():
            # carry init from the head output; zero the shared pad-buffer halo
            # ONCE per image (the halo is never written afterwards).
            h_ref[...] = h0_ref[...]
            pbuf_ref[:, :OFF] = jnp.zeros((mid, OFF), jnp.float32)
            pbuf_ref[:, OFF + HWp:] = jnp.zeros((mid, OFF), jnp.float32)

        mask = mask_ref[...]                       # (1, HWp)
        h = h_ref[0]                               # (C, HWp), resident in VMEM

        # channel shuffle (even -> passthrough, odd -> branch) and the 1x1
        # conv1 fused into one lane-dense matmul: [selector; W1^T] @ h.
        both = jnp.dot(in_w_ref[0], h, preferred_element_type=jnp.float32)
        x_proj = both[:C_half]                     # identity path (no ReLU)
        xb = jnp.maximum(both[C_half:], 0.0)       # conv1 + ReLU, (mid, HWp)

        # shared row-padded buffer feeds BOTH depthwise SK branches; interior
        # keeps zero x-pad lanes because h does (maintained inductively).
        pbuf_ref[:, OFF:OFF + HWp] = xb

        dw3 = dw3_w_ref[0]                         # (mid, 9)   taps, hoisted
        dw5 = dw5_w_ref[0]                         # (mid, 25)  taps, hoisted
        acc3 = None
        acc5 = None
        for ky in range(5):
            for kx in range(5):
                off = OFF + (ky - 2) * Wp + (kx - 2)
                win = pbuf_ref[:, off:off + HWp]   # one lane-offset slice/tap
                t5 = ky * 5 + kx
                term5 = win * dw5[:, t5:t5 + 1]
                acc5 = term5 if acc5 is None else acc5 + term5
                if 1 <= ky <= 3 and 1 <= kx <= 3:
                    t3 = (ky - 1) * 3 + (kx - 1)
                    term3 = win * dw3[:, t3:t3 + 1]
                    acc3 = term3 if acc3 is None else acc3 + term3
        # bias + ReLU; re-zero x-pad lanes (bias made them nonzero) so the GAP
        # and the next block's window reads stay exact.
        f0 = jnp.maximum(acc3 + dw3_b_ref[0], 0.0) * mask
        f1 = jnp.maximum(acc5 + dw5_b_ref[0], 0.0) * mask

        # SK attention (channel-major column vectors, EUP approx reciprocal).
        u = f0 + f1
        s = jnp.sum(u, axis=1, keepdims=True) * inv_hw        # (mid, 1)
        z = jnp.dot(fc_w_ref[0], s,
                    preferred_element_type=jnp.float32) + fc_b_ref[0]
        a = jnp.dot(fcs_w_ref[0], z,
                    preferred_element_type=jnp.float32) + fcs_b_ref[0]
        a0 = a[:mid]
        a1 = a[mid:]
        m = jnp.maximum(a0, a1)
        e0 = jnp.exp(a0 - m)
        e1 = jnp.exp(a1 - m)
        inv = pl.reciprocal(e0 + e1, approx=True)              # EUP slot
        v = f0 * (e0 * inv) + f1 * (e1 * inv)

        # conv2 1x1 + ReLU, then ONE full-width store of the concat result.
        xb2 = jnp.maximum(
            jnp.dot(c2_w_ref[0], v, preferred_element_type=jnp.float32), 0.0)
        h_ref[0] = jnp.concatenate([x_proj, xb2], axis=0).astype(h_ref.dtype)

    def wspec(arr):
        return pl.BlockSpec((1,) + tuple(arr.shape[1:]),
                            lambda b, r: (r, 0, 0))

    return pl.pallas_call(
        kernel,
        out_shape=jax.ShapeDtypeStruct((B, C, HWp), jnp.float32),
        grid=(B, R),
        in_specs=[pl.BlockSpec((1, HWp), lambda b, r: (0, 0)),
                  pl.BlockSpec((1, C, HWp), lambda b, r: (b, 0, 0)),
                  wspec(bw['in_w']), wspec(bw['dw3_w']), wspec(bw['dw3_b']),
                  wspec(bw['dw5_w']), wspec(bw['dw5_b']),
                  wspec(bw['fc_w']), wspec(bw['fc_b']),
                  wspec(bw['fcs_w']), wspec(bw['fcs_b']), wspec(bw['c2_w'])],
        out_specs=pl.BlockSpec((1, C, HWp), lambda b, r: (b, 0, 0)),
        scratch_shapes=[pltpu.VMEM((mid, PADW), jnp.float32)],
        compiler_params=pltpu.CompilerParams(
            dimension_semantics=("parallel", "arbitrary")),
    )(pad_mask, h0, bw['in_w'], bw['dw3_w'], bw['dw3_b'], bw['dw5_w'],
      bw['dw5_b'], bw['fc_w'], bw['fc_b'], bw['fcs_w'], bw['fcs_b'],
      bw['c2_w'])


# ----------------------------------------------------------------------------
# Fused tail(3x3) + (t + s) * 0.5 + mean kernel (pre-pixel-shuffle)
# ----------------------------------------------------------------------------

def _tail_call(h, s_pre, tail_w, mean_col, *, H, W):
    B, C, HWp = h.shape
    Wp = W + 4
    out_feats = tail_w.shape[0]
    OFF = 2 * Wp
    PADW = HWp + 2 * OFF

    def kernel(h_ref, s_ref, w_ref, mean_ref, o_ref, pad_ref, cols_ref):
        # zero only the halo strips, copy the (already x-padded) interior.
        pad_ref[:, :OFF] = jnp.zeros((C, OFF), jnp.float32)
        pad_ref[:, OFF + HWp:] = jnp.zeros((C, OFF), jnp.float32)
        pad_ref[:, OFF:OFF + HWp] = h_ref[0]
        for ky in range(3):
            for kx in range(3):
                off = OFF + (ky - 1) * Wp + (kx - 1)
                t = ky * 3 + kx
                cols_ref[C * t:C * (t + 1), :] = pad_ref[:, off:off + HWp]
        t_out = jnp.dot(w_ref[...], cols_ref[...],
                        preferred_element_type=jnp.float32)
        o_ref[0] = ((t_out + s_ref[0]) * 0.5 + mean_ref[...]).astype(o_ref.dtype)

    return pl.pallas_call(
        kernel,
        out_shape=jax.ShapeDtypeStruct((B, out_feats, HWp), jnp.float32),
        grid=(B,),
        in_specs=[pl.BlockSpec((1, C, HWp), lambda b: (b, 0, 0)),
                  pl.BlockSpec((1, out_feats, HWp), lambda b: (b, 0, 0)),
                  pl.BlockSpec((out_feats, 9 * C), lambda b: (0, 0)),
                  pl.BlockSpec((out_feats, 1), lambda b: (0, 0))],
        out_specs=pl.BlockSpec((1, out_feats, HWp), lambda b: (b, 0, 0)),
        scratch_shapes=[pltpu.VMEM((C, PADW), jnp.float32),
                        pltpu.VMEM((9 * C, HWp), jnp.float32)],
        compiler_params=pltpu.CompilerParams(dimension_semantics=("parallel",)),
    )(h, s_pre, tail_w, mean_col)


# ----------------------------------------------------------------------------
# Plain-JAX layout glue + fused-weight preparation
# ----------------------------------------------------------------------------

def pixel_shuffle_nchw(x, r):
    # TODO(synk): pure permutation (layout glue), kept in plain JAX.
    B, Cr2, H, W = x.shape
    C = Cr2 // (r * r)
    x = x.reshape(B, C, r, r, H, W)
    x = jnp.transpose(x, (0, 1, 4, 2, 5, 3))
    return x.reshape(B, C, H * r, W * r)


def pixel_shuffle_nhwc(x, r):
    B, H, W, CR2 = x.shape
    C = CR2 // (r * r)
    x = x.reshape(B, H, W, C, r, r)
    x = jnp.transpose(x, (0, 1, 4, 2, 5, 3))
    return x.reshape(B, H * r, W * r, C)


def _prep_fused_weights(params, n_feats, scale):
    f32 = jnp.float32
    C = n_feats
    C_half = C // 2
    out_feats = scale * scale * 3

    # head 3x3 zero-embedded into the shared 5x5 tap space, transposed weights.
    head_emb = jnp.zeros((5, 5, 3, C), f32).at[1:4, 1:4].set(params['head_w'])
    head_emb = head_emb.reshape(75, C)
    skip_mat = params['skip_w'].reshape(75, out_feats)
    hs_w = jnp.concatenate([head_emb, skip_mat], axis=1).T        # (C+out, 75)
    tail_w = params['tail_w'].reshape(9 * C, out_feats).T         # (out, 9*C)
    # per-(pre-pixel-shuffle)-channel mean: channel k -> rgb channel k // r^2
    mean_col = jnp.repeat(params['rgb_mean'].reshape(3),
                          scale * scale).reshape(out_feats, 1)

    # even-channel selector (x_proj) — exact 0/1 matmul selection (kept f32).
    sel = np.zeros((C_half, C), np.float32)
    sel[np.arange(C_half), 2 * np.arange(C_half)] = 1.0
    sel = jnp.asarray(sel)

    per = {k: [] for k in ('in_w', 'dw3_w', 'dw3_b', 'dw5_w', 'dw5_b',
                           'fc_w', 'fc_b', 'fcs_w', 'fcs_b', 'c2_w')}
    for bp in params['blocks']:
        in_half, mid = bp['conv1_w'].shape[2], bp['conv1_w'].shape[3]
        out_b = bp['conv2_w'].shape[3]
        d = bp['fc_w'].shape[1]
        w1 = bp['conv1_w'].reshape(in_half, mid)
        w1e = jnp.zeros((C, mid), f32).at[1::2, :].set(w1)        # odd channels
        per['in_w'].append(jnp.concatenate([sel, w1e.T], axis=0))  # (C/2+mid, C)
        per['dw3_w'].append(bp['dw0_w'].reshape(9, mid).T)         # (mid, 9)
        per['dw3_b'].append(bp['dw0_b'].reshape(mid, 1))
        per['dw5_w'].append(bp['dw1_w'].reshape(25, mid).T)        # (mid, 25)
        per['dw5_b'].append(bp['dw1_b'].reshape(mid, 1))
        per['fc_w'].append(bp['fc_w'].T)                           # (d, mid)
        per['fc_b'].append(bp['fc_b'].reshape(d, 1))
        per['fcs_w'].append(jnp.concatenate(
            [bp['fcs_w'][0].T, bp['fcs_w'][1].T], axis=0))         # (2*mid, d)
        per['fcs_b'].append(jnp.concatenate(
            [bp['fcs_b'][0], bp['fcs_b'][1]], axis=0).reshape(2 * mid, 1))
        per['c2_w'].append(bp['conv2_w'].reshape(mid, out_b).T)    # (out_b, mid)
    bw = {k: jnp.stack(v, axis=0) for k, v in per.items()}
    return hs_w, tail_w, mean_col, bw


def model_forward(x_nchw, params, scale):
    n_feats = params['head_w'].shape[-1]
    out_feats = scale * scale * 3
    B, _, H, W = x_nchw.shape
    Wp = W + 4
    hs_w, tail_w, mean_col, bw = _prep_fused_weights(params, n_feats, scale)

    # validity mask over the flat (y*Wp + x) lane layout (zero x-pad columns).
    col = np.arange(H * Wp) % Wp
    pad_mask = jnp.asarray(((col >= 2) & (col < 2 + W))
                           .astype(np.float32).reshape(1, H * Wp))

    # one-time layout prep on the tiny 3-channel input (few KB): normalize and
    # zero-pad into the flat padded-row format the kernels use everywhere.
    mean_nchw = params['rgb_mean'].reshape(1, 3, 1, 1)
    xn = (x_nchw - mean_nchw) * 2.0
    xn = jnp.pad(xn, ((0, 0), (0, 0), (3, 3), (2, 2)))
    xn = xn.reshape(B, 3, (H + 6) * Wp)

    h, s_pre = _head_skip_call(xn, pad_mask, hs_w, H=H, W=W,
                               n_feats=n_feats, out_feats=out_feats)
    h = _body_call(h, pad_mask, bw, H=H, W=W)          # ONE call, all blocks
    pre = _tail_call(h, s_pre, tail_w, mean_col, H=H, W=W)

    pre = pre.reshape(B, out_feats, H, Wp)[:, :, :, 2:2 + W]   # drop x-pads
    return pixel_shuffle_nchw(pre, scale)                      # NCHW output


# ----------------------------------------------------------------------------
# Deterministic parameter initialization (synthetic; shapes follow the module)
# ----------------------------------------------------------------------------

def init_params(key, n_feats, n_resblocks, expand, scale):
    keys = iter(jax.random.split(key, 3 + 10 * n_resblocks))

    def normal(shape, std):
        return jax.random.normal(next(keys), shape, dtype=jnp.float32) * std

    out_feats = scale * scale * 3
    in_half = n_feats // 2
    mid = n_feats * expand
    out_b = n_feats - in_half
    d = max(mid // 2, 32)          # SKConv: d = max(features / r, L), r=2, L=32

    params = {
        'rgb_mean': jnp.array([0.448456, 0.437496, 0.404528],
                              jnp.float32).reshape(1, 1, 1, 3),
        'head_w': normal((3, 3, 3, n_feats), 0.2),               # HWIO
        'tail_w': normal((3, 3, n_feats, out_feats), 0.2),
        'skip_w': normal((5, 5, 3, out_feats), 0.1),
        'blocks': [],
    }
    for _ in range(n_resblocks):
        params['blocks'].append({
            'conv1_w': normal((1, 1, in_half, mid), 0.3),
            'dw0_w': normal((3, 3, mid), 0.25),
            'dw0_b': normal((1, mid), 0.1),
            'dw1_w': normal((5, 5, mid), 0.15),
            'dw1_b': normal((1, mid), 0.1),
            'fc_w': normal((mid, d), 0.1),
            'fc_b': normal((1, d), 0.05),
            'fcs_w': normal((2, d, mid), 0.1),
            'fcs_b': normal((2, mid), 0.05),
            'conv2_w': normal((1, 1, mid, out_b), 0.2),
        })
    return params


# ----------------------------------------------------------------------------
# Pure-JAX reference (independent check of the fused Pallas path)
# ----------------------------------------------------------------------------

def _ref_conv(x, w, relu=False):
    K = w.shape[0]
    pad = K // 2
    y = jax.lax.conv_general_dilated(
        x, w, (1, 1), [(pad, pad), (pad, pad)],
        dimension_numbers=('NHWC', 'HWIO', 'NHWC'))
    return jnp.maximum(y, 0.0) if relu else y


def _ref_dwconv(x, w, b, relu=False):
    K, _, C = w.shape
    pad = K // 2
    y = jax.lax.conv_general_dilated(
        x, w.reshape(K, K, 1, C), (1, 1), [(pad, pad), (pad, pad)],
        dimension_numbers=('NHWC', 'HWIO', 'NHWC'), feature_group_count=C)
    y = y + b.reshape(1, 1, 1, C)
    return jnp.maximum(y, 0.0) if relu else y


def _ref_sk(f0, f1, fcw, fcb, fcsw, fcsb):
    u = f0 + f1
    s = u.mean(axis=(1, 2))                                      # (B, C)
    z = s @ fcw + fcb                                            # (B, D)
    a0 = z @ fcsw[0] + fcsb[0]
    a1 = z @ fcsw[1] + fcsb[1]
    att = jax.nn.softmax(jnp.stack([a0, a1], axis=1), axis=1)
    w0 = att[:, 0][:, None, None, :]
    w1 = att[:, 1][:, None, None, :]
    return f0 * w0 + f1 * w1


def ref_forward(x_nchw, params, scale):
    x = jnp.transpose(x_nchw, (0, 2, 3, 1))
    mean = params['rgb_mean']
    xn = (x - mean) * 2.0
    s = pixel_shuffle_nhwc(_ref_conv(xn, params['skip_w']), scale)
    h = _ref_conv(xn, params['head_w'])
    for bp in params['blocks']:
        x_proj = h[..., 0::2]
        xb = h[..., 1::2]
        xb = _ref_conv(xb, bp['conv1_w'], relu=True)
        f0 = _ref_dwconv(xb, bp['dw0_w'], bp['dw0_b'], relu=True)
        f1 = _ref_dwconv(xb, bp['dw1_w'], bp['dw1_b'], relu=True)
        xb = _ref_sk(f0, f1, bp['fc_w'], bp['fc_b'], bp['fcs_w'], bp['fcs_b'])
        xb = _ref_conv(xb, bp['conv2_w'], relu=True)
        h = jnp.concatenate([x_proj, xb], axis=-1)
    t = pixel_shuffle_nhwc(_ref_conv(h, params['tail_w']), scale)
    out = (t + s) * 0.5 + mean
    return jnp.transpose(out, (0, 3, 1, 2))


# ----------------------------------------------------------------------------

if __name__ == "__main__":
    n_feats, n_resblocks, expand, scale = 8, 2, 2, 2
    B, H, W = 2, 16, 16

    key = jax.random.PRNGKey(0)
    pkey, xkey = jax.random.split(key)
    params = init_params(pkey, n_feats, n_resblocks, expand, scale)

    # Input in NCHW, like the PyTorch module.
    x = jax.random.uniform(xkey, (B, 3, H, W), dtype=jnp.float32)

    fwd = jax.jit(model_forward, static_argnums=2)
    out = jax.block_until_ready(fwd(x, params, scale))
    assert out.shape == (B, 3, H * scale, W * scale)

    ref = jax.block_until_ready(ref_forward(x, params, scale))
    np.testing.assert_allclose(np.asarray(out), np.asarray(ref),
                               rtol=2e-2, atol=2e-2)

    print("KERNEL_OK")
</pallas_src>

<mosaic_0001>
module attributes {stable_mosaic.version = 11 : i64} {
  func.func @kernel(%arg0: i32, %arg1: i32, %arg2: memref<1x320xf32, #tpu.memory_space<vmem>>, %arg3: memref<1x8x320xf32, #tpu.memory_space<vmem>>, %arg4: memref<1x20x8xf32, #tpu.memory_space<vmem>>, %arg5: memref<1x16x9xf32, #tpu.memory_space<vmem>>, %arg6: memref<1x16x1xf32, #tpu.memory_space<vmem>>, %arg7: memref<1x16x25xf32, #tpu.memory_space<vmem>>, %arg8: memref<1x16x1xf32, #tpu.memory_space<vmem>>, %arg9: memref<1x32x16xf32, #tpu.memory_space<vmem>>, %arg10: memref<1x32x1xf32, #tpu.memory_space<vmem>>, %arg11: memref<1x32x32xf32, #tpu.memory_space<vmem>>, %arg12: memref<1x32x1xf32, #tpu.memory_space<vmem>>, %arg13: memref<1x4x16xf32, #tpu.memory_space<vmem>>, %arg14: memref<1x8x320xf32, #tpu.memory_space<vmem>>, %arg15: memref<16x440xf32, #tpu.memory_space<vmem>>) attributes {dimension_semantics = [#tpu.dimension_semantics<parallel>, #tpu.dimension_semantics<arbitrary>], iteration_bounds = array<i64: 2, 2>, scalar_prefetch = 0 : i64, scratch_operands = 1 : i64, tpu.core_type = #tpu.core_type<tc>, window_params = [{pipeline_mode = #tpu.pipeline_mode<synchronous>, transform_indices = @transform_0, window_bounds = array<i64: 1, 320>}, {transform_indices = @transform_1, window_bounds = array<i64: 1, 8, 320>}, {transform_indices = @transform_2, window_bounds = array<i64: 1, 20, 8>}, {transform_indices = @transform_3, window_bounds = array<i64: 1, 16, 9>}, {transform_indices = @transform_4, window_bounds = array<i64: 1, 16, 1>}, {transform_indices = @transform_5, window_bounds = array<i64: 1, 16, 25>}, {transform_indices = @transform_6, window_bounds = array<i64: 1, 16, 1>}, {transform_indices = @transform_7, window_bounds = array<i64: 1, 32, 16>}, {transform_indices = @transform_8, window_bounds = array<i64: 1, 32, 1>}, {transform_indices = @transform_9, window_bounds = array<i64: 1, 32, 32>}, {transform_indices = @transform_10, window_bounds = array<i64: 1, 32, 1>}, {transform_indices = @transform_11, window_bounds = array<i64: 1, 4, 16>}, {transform_indices = @transform_12, window_bounds = array<i64: 1, 8, 320>}]} {
    %c0_i32 = arith.constant 0 : i32
    %0 = arith.cmpi eq, %arg1, %c0_i32 : i32
    %1 = arith.extui %0 : i1 to i32
    %c0_i32_0 = arith.constant 0 : i32
    %2 = arith.cmpi ne, %1, %c0_i32_0 : i32
    scf.if %2 {
      %c0_74 = arith.constant 0 : index
      %c0_75 = arith.constant 0 : index
      %c0_76 = arith.constant 0 : index
      %235 = vector.load %arg3[%c0_74, %c0_75, %c0_76] : memref<1x8x320xf32, #tpu.memory_space<vmem>>, vector<1x8x320xf32>
      %c0_77 = arith.constant 0 : index
      %c0_78 = arith.constant 0 : index
      %c0_79 = arith.constant 0 : index
      %236 = vector.load %arg14[%c0_77, %c0_78, %c0_79] : memref<1x8x320xf32, #tpu.memory_space<vmem>>, vector<1x8x320xf32>
      tpu.vector_store %arg14[%c0_77, %c0_78, %c0_79], %235 {strides = array<i32>} : memref<1x8x320xf32, #tpu.memory_space<vmem>>, vector<1x8x320xf32>,
      %cst_80 = arith.constant 0.000000e+00 : f32
      %237 = vector.broadcast %cst_80 : f32 to vector<16x60xf32>
      %c0_81 = arith.constant 0 : index
      %c0_82 = arith.constant 0 : index
      %238 = vector.load %arg15[%c0_81, %c0_82] : memref<16x440xf32, #tpu.memory_space<vmem>>, vector<16x60xf32>
      tpu.vector_store %arg15[%c0_81, %c0_82], %237 {strides = array<i32>} : memref<16x440xf32, #tpu.memory_space<vmem>>, vector<16x60xf32>,
      %cst_83 = arith.constant 0.000000e+00 : f32
      %239 = vector.broadcast %cst_83 : f32 to vector<16x60xf32>
      %c0_84 = arith.constant 0 : index
      %c380 = arith.constant 380 : index
      %240 = vector.load %arg15[%c0_84, %c380] : memref<16x440xf32, #tpu.memory_space<vmem>>, vector<16x60xf32>
      tpu.vector_store %arg15[%c0_84, %c380], %239 {strides = array<i32>} : memref<16x440xf32, #tpu.memory_space<vmem>>, vector<16x60xf32>,
    } else {
    }
    %c0 = arith.constant 0 : index
    %c0_1 = arith.constant 0 : index
    %3 = vector.load %arg2[%c0, %c0_1] : memref<1x320xf32, #tpu.memory_space<vmem>>, vector<1x320xf32>
    %c0_2 = arith.constant 0 : index
    %c0_3 = arith.constant 0 : index
    %c0_4 = arith.constant 0 : index
    %4 = vector.load %arg14[%c0_2, %c0_3, %c0_4] : memref<1x8x320xf32, #tpu.memory_space<vmem>>, vector<1x8x320xf32>
    %5 = vector.shape_cast %4 : vector<1x8x320xf32> to vector<8x320xf32>
    %c0_5 = arith.constant 0 : index
    %c0_6 = arith.constant 0 : index
    %c0_7 = arith.constant 0 : index
    %6 = vector.load %arg4[%c0_5, %c0_6, %c0_7] : memref<1x20x8xf32, #tpu.memory_space<vmem>>, vector<1x20x8xf32>
    %7 = vector.shape_cast %6 : vector<1x20x8xf32> to vector<20x8xf32>
    %cst = arith.constant dense<0.000000e+00> : vector<20x320xf32>
    %8 = tpu.matmul %7, %5, %cst {dimension_numbers = #tpu.dot_dimension_numbers<[1], [0], [0], [1], [0, 0, 1, 1], [], []>} : vector<20x8xf32>, vector<8x320xf32>, vector<20x320xf32> -> vector<20x320xf32>
    %9 = vector.extract_strided_slice %8 {offsets = [0, 0], sizes = [4, 320], strides = [1, 1]} : vector<20x320xf32> to vector<4x320xf32>
    %10 = vector.extract_strided_slice %8 {offsets = [4, 0], sizes = [16, 320], strides = [1, 1]} : vector<20x320xf32> to vector<16x320xf32>
    %cst_8 = arith.constant 0.000000e+00 : f32
    %11 = vector.broadcast %cst_8 : f32 to vector<16x320xf32>
    %12 = arith.maximumf %10, %11 : vector<16x320xf32>
    %c0_9 = arith.constant 0 : index
    %c60 = arith.constant 60 : index
    %13 = vector.load %arg15[%c0_9, %c60] : memref<16x440xf32, #tpu.memory_space<vmem>>, vector<16x320xf32>
    tpu.vector_store %arg15[%c0_9, %c60], %12 {strides = array<i32>} : memref<16x440xf32, #tpu.memory_space<vmem>>, vector<16x320xf32>,
    %c0_10 = arith.constant 0 : index
    %c0_11 = arith.constant 0 : index
    %c0_12 = arith.constant 0 : index
    %14 = vector.load %arg5[%c0_10, %c0_11, %c0_12] : memref<1x16x9xf32, #tpu.memory_space<vmem>>, vector<1x16x9xf32>
    %15 = vector.shape_cast %14 : vector<1x16x9xf32> to vector<16x9xf32>
    %c0_13 = arith.constant 0 : index
    %c0_14 = arith.constant 0 : index
    %c0_15 = arith.constant 0 : index
    %16 = vector.load %arg7[%c0_13, %c0_14, %c0_15] : memref<1x16x25xf32, #tpu.memory_space<vmem>>, vector<1x16x25xf32>
    %17 = vector.shape_cast %16 : vector<1x16x25xf32> to vector<16x25xf32>
    %c0_16 = arith.constant 0 : index
    %c18 = arith.constant 18 : index
    %18 = vector.load %arg15[%c0_16, %c18] : memref<16x440xf32, #tpu.memory_space<vmem>>, vector<16x320xf32>
    %19 = vector.extract_strided_slice %17 {offsets = [0, 0], sizes = [16, 1], strides = [1, 1]} : vector<16x25xf32> to vector<16x1xf32>
    %20 = vector.broadcast %19 : vector<16x1xf32> to vector<16x320xf32>
    %21 = arith.mulf %18, %20 : vector<16x320xf32>
    %c0_17 = arith.constant 0 : index
    %c19 = arith.constant 19 : index
    %22 = vector.load %arg15[%c0_17, %c19] : memref<16x440xf32, #tpu.memory_space<vmem>>, vector<16x320xf32>
    %23 = vector.extract_strided_slice %17 {offsets = [0, 1], sizes = [16, 1], strides = [1, 1]} : vector<16x25xf32> to vector<16x1xf32>
    %24 = vector.broadcast %23 : vector<16x1xf32> to vector<16x320xf32>
    %25 = arith.mulf %22, %24 : vector<16x320xf32>
    %26 = arith.addf %21, %25 : vector<16x320xf32>
    %c0_18 = arith.constant 0 : index
    %c20 = arith.constant 20 : index
    %27 = vector.load %arg15[%c0_18, %c20] : memref<16x440xf32, #tpu.memory_space<vmem>>, vector<16x320xf32>
    %28 = vector.extract_strided_slice %17 {offsets = [0, 2], sizes = [16, 1], strides = [1, 1]} : vector<16x25xf32> to vector<16x1xf32>
    %29 = vector.broadcast %28 : vector<16x1xf32> to vector<16x320xf32>
    %30 = arith.mulf %27, %29 : vector<16x320xf32>
    %31 = arith.addf %26, %30 : vector<16x320xf32>
    %c0_19 = arith.constant 0 : index
    %c21 = arith.constant 21 : index
    %32 = vector.load %arg15[%c0_19, %c21] : memref<16x440xf32, #tpu.memory_space<vmem>>, vector<16x320xf32>
    %33 = vector.extract_strided_slice %17 {offsets = [0, 3], sizes = [16, 1], strides = [1, 1]} : vector<16x25xf32> to vector<16x1xf32>
    %34 = vector.broadcast %33 : vector<16x1xf32> to vector<16x320xf32>
    %35 = arith.mulf %32, %34 : vector<16x320xf32>
    %36 = arith.addf %31, %35 : vector<16x320xf32>
    %c0_20 = arith.constant 0 : index
    %c22 = arith.constant 22 : index
    %37 = vector.load %arg15[%c0_20, %c22] : memref<16x440xf32, #tpu.memory_space<vmem>>, vector<16x320xf32>
    %38 = vector.extract_strided_slice %17 {offsets = [0, 4], sizes = [16, 1], strides = [1, 1]} : vector<16x25xf32> to vector<16x1xf32>
    %39 = vector.broadcast %38 : vector<16x1xf32> to vector<16x320xf32>
    %40 = arith.mulf %37, %39 : vector<16x320xf32>
    %41 = arith.addf %36, %40 : vector<16x320xf32>
    %c0_21 = arith.constant 0 : index
    %c38 = arith.constant 38 : index
    %42 = vector.load %arg15[%c0_21, %c38] : memref<16x440xf32, #tpu.memory_space<vmem>>, vector<16x320xf32>
    %43 = vector.extract_strided_slice %17 {offsets = [0, 5], sizes = [16, 1], strides = [1, 1]} : vector<16x25xf32> to vector<16x1xf32>
    %44 = vector.broadcast %43 : vector<16x1xf32> to vector<16x320xf32>
    %45 = arith.mulf %42, %44 : vector<16x320xf32>
    %46 = arith.addf %41, %45 : vector<16x320xf32>
    %c0_22 = arith.constant 0 : index
    %c39 = arith.constant 39 : index
    %47 = vector.load %arg15[%c0_22, %c39] : memref<16x440xf32, #tpu.memory_space<vmem>>, vector<16x320xf32>
    %48 = vector.extract_strided_slice %17 {offsets = [0, 6], sizes = [16, 1], strides = [1, 1]} : vector<16x25xf32> to vector<16x1xf32>
    %49 = vector.broadcast %48 : vector<16x1xf32> to vector<16x320xf32>
    %50 = arith.mulf %47, %49 : vector<16x320xf32>
    %51 = arith.addf %46, %50 : vector<16x320xf32>
    %52 = vector.extract_strided_slice %15 {offsets = [0, 0], sizes = [16, 1], strides = [1, 1]} : vector<16x9xf32> to vector<16x1xf32>
    %53 = vector.broadcast %52 : vector<16x1xf32> to vector<16x320xf32>
    %54 = arith.mulf %47, %53 : vector<16x320xf32>
    %c0_23 = arith.constant 0 : index
    %c40 = arith.constant 40 : index
    %55 = vector.load %arg15[%c0_23, %c40] : memref<16x440xf32, #tpu.memory_space<vmem>>, vector<16x320xf32>
    %56 = vector.extract_strided_slice %17 {offsets = [0, 7], sizes = [16, 1], strides = [1, 1]} : vector<16x25xf32> to vector<16x1xf32>
    %57 = vector.broadcast %56 : vector<16x1xf32> to vector<16x320xf32>
    %58 = arith.mulf %55, %57 : vector<16x320xf32>
    %59 = arith.addf %51, %58 : vector<16x320xf32>
    %60 = vector.extract_strided_slice %15 {offsets = [0, 1], sizes = [16, 1], strides = [1, 1]} : vector<16x9xf32> to vector<16x1xf32>
    %61 = vector.broadcast %60 : vector<16x1xf32> to vector<16x320xf32>
    %62 = arith.mulf %55, %61 : vector<16x320xf32>
    %63 = arith.addf %54, %62 : vector<16x320xf32>
    %c0_24 = arith.constant 0 : index
    %c41 = arith.constant 41 : index
    %64 = vector.load %arg15[%c0_24, %c41] : memref<16x440xf32, #tpu.memory_space<vmem>>, vector<16x320xf32>
    %65 = vector.extract_strided_slice %17 {offsets = [0, 8], sizes = [16, 1], strides = [1, 1]} : vector<16x25xf32> to vector<16x1xf32>
    %66 = vector.broadcast %65 : vector<16x1xf32> to vector<16x320xf32>
    %67 = arith.mulf %64, %66 : vector<16x320xf32>
    %68 = arith.addf %59, %67 : vector<16x320xf32>
    %69 = vector.extract_strided_slice %15 {offsets = [0, 2], sizes = [16, 1], strides = [1, 1]} : vector<16x9xf32> to vector<16x1xf32>
    %70 = vector.broadcast %69 : vector<16x1xf32> to vector<16x320xf32>
    %71 = arith.mulf %64, %70 : vector<16x320xf32>
    %72 = arith.addf %63, %71 : vector<16x320xf32>
    %c0_25 = arith.constant 0 : index
    %c42 = arith.constant 42 : index
    %73 = vector.load %arg15[%c0_25, %c42] : memref<16x440xf32, #tpu.memory_space<vmem>>, vector<16x320xf32>
    %74 = vector.extract_strided_slice %17 {offsets = [0, 9], sizes = [16, 1], strides = [1, 1]} : vector<16x25xf32> to vector<16x1xf32>
    %75 = vector.broadcast %74 : vector<16x1xf32> to vector<16x320xf32>
    %76 = arith.mulf %73, %75 : vector<16x320xf32>
    %77 = arith.addf %68, %76 : vector<16x320xf32>
    %c0_26 = arith.constant 0 : index
    %c58 = arith.constant 58 : index
    %78 = vector.load %arg15[%c0_26, %c58] : memref<16x440xf32, #tpu.memory_space<vmem>>, vector<16x320xf32>
    %79 = vector.extract_strided_slice %17 {offsets = [0, 10], sizes = [16, 1], strides = [1, 1]} : vector<16x25xf32> to vector<16x1xf32>
    %80 = vector.broadcast %79 : vector<16x1xf32> to vector<16x320xf32>
    %81 = arith.mulf %78, %80 : vector<16x320xf32>
    %82 = arith.addf %77, %81 : vector<16x320xf32>
    %c0_27 = arith.constant 0 : index
    %c59 = arith.constant 59 : index
    %83 = vector.load %arg15[%c0_27, %c59] : memref<16x440xf32, #tpu.memory_space<vmem>>, vector<16x320xf32>
    %84 = vector.extract_strided_slice %17 {offsets = [0, 11], sizes = [16, 1], strides = [1, 1]} : vector<16x25xf32> to vector<16x1xf32>
    %85 = vector.broadcast %84 : vector<16x1xf32> to vector<16x320xf32>
    %86 = arith.mulf %83, %85 : vector<16x320xf32>
    %87 = arith.addf %82, %86 : vector<16x320xf32>
    %88 = vector.extract_strided_slice %15 {offsets = [0, 3], sizes = [16, 1], strides = [1, 1]} : vector<16x9xf32> to vector<16x1xf32>
    %89 = vector.broadcast %88 : vector<16x1xf32> to vector<16x320xf32>
    %90 = arith.mulf %83, %89 : vector<16x320xf32>
    %91 = arith.addf %72, %90 : vector<16x320xf32>
    %c0_28 = arith.constant 0 : index
    %c60_29 = arith.constant 60 : index
    %92 = vector.load %arg15[%c0_28, %c60_29] : memref<16x440xf32, #tpu.memory_space<vmem>>, vector<16x320xf32>
    %93 = vector.extract_strided_slice %17 {offsets = [0, 12], sizes = [16, 1], strides = [1, 1]} : vector<16x25xf32> to vector<16x1xf32>
    %94 = vector.broadcast %93 : vector<16x1xf32> to vector<16x320xf32>
    %95 = arith.mulf %92, %94 : vector<16x320xf32>
    %96 = arith.addf %87, %95 : vector<16x320xf32>
    %97 = vector.extract_strided_slice %15 {offsets = [0, 4], sizes = [16, 1], strides = [1, 1]} : vector<16x9xf32> to vector<16x1xf32>
    %98 = vector.broadcast %97 : vector<16x1xf32> to vector<16x320xf32>
    %99 = arith.mulf %92, %98 : vector<16x320xf32>
    %100 = arith.addf %91, %99 : vector<16x320xf32>
    %c0_30 = arith.constant 0 : index
    %c61 = arith.constant 61 : index
    %101 = vector.load %arg15[%c0_30, %c61] : memref<16x440xf32, #tpu.memory_space<vmem>>, vector<16x320xf32>
    %102 = vector.extract_strided_slice %17 {offsets = [0, 13], sizes = [16, 1], strides = [1, 1]} : vector<16x25xf32> to vector<16x1xf32>
    %103 = vector.broadcast %102 : vector<16x1xf32> to vector<16x320xf32>
    %104 = arith.mulf %101, %103 : vector<16x320xf32>
    %105 = arith.addf %96, %104 : vector<16x320xf32>
    %106 = vector.extract_strided_slice %15 {offsets = [0, 5], sizes = [16, 1], strides = [1, 1]} : vector<16x9xf32> to vector<16x1xf32>
    %107 = vector.broadcast %106 : vector<16x1xf32> to vector<16x320xf32>
    %108 = arith.mulf %101, %107 : vector<16x320xf32>
    %109 = arith.addf %100, %108 : vector<16x320xf32>
    %c0_31 = arith.constant 0 : index
    %c62 = arith.constant 62 : index
    %110 = vector.load %arg15[%c0_31, %c62] : memref<16x440xf32, #tpu.memory_space<vmem>>, vector<16x320xf32>
    %111 = vector.extract_strided_slice %17 {offsets = [0, 14], sizes = [16, 1], strides = [1, 1]} : vector<16x25xf32> to vector<16x1xf32>
    %112 = vector.broadcast %111 : vector<16x1xf32> to vector<16x320xf32>
    %113 = arith.mulf %110, %112 : vector<16x320xf32>
    %114 = arith.addf %105, %113 : vector<16x320xf32>
    %c0_32 = arith.constant 0 : index
    %c78 = arith.constant 78 : index
    %115 = vector.load %arg15[%c0_32, %c78] : memref<16x440xf32, #tpu.memory_space<vmem>>, vector<16x320xf32>
    %116 = vector.extract_strided_slice %17 {offsets = [0, 15], sizes = [16, 1], strides = [1, 1]} : vector<16x25xf32> to vector<16x1xf32>
    %117 = vector.broadcast %116 : vector<16x1xf32> to vector<16x320xf32>
    %118 = arith.mulf %115, %117 : vector<16x320xf32>
    %119 = arith.addf %114, %118 : vector<16x320xf32>
    %c0_33 = arith.constant 0 : index
    %c79 = arith.constant 79 : index
    %120 = vector.load %arg15[%c0_33, %c79] : memref<16x440xf32, #tpu.memory_space<vmem>>, vector<16x320xf32>
    %121 = vector.extract_strided_slice %17 {offsets = [0, 16], sizes = [16, 1], strides = [1, 1]} : vector<16x25xf32> to vector<16x1xf32>
    %122 = vector.broadcast %121 : vector<16x1xf32> to vector<16x320xf32>
    %123 = arith.mulf %120, %122 : vector<16x320xf32>
    %124 = arith.addf %119, %123 : vector<16x320xf32>
    %125 = vector.extract_strided_slice %15 {offsets = [0, 6], sizes = [16, 1], strides = [1, 1]} : vector<16x9xf32> to vector<16x1xf32>
    %126 = vector.broadcast %125 : vector<16x1xf32> to vector<16x320xf32>
    %127 = arith.mulf %120, %126 : vector<16x320xf32>
    %128 = arith.addf %109, %127 : vector<16x320xf32>
    %c0_34 = arith.constant 0 : index
    %c80 = arith.constant 80 : index
    %129 = vector.load %arg15[%c0_34, %c80] : memref<16x440xf32, #tpu.memory_space<vmem>>, vector<16x320xf32>
    %130 = vector.extract_strided_slice %17 {offsets = [0, 17], sizes = [16, 1], strides = [1, 1]} : vector<16x25xf32> to vector<16x1xf32>
    %131 = vector.broadcast %130 : vector<16x1xf32> to vector<16x320xf32>
    %132 = arith.mulf %129, %131 : vector<16x320xf32>
    %133 = arith.addf %124, %132 : vector<16x320xf32>
    %134 = vector.extract_strided_slice %15 {offsets = [0, 7], sizes = [16, 1], strides = [1, 1]} : vector<16x9xf32> to vector<16x1xf32>
    %135 = vector.broadcast %134 : vector<16x1xf32> to vector<16x320xf32>
    %136 = arith.mulf %129, %135 : vector<16x320xf32>
    %137 = arith.addf %128, %136 : vector<16x320xf32>
    %c0_35 = arith.constant 0 : index
    %c81 = arith.constant 81 : index
    %138 = vector.load %arg15[%c0_35, %c81] : memref<16x440xf32, #tpu.memory_space<vmem>>, vector<16x320xf32>
    %139 = vector.extract_strided_slice %17 {offsets = [0, 18], sizes = [16, 1], strides = [1, 1]} : vector<16x25xf32> to vector<16x1xf32>
    %140 = vector.broadcast %139 : vector<16x1xf32> to vector<16x320xf32>
    %141 = arith.mulf %138, %140 : vector<16x320xf32>
    %142 = arith.addf %133, %141 : vector<16x320xf32>
    %143 = vector.extract_strided_slice %15 {offsets = [0, 8], sizes = [16, 1], strides = [1, 1]} : vector<16x9xf32> to vector<16x1xf32>
    %144 = vector.broadcast %143 : vector<16x1xf32> to vector<16x320xf32>
    %145 = arith.mulf %138, %144 : vector<16x320xf32>
    %146 = arith.addf %137, %145 : vector<16x320xf32>
    %c0_36 = arith.constant 0 : index
    %c82 = arith.constant 82 : index
    %147 = vector.load %arg15[%c0_36, %c82] : memref<16x440xf32, #tpu.memory_space<vmem>>, vector<16x320xf32>
    %148 = vector.extract_strided_slice %17 {offsets = [0, 19], sizes = [16, 1], strides = [1, 1]} : vector<16x25xf32> to vector<16x1xf32>
    %149 = vector.broadcast %148 : vector<16x1xf32> to vector<16x320xf32>
    %150 = arith.mulf %147, %149 : vector<16x320xf32>
    %151 = arith.addf %142, %150 : vector<16x320xf32>
    %c0_37 = arith.constant 0 : index
    %c98 = arith.constant 98 : index
    %152 = vector.load %arg15[%c0_37, %c98] : memref<16x440xf32, #tpu.memory_space<vmem>>, vector<16x320xf32>
    %153 = vector.extract_strided_slice %17 {offsets = [0, 20], sizes = [16, 1], strides = [1, 1]} : vector<16x25xf32> to vector<16x1xf32>
    %154 = vector.broadcast %153 : vector<16x1xf32> to vector<16x320xf32>
    %155 = arith.mulf %152, %154 : vector<16x320xf32>
    %156 = arith.addf %151, %155 : vector<16x320xf32>
    %c0_38 = arith.constant 0 : index
    %c99 = arith.constant 99 : index
    %157 = vector.load %arg15[%c0_38, %c99] : memref<16x440xf32, #tpu.memory_space<vmem>>, vector<16x320xf32>
    %158 = vector.extract_strided_slice %17 {offsets = [0, 21], sizes = [16, 1], strides = [1, 1]} : vector<16x25xf32> to vector<16x1xf32>
    %159 = vector.broadcast %158 : vector<16x1xf32> to vector<16x320xf32>
    %160 = arith.mulf %157, %159 : vector<16x320xf32>
    %161 = arith.addf %156, %160 : vector<16x320xf32>
    %c0_39 = arith.constant 0 : index
    %c100 = arith.constant 100 : index
    %162 = vector.load %arg15[%c0_39, %c100] : memref<16x440xf32, #tpu.memory_space<vmem>>, vector<16x320xf32>
    %163 = vector.extract_strided_slice %17 {offsets = [0, 22], sizes = [16, 1], strides = [1, 1]} : vector<16x25xf32> to vector<16x1xf32>
    %164 = vector.broadcast %163 : vector<16x1xf32> to vector<16x320xf32>
    %165 = arith.mulf %162, %164 : vector<16x320xf32>
    %166 = arith.addf %161, %165 : vector<16x320xf32>
    %c0_40 = arith.constant 0 : index
    %c101 = arith.constant 101 : index
    %167 = vector.load %arg15[%c0_40, %c101] : memref<16x440xf32, #tpu.memory_space<vmem>>, vector<16x320xf32>
    %168 = vector.extract_strided_slice %17 {offsets = [0, 23], sizes = [16, 1], strides = [1, 1]} : vector<16x25xf32> to vector<16x1xf32>
    %169 = vector.broadcast %168 : vector<16x1xf32> to vector<16x320xf32>
    %170 = arith.mulf %167, %169 : vector<16x320xf32>
    %171 = arith.addf %166, %170 : vector<16x320xf32>
    %c0_41 = arith.constant 0 : index
    %c102 = arith.constant 102 : index
    %172 = vector.load %arg15[%c0_41, %c102] : memref<16x440xf32, #tpu.memory_space<vmem>>, vector<16x320xf32>
    %173 = vector.extract_strided_slice %17 {offsets = [0, 24], sizes = [16, 1], strides = [1, 1]} : vector<16x25xf32> to vector<16x1xf32>
    %174 = vector.broadcast %173 : vector<16x1xf32> to vector<16x320xf32>
    %175 = arith.mulf %172, %174 : vector<16x320xf32>
    %176 = arith.addf %171, %175 : vector<16x320xf32>
    %c0_42 = arith.constant 0 : index
    %c0_43 = arith.constant 0 : index
    %c0_44 = arith.constant 0 : index
    %177 = vector.load %arg6[%c0_42, %c0_43, %c0_44] : memref<1x16x1xf32, #tpu.memory_space<vmem>>, vector<1x16x1xf32>
    %178 = vector.shape_cast %177 : vector<1x16x1xf32> to vector<16x1xf32>
    %179 = vector.broadcast %178 : vector<16x1xf32> to vector<16x320xf32>
    %180 = arith.addf %146, %179 : vector<16x320xf32>
    %cst_45 = arith.constant 0.000000e+00 : f32
    %181 = vector.broadcast %cst_45 : f32 to vector<16x320xf32>
    %182 = arith.maximumf %180, %181 : vector<16x320xf32>
    %183 = vector.broadcast %3 : vector<1x320xf32> to vector<16x320xf32>
    %184 = arith.mulf %182, %183 : vector<16x320xf32>
    %c0_46 = arith.constant 0 : index
    %c0_47 = arith.constant 0 : index
    %c0_48 = arith.constant 0 : index
    %185 = vector.load %arg8[%c0_46, %c0_47, %c0_48] : memref<1x16x1xf32, #tpu.memory_space<vmem>>, vector<1x16x1xf32>
    %186 = vector.shape_cast %185 : vector<1x16x1xf32> to vector<16x1xf32>
    %187 = vector.broadcast %186 : vector<16x1xf32> to vector<16x320xf32>
    %188 = arith.addf %176, %187 : vector<16x320xf32>
    %cst_49 = arith.constant 0.000000e+00 : f32
    %189 = vector.broadcast %cst_49 : f32 to vector<16x320xf32>
    %190 = arith.maximumf %188, %189 : vector<16x320xf32>
    %191 = vector.broadcast %3 : vector<1x320xf32> to vector<16x320xf32>
    %192 = arith.mulf %190, %191 : vector<16x320xf32>
    %193 = arith.addf %184, %192 : vector<16x320xf32>
    %cst_50 = arith.constant dense<0.000000e+00> : vector<16xf32>
    %194 = vector.multi_reduction <add>, %193, %cst_50 [1] : vector<16x320xf32> to vector<16xf32>
    %195 = vector.shape_cast %194 : vector<16xf32> to vector<16x1xf32>
    %cst_51 = arith.constant 3.906250e-03 : f32
    %196 = vector.broadcast %cst_51 : f32 to vector<16x1xf32>
    %197 = arith.mulf %195, %196 : vector<16x1xf32>
    %c0_52 = arith.constant 0 : index
    %c0_53 = arith.constant 0 : index
    %c0_54 = arith.constant 0 : index
    %198 = vector.load %arg9[%c0_52, %c0_53, %c0_54] : memref<1x32x16xf32, #tpu.memory_space<vmem>>, vector<1x32x16xf32>
    %199 = vector.shape_cast %198 : vector<1x32x16xf32> to vector<32x16xf32>
    %cst_55 = arith.constant dense<0.000000e+00> : vector<32x1xf32>
    %200 = tpu.matmul %199, %197, %cst_55 {dimension_numbers = #tpu.dot_dimension_numbers<[1], [0], [0], [1], [0, 0, 1, 1], [], []>} : vector<32x16xf32>, vector<16x1xf32>, vector<32x1xf32> -> vector<32x1xf32>
    %c0_56 = arith.constant 0 : index
    %c0_57 = arith.constant 0 : index
    %c0_58 = arith.constant 0 : index
    %201 = vector.load %arg10[%c0_56, %c0_57, %c0_58] : memref<1x32x1xf32, #tpu.memory_space<vmem>>, vector<1x32x1xf32>
    %202 = vector.shape_cast %201 : vector<1x32x1xf32> to vector<32x1xf32>
    %203 = arith.addf %200, %202 : vector<32x1xf32>
    %c0_59 = arith.constant 0 : index
    %c0_60 = arith.constant 0 : index
    %c0_61 = arith.constant 0 : index
    %204 = vector.load %arg11[%c0_59, %c0_60, %c0_61] : memref<1x32x32xf32, #tpu.memory_space<vmem>>, vector<1x32x32xf32>
    %205 = vector.shape_cast %204 : vector<1x32x32xf32> to vector<32x32xf32>
    %cst_62 = arith.constant dense<0.000000e+00> : vector<32x1xf32>
    %206 = tpu.matmul %205, %203, %cst_62 {dimension_numbers = #tpu.dot_dimension_numbers<[1], [0], [0], [1], [0, 0, 1, 1], [], []>} : vector<32x32xf32>, vector<32x1xf32>, vector<32x1xf32> -> vector<32x1xf32>
    %c0_63 = arith.constant 0 : index
    %c0_64 = arith.constant 0 : index
    %c0_65 = arith.constant 0 : index
    %207 = vector.load %arg12[%c0_63, %c0_64, %c0_65] : memref<1x32x1xf32, #tpu.memory_space<vmem>>, vector<1x32x1xf32>
    %208 = vector.shape_cast %207 : vector<1x32x1xf32> to vector<32x1xf32>
    %209 = arith.addf %206, %208 : vector<32x1xf32>
    %210 = vector.extract_strided_slice %209 {offsets = [0, 0], sizes = [16, 1], strides = [1, 1]} : vector<32x1xf32> to vector<16x1xf32>
    %211 = vector.extract_strided_slice %209 {offsets = [16, 0], sizes = [16, 1], strides = [1, 1]} : vector<32x1xf32> to vector<16x1xf32>
    %212 = arith.maximumf %210, %211 : vector<16x1xf32>
    %213 = arith.subf %210, %212 : vector<16x1xf32>
    %214 = math.exp %213 : vector<16x1xf32>
    %215 = arith.subf %211, %212 : vector<16x1xf32>
    %216 = math.exp %215 : vector<16x1xf32>
    %217 = arith.addf %214, %216 : vector<16x1xf32>
    %218 = tpu.reciprocal %217 {approx = true} : vector<16x1xf32> -> vector<16x1xf32>
    %219 = arith.mulf %214, %218 : vector<16x1xf32>
    %220 = vector.broadcast %219 : vector<16x1xf32> to vector<16x320xf32>
    %221 = arith.mulf %184, %220 : vector<16x320xf32>
    %222 = arith.mulf %216, %218 : vector<16x1xf32>
    %223 = vector.broadcast %222 : vector<16x1xf32> to vector<16x320xf32>
    %224 = arith.mulf %192, %223 : vector<16x320xf32>
    %225 = arith.addf %221, %224 : vector<16x320xf32>
    %c0_66 = arith.constant 0 : index
    %c0_67 = arith.constant 0 : index
    %c0_68 = arith.constant 0 : index
    %226 = vector.load %arg13[%c0_66, %c0_67, %c0_68] : memref<1x4x16xf32, #tpu.memory_space<vmem>>, vector<1x4x16xf32>
    %227 = vector.shape_cast %226 : vector<1x4x16xf32> to vector<4x16xf32>
    %cst_69 = arith.constant dense<0.000000e+00> : vector<4x320xf32>
    %228 = tpu.matmul %227, %225, %cst_69 {dimension_numbers = #tpu.dot_dimension_numbers<[1], [0], [0], [1], [0, 0, 1, 1], [], []>} : vector<4x16xf32>, vector<16x320xf32>, vector<4x320xf32> -> vector<4x320xf32>
    %cst_70 = arith.constant 0.000000e+00 : f32
    %229 = vector.broadcast %cst_70 : f32 to vector<4x320xf32>
    %230 = arith.maximumf %228, %229 : vector<4x320xf32>
    %231 = tpu.concatenate %9, %230 in 0 : vector<4x320xf32>, vector<4x320xf32> -> vector<8x320xf32>
    %c0_71 = arith.constant 0 : index
    %c0_72 = arith.constant 0 : index
    %c0_73 = arith.constant 0 : index
    %232 = vector.load %arg14[%c0_71, %c0_72, %c0_73] : memref<1x8x320xf32, #tpu.memory_space<vmem>>, vector<1x8x320xf32>
    %233 = vector.shape_cast %232 : vector<1x8x320xf32> to vector<8x320xf32>
    %234 = vector.shape_cast %231 : vector<8x320xf32> to vector<1x8x320xf32>
    tpu.vector_store %arg14[%c0_71, %c0_72, %c0_73], %234 {strides = array<i32>} : memref<1x8x320xf32, #tpu.memory_space<vmem>>, vector<1x8x320xf32>,
    return
  }
  func.func @transform_0(%arg0: i32, %arg1: i32) -> (i32, i32) {
    %c0_i32 = arith.constant 0 : i32
    %c0_i32_0 = arith.constant 0 : i32
    %c0_i32_1 = arith.constant 0 : i32
    return %c0_i32, %c0_i32_0 : i32, i32
  }
  func.func @transform_1(%arg0: i32, %arg1: i32) -> (i32, i32, i32) {
    %c0_i32 = arith.constant 0 : i32
    %c0_i32_0 = arith.constant 0 : i32
    %c0_i32_1 = arith.constant 0 : i32
    return %arg0, %c0_i32, %c0_i32_0 : i32, i32, i32
  }
  func.func @transform_2(%arg0: i32, %arg1: i32) -> (i32, i32, i32) {
    %c0_i32 = arith.constant 0 : i32
    %c0_i32_0 = arith.constant 0 : i32
    %c0_i32_1 = arith.constant 0 : i32
    return %arg1, %c0_i32, %c0_i32_0 : i32, i32, i32
  }
  func.func @transform_3(%arg0: i32, %arg1: i32) -> (i32, i32, i32) {
    %c0_i32 = arith.constant 0 : i32
    %c0_i32_0 = arith.constant 0 : i32
    %c0_i32_1 = arith.constant 0 : i32
    return %arg1, %c0_i32, %c0_i32_0 : i32, i32, i32
  }
  func.func @transform_4(%arg0: i32, %arg1: i32) -> (i32, i32, i32) {
    %c0_i32 = arith.constant 0 : i32
    %c0_i32_0 = arith.constant 0 : i32
    %c0_i32_1 = arith.constant 0 : i32
    return %arg1, %c0_i32, %c0_i32_0 : i32, i32, i32
  }
  func.func @transform_5(%arg0: i32, %arg1: i32) -> (i32, i32, i32) {
    %c0_i32 = arith.constant 0 : i32
    %c0_i32_0 = arith.constant 0 : i32
    %c0_i32_1 = arith.constant 0 : i32
    return %arg1, %c0_i32, %c0_i32_0 : i32, i32, i32
  }
  func.func @transform_6(%arg0: i32, %arg1: i32) -> (i32, i32, i32) {
    %c0_i32 = arith.constant 0 : i32
    %c0_i32_0 = arith.constant 0 : i32
    %c0_i32_1 = arith.constant 0 : i32
    return %arg1, %c0_i32, %c0_i32_0 : i32, i32, i32
  }
  func.func @transform_7(%arg0: i32, %arg1: i32) -> (i32, i32, i32) {
    %c0_i32 = arith.constant 0 : i32
    %c0_i32_0 = arith.constant 0 : i32
    %c0_i32_1 = arith.constant 0 : i32
    return %arg1, %c0_i32, %c0_i32_0 : i32, i32, i32
  }
  func.func @transform_8(%arg0: i32, %arg1: i32) -> (i32, i32, i32) {
    %c0_i32 = arith.constant 0 : i32
    %c0_i32_0 = arith.constant 0 : i32
    %c0_i32_1 = arith.constant 0 : i32
    return %arg1, %c0_i32, %c0_i32_0 : i32, i32, i32
  }
  func.func @transform_9(%arg0: i32, %arg1: i32) -> (i32, i32, i32) {
    %c0_i32 = arith.constant 0 : i32
    %c0_i32_0 = arith.constant 0 : i32
    %c0_i32_1 = arith.constant 0 : i32
    return %arg1, %c0_i32, %c0_i32_0 : i32, i32, i32
  }
  func.func @transform_10(%arg0: i32, %arg1: i32) -> (i32, i32, i32) {
    %c0_i32 = arith.constant 0 : i32
    %c0_i32_0 = arith.constant 0 : i32
    %c0_i32_1 = arith.constant 0 : i32
    return %arg1, %c0_i32, %c0_i32_0 : i32, i32, i32
  }
  func.func @transform_11(%arg0: i32, %arg1: i32) -> (i32, i32, i32) {
    %c0_i32 = arith.constant 0 : i32
    %c0_i32_0 = arith.constant 0 : i32
    %c0_i32_1 = arith.constant 0 : i32
    return %arg1, %c0_i32, %c0_i32_0 : i32, i32, i32
  }
  func.func @transform_12(%arg0: i32, %arg1: i32) -> (i32, i32, i32) {
    %c0_i32 = arith.constant 0 : i32
    %c0_i32_0 = arith.constant 0 : i32
    %c0_i32_1 = arith.constant 0 : i32
    return %arg0, %c0_i32, %c0_i32_0 : i32, i32, i32
  }
}

module attributes {stable_mosaic.version = 11 : i64} {
  func.func @kernel(%arg0: i32, %arg1: memref<1x3x440xf32, #tpu.memory_space<vmem>>, %arg2: memref<1x320xf32, #tpu.memory_space<vmem>>, %arg3: memref<20x75xf32, #tpu.memory_space<vmem>>, %arg4: memref<1x8x320xf32, #tpu.memory_space<vmem>>, %arg5: memref<1x12x320xf32, #tpu.memory_space<vmem>>, %arg6: memref<75x320xf32, #tpu.memory_space<vmem>>) attributes {dimension_semantics = [#tpu.dimension_semantics<parallel>], iteration_bounds = array<i64: 2>, scalar_prefetch = 0 : i64, scratch_operands = 1 : i64, tpu.core_type = #tpu.core_type<tc>, window_params = [{transform_indices = @transform_0, window_bounds = array<i64: 1, 3, 440>}, {pipeline_mode = #tpu.pipeline_mode<synchronous>, transform_indices = @transform_1, window_bounds = array<i64: 1, 320>}, {pipeline_mode = #tpu.pipeline_mode<synchronous>, transform_indices = @transform_2, window_bounds = array<i64: 20, 75>}, {transform_indices = @transform_3, window_bounds = array<i64: 1, 8, 320>}, {transform_indices = @transform_4, window_bounds = array<i64: 1, 12, 320>}]} {
    %c0 = arith.constant 0 : index
    %c0_0 = arith.constant 0 : index
    %c0_1 = arith.constant 0 : index
    %0 = vector.load %arg1[%c0, %c0_0, %c0_1] : memref<1x3x440xf32, #tpu.memory_space<vmem>>, vector<1x3x440xf32>
    %1 = vector.shape_cast %0 : vector<1x3x440xf32> to vector<3x440xf32>
    %2 = vector.extract_strided_slice %1 {offsets = [0, 18], sizes = [3, 320], strides = [1, 1]} : vector<3x440xf32> to vector<3x320xf32>
    %c0_2 = arith.constant 0 : index
    %c0_3 = arith.constant 0 : index
    %3 = vector.load %arg6[%c0_2, %c0_3] : memref<75x320xf32, #tpu.memory_space<vmem>>, vector<3x320xf32>
    tpu.vector_store %arg6[%c0_2, %c0_3], %2 {strides = array<i32>} : memref<75x320xf32, #tpu.memory_space<vmem>>, vector<3x320xf32>,
    %4 = vector.extract_strided_slice %1 {offsets = [0, 19], sizes = [3, 320], strides = [1, 1]} : vector<3x440xf32> to vector<3x320xf32>
    %c3 = arith.constant 3 : index
    %c0_4 = arith.constant 0 : index
    %5 = vector.load %arg6[%c3, %c0_4] : memref<75x320xf32, #tpu.memory_space<vmem>>, vector<3x320xf32>
    tpu.vector_store %arg6[%c3, %c0_4], %4 {strides = array<i32>} : memref<75x320xf32, #tpu.memory_space<vmem>>, vector<3x320xf32>,
    %6 = vector.extract_strided_slice %1 {offsets = [0, 20], sizes = [3, 320], strides = [1, 1]} : vector<3x440xf32> to vector<3x320xf32>
    %c6 = arith.constant 6 : index
    %c0_5 = arith.constant 0 : index
    %7 = vector.load %arg6[%c6, %c0_5] : memref<75x320xf32, #tpu.memory_space<vmem>>, vector<3x320xf32>
    tpu.vector_store %arg6[%c6, %c0_5], %6 {strides = array<i32>} : memref<75x320xf32, #tpu.memory_space<vmem>>, vector<3x320xf32>,
    %8 = vector.extract_strided_slice %1 {offsets = [0, 21], sizes = [3, 320], strides = [1, 1]} : vector<3x440xf32> to vector<3x320xf32>
    %c9 = arith.constant 9 : index
    %c0_6 = arith.constant 0 : index
    %9 = vector.load %arg6[%c9, %c0_6] : memref<75x320xf32, #tpu.memory_space<vmem>>, vector<3x320xf32>
    tpu.vector_store %arg6[%c9, %c0_6], %8 {strides = array<i32>} : memref<75x320xf32, #tpu.memory_space<vmem>>, vector<3x320xf32>,
    %10 = vector.extract_strided_slice %1 {offsets = [0, 22], sizes = [3, 320], strides = [1, 1]} : vector<3x440xf32> to vector<3x320xf32>
    %c12 = arith.constant 12 : index
    %c0_7 = arith.constant 0 : index
    %11 = vector.load %arg6[%c12, %c0_7] : memref<75x320xf32, #tpu.memory_space<vmem>>, vector<3x320xf32>
    tpu.vector_store %arg6[%c12, %c0_7], %10 {strides = array<i32>} : memref<75x320xf32, #tpu.memory_space<vmem>>, vector<3x320xf32>,
    %12 = vector.extract_strided_slice %1 {offsets = [0, 38], sizes = [3, 320], strides = [1, 1]} : vector<3x440xf32> to vector<3x320xf32>
    %c15 = arith.constant 15 : index
    %c0_8 = arith.constant 0 : index
    %13 = vector.load %arg6[%c15, %c0_8] : memref<75x320xf32, #tpu.memory_space<vmem>>, vector<3x320xf32>
    tpu.vector_store %arg6[%c15, %c0_8], %12 {strides = array<i32>} : memref<75x320xf32, #tpu.memory_space<vmem>>, vector<3x320xf32>,
    %14 = vector.extract_strided_slice %1 {offsets = [0, 39], sizes = [3, 320], strides = [1, 1]} : vector<3x440xf32> to vector<3x320xf32>
    %c18 = arith.constant 18 : index
    %c0_9 = arith.constant 0 : index
    %15 = vector.load %arg6[%c18, %c0_9] : memref<75x320xf32, #tpu.memory_space<vmem>>, vector<3x320xf32>
    tpu.vector_store %arg6[%c18, %c0_9], %14 {strides = array<i32>} : memref<75x320xf32, #tpu.memory_space<vmem>>, vector<3x320xf32>,
    %16 = vector.extract_strided_slice %1 {offsets = [0, 40], sizes = [3, 320], strides = [1, 1]} : vector<3x440xf32> to vector<3x320xf32>
    %c21 = arith.constant 21 : index
    %c0_10 = arith.constant 0 : index
    %17 = vector.load %arg6[%c21, %c0_10] : memref<75x320xf32, #tpu.memory_space<vmem>>, vector<3x320xf32>
    tpu.vector_store %arg6[%c21, %c0_10], %16 {strides = array<i32>} : memref<75x320xf32, #tpu.memory_space<vmem>>, vector<3x320xf32>,
    %18 = vector.extract_strided_slice %1 {offsets = [0, 41], sizes = [3, 320], strides = [1, 1]} : vector<3x440xf32> to vector<3x320xf32>
    %c24 = arith.constant 24 : index
    %c0_11 = arith.constant 0 : index
    %19 = vector.load %arg6[%c24, %c0_11] : memref<75x320xf32, #tpu.memory_space<vmem>>, vector<3x320xf32>
    tpu.vector_store %arg6[%c24, %c0_11], %18 {strides = array<i32>} : memref<75x320xf32, #tpu.memory_space<vmem>>, vector<3x320xf32>,
    %20 = vector.extract_strided_slice %1 {offsets = [0, 42], sizes = [3, 320], strides = [1, 1]} : vector<3x440xf32> to vector<3x320xf32>
    %c27 = arith.constant 27 : index
    %c0_12 = arith.constant 0 : index
    %21 = vector.load %arg6[%c27, %c0_12] : memref<75x320xf32, #tpu.memory_space<vmem>>, vector<3x320xf32>
    tpu.vector_store %arg6[%c27, %c0_12], %20 {strides = array<i32>} : memref<75x320xf32, #tpu.memory_space<vmem>>, vector<3x320xf32>,
    %22 = vector.extract_strided_slice %1 {offsets = [0, 58], sizes = [3, 320], strides = [1, 1]} : vector<3x440xf32> to vector<3x320xf32>
    %c30 = arith.constant 30 : index
    %c0_13 = arith.constant 0 : index
    %23 = vector.load %arg6[%c30, %c0_13] : memref<75x320xf32, #tpu.memory_space<vmem>>, vector<3x320xf32>
    tpu.vector_store %arg6[%c30, %c0_13], %22 {strides = array<i32>} : memref<75x320xf32, #tpu.memory_space<vmem>>, vector<3x320xf32>,
    %24 = vector.extract_strided_slice %1 {offsets = [0, 59], sizes = [3, 320], strides = [1, 1]} : vector<3x440xf32> to vector<3x320xf32>
    %c33 = arith.constant 33 : index
    %c0_14 = arith.constant 0 : index
    %25 = vector.load %arg6[%c33, %c0_14] : memref<75x320xf32, #tpu.memory_space<vmem>>, vector<3x320xf32>
    tpu.vector_store %arg6[%c33, %c0_14], %24 {strides = array<i32>} : memref<75x320xf32, #tpu.memory_space<vmem>>, vector<3x320xf32>,
    %26 = vector.extract_strided_slice %1 {offsets = [0, 60], sizes = [3, 320], strides = [1, 1]} : vector<3x440xf32> to vector<3x320xf32>
    %c36 = arith.constant 36 : index
    %c0_15 = arith.constant 0 : index
    %27 = vector.load %arg6[%c36, %c0_15] : memref<75x320xf32, #tpu.memory_space<vmem>>, vector<3x320xf32>
    tpu.vector_store %arg6[%c36, %c0_15], %26 {strides = array<i32>} : memref<75x320xf32, #tpu.memory_space<vmem>>, vector<3x320xf32>,
    %28 = vector.extract_strided_slice %1 {offsets = [0, 61], sizes = [3, 320], strides = [1, 1]} : vector<3x440xf32> to vector<3x320xf32>
    %c39 = arith.constant 39 : index
    %c0_16 = arith.constant 0 : index
    %29 = vector.load %arg6[%c39, %c0_16] : memref<75x320xf32, #tpu.memory_space<vmem>>, vector<3x320xf32>
    tpu.vector_store %arg6[%c39, %c0_16], %28 {strides = array<i32>} : memref<75x320xf32, #tpu.memory_space<vmem>>, vector<3x320xf32>,
    %30 = vector.extract_strided_slice %1 {offsets = [0, 62], sizes = [3, 320], strides = [1, 1]} : vector<3x440xf32> to vector<3x320xf32>
    %c42 = arith.constant 42 : index
    %c0_17 = arith.constant 0 : index
    %31 = vector.load %arg6[%c42, %c0_17] : memref<75x320xf32, #tpu.memory_space<vmem>>, vector<3x320xf32>
    tpu.vector_store %arg6[%c42, %c0_17], %30 {strides = array<i32>} : memref<75x320xf32, #tpu.memory_space<vmem>>, vector<3x320xf32>,
    %32 = vector.extract_strided_slice %1 {offsets = [0, 78], sizes = [3, 320], strides = [1, 1]} : vector<3x440xf32> to vector<3x320xf32>
    %c45 = arith.constant 45 : index
    %c0_18 = arith.constant 0 : index
    %33 = vector.load %arg6[%c45, %c0_18] : memref<75x320xf32, #tpu.memory_space<vmem>>, vector<3x320xf32>
    tpu.vector_store %arg6[%c45, %c0_18], %32 {strides = array<i32>} : memref<75x320xf32, #tpu.memory_space<vmem>>, vector<3x320xf32>,
    %34 = vector.extract_strided_slice %1 {offsets = [0, 79], sizes = [3, 320], strides = [1, 1]} : vector<3x440xf32> to vector<3x320xf32>
    %c48 = arith.constant 48 : index
    %c0_19 = arith.constant 0 : index
    %35 = vector.load %arg6[%c48, %c0_19] : memref<75x320xf32, #tpu.memory_space<vmem>>, vector<3x320xf32>
    tpu.vector_store %arg6[%c48, %c0_19], %34 {strides = array<i32>} : memref<75x320xf32, #tpu.memory_space<vmem>>, vector<3x320xf32>,
    %36 = vector.extract_strided_slice %1 {offsets = [0, 80], sizes = [3, 320], strides = [1, 1]} : vector<3x440xf32> to vector<3x320xf32>
    %c51 = arith.constant 51 : index
    %c0_20 = arith.constant 0 : index
    %37 = vector.load %arg6[%c51, %c0_20] : memref<75x320xf32, #tpu.memory_space<vmem>>, vector<3x320xf32>
    tpu.vector_store %arg6[%c51, %c0_20], %36 {strides = array<i32>} : memref<75x320xf32, #tpu.memory_space<vmem>>, vector<3x320xf32>,
    %38 = vector.extract_strided_slice %1 {offsets = [0, 81], sizes = [3, 320], strides = [1, 1]} : vector<3x440xf32> to vector<3x320xf32>
    %c54 = arith.constant 54 : index
    %c0_21 = arith.constant 0 : index
    %39 = vector.load %arg6[%c54, %c0_21] : memref<75x320xf32, #tpu.memory_space<vmem>>, vector<3x320xf32>
    tpu.vector_store %arg6[%c54, %c0_21], %38 {strides = array<i32>} : memref<75x320xf32, #tpu.memory_space<vmem>>, vector<3x320xf32>,
    %40 = vector.extract_strided_slice %1 {offsets = [0, 82], sizes = [3, 320], strides = [1, 1]} : vector<3x440xf32> to vector<3x320xf32>
    %c57 = arith.constant 57 : index
    %c0_22 = arith.constant 0 : index
    %41 = vector.load %arg6[%c57, %c0_22] : memref<75x320xf32, #tpu.memory_space<vmem>>, vector<3x320xf32>
    tpu.vector_store %arg6[%c57, %c0_22], %40 {strides = array<i32>} : memref<75x320xf32, #tpu.memory_space<vmem>>, vector<3x320xf32>,
    %42 = vector.extract_strided_slice %1 {offsets = [0, 98], sizes = [3, 320], strides = [1, 1]} : vector<3x440xf32> to vector<3x320xf32>
    %c60 = arith.constant 60 : index
    %c0_23 = arith.constant 0 : index
    %43 = vector.load %arg6[%c60, %c0_23] : memref<75x320xf32, #tpu.memory_space<vmem>>, vector<3x320xf32>
    tpu.vector_store %arg6[%c60, %c0_23], %42 {strides = array<i32>} : memref<75x320xf32, #tpu.memory_space<vmem>>, vector<3x320xf32>,
    %44 = vector.extract_strided_slice %1 {offsets = [0, 99], sizes = [3, 320], strides = [1, 1]} : vector<3x440xf32> to vector<3x320xf32>
    %c63 = arith.constant 63 : index
    %c0_24 = arith.constant 0 : index
    %45 = vector.load %arg6[%c63, %c0_24] : memref<75x320xf32, #tpu.memory_space<vmem>>, vector<3x320xf32>
    tpu.vector_store %arg6[%c63, %c0_24], %44 {strides = array<i32>} : memref<75x320xf32, #tpu.memory_space<vmem>>, vector<3x320xf32>,
    %46 = vector.extract_strided_slice %1 {offsets = [0, 100], sizes = [3, 320], strides = [1, 1]} : vector<3x440xf32> to vector<3x320xf32>
    %c66 = arith.constant 66 : index
    %c0_25 = arith.constant 0 : index
    %47 = vector.load %arg6[%c66, %c0_25] : memref<75x320xf32, #tpu.memory_space<vmem>>, vector<3x320xf32>
    tpu.vector_store %arg6[%c66, %c0_25], %46 {strides = array<i32>} : memref<75x320xf32, #tpu.memory_space<vmem>>, vector<3x320xf32>,
    %48 = vector.extract_strided_slice %1 {offsets = [0, 101], sizes = [3, 320], strides = [1, 1]} : vector<3x440xf32> to vector<3x320xf32>
    %c69 = arith.constant 69 : index
    %c0_26 = arith.constant 0 : index
    %49 = vector.load %arg6[%c69, %c0_26] : memref<75x320xf32, #tpu.memory_space<vmem>>, vector<3x320xf32>
    tpu.vector_store %arg6[%c69, %c0_26], %48 {strides = array<i32>} : memref<75x320xf32, #tpu.memory_space<vmem>>, vector<3x320xf32>,
    %50 = vector.extract_strided_slice %1 {offsets = [0, 102], sizes = [3, 320], strides = [1, 1]} : vector<3x440xf32> to vector<3x320xf32>
    %c72 = arith.constant 72 : index
    %c0_27 = arith.constant 0 : index
    %51 = vector.load %arg6[%c72, %c0_27] : memref<75x320xf32, #tpu.memory_space<vmem>>, vector<3x320xf32>
    tpu.vector_store %arg6[%c72, %c0_27], %50 {strides = array<i32>} : memref<75x320xf32, #tpu.memory_space<vmem>>, vector<3x320xf32>,
    %c0_28 = arith.constant 0 : index
    %c0_29 = arith.constant 0 : index
    %52 = vector.load %arg3[%c0_28, %c0_29] : memref<20x75xf32, #tpu.memory_space<vmem>>, vector<20x75xf32>
    %c0_30 = arith.constant 0 : index
    %c0_31 = arith.constant 0 : index
    %53 = vector.load %arg6[%c0_30, %c0_31] : memref<75x320xf32, #tpu.memory_space<vmem>>, vector<75x320xf32>
    %cst = arith.constant dense<0.000000e+00> : vector<20x320xf32>
    %54 = tpu.matmul %52, %53, %cst {dimension_numbers = #tpu.dot_dimension_numbers<[1], [0], [0], [1], [0, 0, 1, 1], [], []>} : vector<20x75xf32>, vector<75x320xf32>, vector<20x320xf32> -> vector<20x320xf32>
    %55 = vector.extract_strided_slice %54 {offsets = [0, 0], sizes = [8, 320], strides = [1, 1]} : vector<20x320xf32> to vector<8x320xf32>
    %c0_32 = arith.constant 0 : index
    %c0_33 = arith.constant 0 : index
    %56 = vector.load %arg2[%c0_32, %c0_33] : memref<1x320xf32, #tpu.memory_space<vmem>>, vector<1x320xf32>
    %57 = vector.broadcast %56 : vector<1x320xf32> to vector<8x320xf32>
    %58 = arith.mulf %55, %57 : vector<8x320xf32>
    %c0_34 = arith.constant 0 : index
    %c0_35 = arith.constant 0 : index
    %c0_36 = arith.constant 0 : index
    %59 = vector.load %arg4[%c0_34, %c0_35, %c0_36] : memref<1x8x320xf32, #tpu.memory_space<vmem>>, vector<1x8x320xf32>
    %60 = vector.shape_cast %59 : vector<1x8x320xf32> to vector<8x320xf32>
    %61 = vector.shape_cast %58 : vector<8x320xf32> to vector<1x8x320xf32>
    tpu.vector_store %arg4[%c0_34, %c0_35, %c0_36], %61 {strides = array<i32>} : memref<1x8x320xf32, #tpu.memory_space<vmem>>, vector<1x8x320xf32>,
    %62 = vector.extract_strided_slice %54 {offsets = [8, 0], sizes = [12, 320], strides = [1, 1]} : vector<20x320xf32> to vector<12x320xf32>
    %c0_37 = arith.constant 0 : index
    %c0_38 = arith.constant 0 : index
    %c0_39 = arith.constant 0 : index
    %63 = vector.load %arg5[%c0_37, %c0_38, %c0_39] : memref<1x12x320xf32, #tpu.memory_space<vmem>>, vector<1x12x320xf32>
    %64 = vector.shape_cast %63 : vector<1x12x320xf32> to vector<12x320xf32>
    %65 = vector.shape_cast %62 : vector<12x320xf32> to vector<1x12x320xf32>
    tpu.vector_store %arg5[%c0_37, %c0_38, %c0_39], %65 {strides = array<i32>} : memref<1x12x320xf32, #tpu.memory_space<vmem>>, vector<1x12x320xf32>,
    return
  }
  func.func @transform_0(%arg0: i32) -> (i32, i32, i32) {
    %c0_i32 = arith.constant 0 : i32
    %c0_i32_0 = arith.constant 0 : i32
    %c0_i32_1 = arith.constant 0 : i32
    return %arg0, %c0_i32, %c0_i32_0 : i32, i32, i32
  }
  func.func @transform_1(%arg0: i32) -> (i32, i32) {
    %c0_i32 = arith.constant 0 : i32
    %c0_i32_0 = arith.constant 0 : i32
    %c0_i32_1 = arith.constant 0 : i32
    return %c0_i32, %c0_i32_0 : i32, i32
  }
  func.func @transform_2(%arg0: i32) -> (i32, i32) {
    %c0_i32 = arith.constant 0 : i32
    %c0_i32_0 = arith.constant 0 : i32
    %c0_i32_1 = arith.constant 0 : i32
    return %c0_i32, %c0_i32_0 : i32, i32
  }
  func.func @transform_3(%arg0: i32) -> (i32, i32, i32) {
    %c0_i32 = arith.constant 0 : i32
    %c0_i32_0 = arith.constant 0 : i32
    %c0_i32_1 = arith.constant 0 : i32
    return %arg0, %c0_i32, %c0_i32_0 : i32, i32, i32
  }
  func.func @transform_4(%arg0: i32) -> (i32, i32, i32) {
    %c0_i32 = arith.constant 0 : i32
    %c0_i32_0 = arith.constant 0 : i32
    %c0_i32_1 = arith.constant 0 : i32
    return %arg0, %c0_i32, %c0_i32_0 : i32, i32, i32
  }
}

module attributes {stable_mosaic.version = 11 : i64} {
  func.func @kernel(%arg0: i32, %arg1: memref<1x8x320xf32, #tpu.memory_space<vmem>>, %arg2: memref<1x12x320xf32, #tpu.memory_space<vmem>>, %arg3: memref<12x72xf32, #tpu.memory_space<vmem>>, %arg4: memref<12x1xf32, #tpu.memory_space<vmem>>, %arg5: memref<1x12x320xf32, #tpu.memory_space<vmem>>, %arg6: memref<8x400xf32, #tpu.memory_space<vmem>>, %arg7: memref<72x320xf32, #tpu.memory_space<vmem>>) attributes {dimension_semantics = [#tpu.dimension_semantics<parallel>], iteration_bounds = array<i64: 2>, scalar_prefetch = 0 : i64, scratch_operands = 2 : i64, tpu.core_type = #tpu.core_type<tc>, window_params = [{transform_indices = @transform_0, window_bounds = array<i64: 1, 8, 320>}, {transform_indices = @transform_1, window_bounds = array<i64: 1, 12, 320>}, {pipeline_mode = #tpu.pipeline_mode<synchronous>, transform_indices = @transform_2, window_bounds = array<i64: 12, 72>}, {pipeline_mode = #tpu.pipeline_mode<synchronous>, transform_indices = @transform_3, window_bounds = array<i64: 12, 1>}, {transform_indices = @transform_4, window_bounds = array<i64: 1, 12, 320>}]} {
    %cst = arith.constant 0.000000e+00 : f32
    %0 = vector.broadcast %cst : f32 to vector<8x40xf32>
    %c0 = arith.constant 0 : index
    %c0_0 = arith.constant 0 : index
    %1 = vector.load %arg6[%c0, %c0_0] : memref<8x400xf32, #tpu.memory_space<vmem>>, vector<8x40xf32>
    tpu.vector_store %arg6[%c0, %c0_0], %0 {strides = array<i32>} : memref<8x400xf32, #tpu.memory_space<vmem>>, vector<8x40xf32>,
    %cst_1 = arith.constant 0.000000e+00 : f32
    %2 = vector.broadcast %cst_1 : f32 to vector<8x40xf32>
    %c0_2 = arith.constant 0 : index
    %c360 = arith.constant 360 : index
    %3 = vector.load %arg6[%c0_2, %c360] : memref<8x400xf32, #tpu.memory_space<vmem>>, vector<8x40xf32>
    tpu.vector_store %arg6[%c0_2, %c360], %2 {strides = array<i32>} : memref<8x400xf32, #tpu.memory_space<vmem>>, vector<8x40xf32>,
    %c0_3 = arith.constant 0 : index
    %c0_4 = arith.constant 0 : index
    %c0_5 = arith.constant 0 : index
    %4 = vector.load %arg1[%c0_3, %c0_4, %c0_5] : memref<1x8x320xf32, #tpu.memory_space<vmem>>, vector<1x8x320xf32>
    %5 = vector.shape_cast %4 : vector<1x8x320xf32> to vector<8x320xf32>
    %c0_6 = arith.constant 0 : index
    %c40 = arith.constant 40 : index
    %6 = vector.load %arg6[%c0_6, %c40] : memref<8x400xf32, #tpu.memory_space<vmem>>, vector<8x320xf32>
    tpu.vector_store %arg6[%c0_6, %c40], %5 {strides = array<i32>} : memref<8x400xf32, #tpu.memory_space<vmem>>, vector<8x320xf32>,
    %c0_7 = arith.constant 0 : index
    %c19 = arith.constant 19 : index
    %7 = vector.load %arg6[%c0_7, %c19] : memref<8x400xf32, #tpu.memory_space<vmem>>, vector<8x320xf32>
    %c0_8 = arith.constant 0 : index
    %c0_9 = arith.constant 0 : index
    %8 = vector.load %arg7[%c0_8, %c0_9] : memref<72x320xf32, #tpu.memory_space<vmem>>, vector<8x320xf32>
    tpu.vector_store %arg7[%c0_8, %c0_9], %7 {strides = array<i32>} : memref<72x320xf32, #tpu.memory_space<vmem>>, vector<8x320xf32>,
    %c0_10 = arith.constant 0 : index
    %c20 = arith.constant 20 : index
    %9 = vector.load %arg6[%c0_10, %c20] : memref<8x400xf32, #tpu.memory_space<vmem>>, vector<8x320xf32>
    %c8 = arith.constant 8 : index
    %c0_11 = arith.constant 0 : index
    %10 = vector.load %arg7[%c8, %c0_11] : memref<72x320xf32, #tpu.memory_space<vmem>>, vector<8x320xf32>
    tpu.vector_store %arg7[%c8, %c0_11], %9 {strides = array<i32>} : memref<72x320xf32, #tpu.memory_space<vmem>>, vector<8x320xf32>,
    %c0_12 = arith.constant 0 : index
    %c21 = arith.constant 21 : index
    %11 = vector.load %arg6[%c0_12, %c21] : memref<8x400xf32, #tpu.memory_space<vmem>>, vector<8x320xf32>
    %c16 = arith.constant 16 : index
    %c0_13 = arith.constant 0 : index
    %12 = vector.load %arg7[%c16, %c0_13] : memref<72x320xf32, #tpu.memory_space<vmem>>, vector<8x320xf32>
    tpu.vector_store %arg7[%c16, %c0_13], %11 {strides = array<i32>} : memref<72x320xf32, #tpu.memory_space<vmem>>, vector<8x320xf32>,
    %c0_14 = arith.constant 0 : index
    %c39 = arith.constant 39 : index
    %13 = vector.load %arg6[%c0_14, %c39] : memref<8x400xf32, #tpu.memory_space<vmem>>, vector<8x320xf32>
    %c24 = arith.constant 24 : index
    %c0_15 = arith.constant 0 : index
    %14 = vector.load %arg7[%c24, %c0_15] : memref<72x320xf32, #tpu.memory_space<vmem>>, vector<8x320xf32>
    tpu.vector_store %arg7[%c24, %c0_15], %13 {strides = array<i32>} : memref<72x320xf32, #tpu.memory_space<vmem>>, vector<8x320xf32>,
    %c0_16 = arith.constant 0 : index
    %c40_17 = arith.constant 40 : index
    %15 = vector.load %arg6[%c0_16, %c40_17] : memref<8x400xf32, #tpu.memory_space<vmem>>, vector<8x320xf32>
    %c32 = arith.constant 32 : index
    %c0_18 = arith.constant 0 : index
    %16 = vector.load %arg7[%c32, %c0_18] : memref<72x320xf32, #tpu.memory_space<vmem>>, vector<8x320xf32>
    tpu.vector_store %arg7[%c32, %c0_18], %15 {strides = array<i32>} : memref<72x320xf32, #tpu.memory_space<vmem>>, vector<8x320xf32>,
    %c0_19 = arith.constant 0 : index
    %c41 = arith.constant 41 : index
    %17 = vector.load %arg6[%c0_19, %c41] : memref<8x400xf32, #tpu.memory_space<vmem>>, vector<8x320xf32>
    %c40_20 = arith.constant 40 : index
    %c0_21 = arith.constant 0 : index
    %18 = vector.load %arg7[%c40_20, %c0_21] : memref<72x320xf32, #tpu.memory_space<vmem>>, vector<8x320xf32>
    tpu.vector_store %arg7[%c40_20, %c0_21], %17 {strides = array<i32>} : memref<72x320xf32, #tpu.memory_space<vmem>>, vector<8x320xf32>,
    %c0_22 = arith.constant 0 : index
    %c59 = arith.constant 59 : index
    %19 = vector.load %arg6[%c0_22, %c59] : memref<8x400xf32, #tpu.memory_space<vmem>>, vector<8x320xf32>
    %c48 = arith.constant 48 : index
    %c0_23 = arith.constant 0 : index
    %20 = vector.load %arg7[%c48, %c0_23] : memref<72x320xf32, #tpu.memory_space<vmem>>, vector<8x320xf32>
    tpu.vector_store %arg7[%c48, %c0_23], %19 {strides = array<i32>} : memref<72x320xf32, #tpu.memory_space<vmem>>, vector<8x320xf32>,
    %c0_24 = arith.constant 0 : index
    %c60 = arith.constant 60 : index
    %21 = vector.load %arg6[%c0_24, %c60] : memref<8x400xf32, #tpu.memory_space<vmem>>, vector<8x320xf32>
    %c56 = arith.constant 56 : index
    %c0_25 = arith.constant 0 : index
    %22 = vector.load %arg7[%c56, %c0_25] : memref<72x320xf32, #tpu.memory_space<vmem>>, vector<8x320xf32>
    tpu.vector_store %arg7[%c56, %c0_25], %21 {strides = array<i32>} : memref<72x320xf32, #tpu.memory_space<vmem>>, vector<8x320xf32>,
    %c0_26 = arith.constant 0 : index
    %c61 = arith.constant 61 : index
    %23 = vector.load %arg6[%c0_26, %c61] : memref<8x400xf32, #tpu.memory_space<vmem>>, vector<8x320xf32>
    %c64 = arith.constant 64 : index
    %c0_27 = arith.constant 0 : index
    %24 = vector.load %arg7[%c64, %c0_27] : memref<72x320xf32, #tpu.memory_space<vmem>>, vector<8x320xf32>
    tpu.vector_store %arg7[%c64, %c0_27], %23 {strides = array<i32>} : memref<72x320xf32, #tpu.memory_space<vmem>>, vector<8x320xf32>,
    %c0_28 = arith.constant 0 : index
    %c0_29 = arith.constant 0 : index
    %25 = vector.load %arg3[%c0_28, %c0_29] : memref<12x72xf32, #tpu.memory_space<vmem>>, vector<12x72xf32>
    %c0_30 = arith.constant 0 : index
    %c0_31 = arith.constant 0 : index
    %26 = vector.load %arg7[%c0_30, %c0_31] : memref<72x320xf32, #tpu.memory_space<vmem>>, vector<72x320xf32>
    %cst_32 = arith.constant dense<0.000000e+00> : vector<12x320xf32>
    %27 = tpu.matmul %25, %26, %cst_32 {dimension_numbers = #tpu.dot_dimension_numbers<[1], [0], [0], [1], [0, 0, 1, 1], [], []>} : vector<12x72xf32>, vector<72x320xf32>, vector<12x320xf32> -> vector<12x320xf32>
    %c0_33 = arith.constant 0 : index
    %c0_34 = arith.constant 0 : index
    %c0_35 = arith.constant 0 : index
    %28 = vector.load %arg2[%c0_33, %c0_34, %c0_35] : memref<1x12x320xf32, #tpu.memory_space<vmem>>, vector<1x12x320xf32>
    %29 = vector.shape_cast %28 : vector<1x12x320xf32> to vector<12x320xf32>
    %30 = arith.addf %27, %29 : vector<12x320xf32>
    %cst_36 = arith.constant 5.000000e-01 : f32
    %31 = vector.broadcast %cst_36 : f32 to vector<12x320xf32>
    %32 = arith.mulf %30, %31 : vector<12x320xf32>
    %c0_37 = arith.constant 0 : index
    %c0_38 = arith.constant 0 : index
    %33 = vector.load %arg4[%c0_37, %c0_38] : memref<12x1xf32, #tpu.memory_space<vmem>>, vector<12x1xf32>
    %34 = vector.broadcast %33 : vector<12x1xf32> to vector<12x320xf32>
    %35 = arith.addf %32, %34 : vector<12x320xf32>
    %c0_39 = arith.constant 0 : index
    %c0_40 = arith.constant 0 : index
    %c0_41 = arith.constant 0 : index
    %36 = vector.load %arg5[%c0_39, %c0_40, %c0_41] : memref<1x12x320xf32, #tpu.memory_space<vmem>>, vector<1x12x320xf32>
    %37 = vector.shape_cast %36 : vector<1x12x320xf32> to vector<12x320xf32>
    %38 = vector.shape_cast %35 : vector<12x320xf32> to vector<1x12x320xf32>
    tpu.vector_store %arg5[%c0_39, %c0_40, %c0_41], %38 {strides = array<i32>} : memref<1x12x320xf32, #tpu.memory_space<vmem>>, vector<1x12x320xf32>,
    return
  }
  func.func @transform_0(%arg0: i32) -> (i32, i32, i32) {
    %c0_i32 = arith.constant 0 : i32
    %c0_i32_0 = arith.constant 0 : i32
    %c0_i32_1 = arith.constant 0 : i32
    return %arg0, %c0_i32, %c0_i32_0 : i32, i32, i32
  }
  func.func @transform_1(%arg0: i32) -> (i32, i32, i32) {
    %c0_i32 = arith.constant 0 : i32
    %c0_i32_0 = arith.constant 0 : i32
    %c0_i32_1 = arith.constant 0 : i32
    return %arg0, %c0_i32, %c0_i32_0 : i32, i32, i32
  }
  func.func @transform_2(%arg0: i32) -> (i32, i32) {
    %c0_i32 = arith.constant 0 : i32
    %c0_i32_0 = arith.constant 0 : i32
    %c0_i32_1 = arith.constant 0 : i32
    return %c0_i32, %c0_i32_0 : i32, i32
  }
  func.func @transform_3(%arg0: i32) -> (i32, i32) {
    %c0_i32 = arith.constant 0 : i32
    %c0_i32_0 = arith.constant 0 : i32
    %c0_i32_1 = arith.constant 0 : i32
    return %c0_i32, %c0_i32_0 : i32, i32
  }
  func.func @transform_4(%arg0: i32) -> (i32, i32, i32) {
    %c0_i32 = arith.constant 0 : i32
    %c0_i32_0 = arith.constant 0 : i32
    %c0_i32_1 = arith.constant 0 : i32
    return %arg0, %c0_i32, %c0_i32_0 : i32, i32, i32
  }
}

</mosaic_0001>

<bundles_post_ra>
// kernel: model_forward.5
= control target key start
LH: loop header
LB: loop body
LE: loop exit
PB: predicated region body
PF: predicated region fallthrough
CT: control target
= control target key end

     0   :  { %s875_s15 = smov 0   ;;  %s941_s0 = inlined_call_operand.vmem [shape: f32[2,8,320], index: 0, kind: input, shape index: {}]   ;;  %s942_s1 = inlined_call_operand.vmem [shape: f32[2,12,320], index: 1, kind: input, shape index: {}]   ;;  %s943_s2 = inlined_call_operand.vmem [shape: f32[12,72], index: 2, kind: input, shape index: {}]   ;;  %s944_s3 = inlined_call_operand.vmem [shape: f32[12,1], index: 3, kind: input, shape index: {}]   ;;  %s945_s4 = inlined_call_operand.vmem [shape: f32[2,12,320], index: 4, kind: output, shape index: {}]  }
   0x1 LB: > { %s728_s16 = sadd.s32 4294967295, %s836_s15   ;;  %p732_p0 = scmp.ge.s32.totalorder %s836_s15, 1  ;;  %s836_s15 = sphi %s875_s15, %s14_s15  }
   0x2   : > { %p172_p1 = scmp.lt.s32.totalorder %s836_s15, 3 }
   0x4   : > { %p173_p2 = pnand %p732_p0, %p172_p1 }
   0x5   : > { %p203_p3 = scmp.lt.s32.totalorder (!%p173_p2), %s728_s16, 1  ;;  %vm218_vm0 = vcmask (!%p173_p2), 326656   ;;  %v838_v0 = vmov (!%p173_p2), 0.0   ;;  %vm220_vm1 = vcmask (!%p173_p2), 1048384   ;;  %s839_s21 = smov (!%p173_p2), 40   ;;  %vm241_vm2 = vcmask (!%p173_p2), 1047872  }
   0x6   : > { %176 = sbr.rel (%p173_p2) target bundleno = 534 (0x216), region = 36  ;;  %219 = vst.msk [vmem:[#allocation2] sm:$0xff] (!%p173_p2), %vm218_vm0, %v838_v0  ;;  %542 = vmatprep.mubr.f32.mxu0 (!%p173_p2), %v838_v0  ;;  %vm244_vm3 = vcmask (!%p173_p2), 850944   ;;  %s840_s22 = smov (!%p173_p2), 108   ;;  %v898_v11 = vld [vmem:[%s943_s2] sm:$0xff] (!%p173_p2)  ;;  %vm471_vm4 = vcmask (!%p173_p2), 588800  }
   0x7   : > { %221 = vst.msk [vmem:[#allocation2 + $0x10] sm:$0xff] (!%p173_p2), %vm220_vm1, %v838_v0  ;;  %s841_s23 = smov (!%p173_p2), 109   ;;  %s842_s24 = smov (!%p173_p2), 89   ;;  %771 = vmatprep.mubr.msk.f32.mxu1 (!%p173_p2), %vm471_vm4, %v898_v11  ;;  %v848_v12 = vmov (!%p173_p2), 0   ;;  %v636_v13 = vld [vmem:[%s944_s3] sm:$0xff] (!%p173_p2)  ;;  %vm266_vm5 = vcmask (!%p173_p2), 523264  }
   0x8   : > { %s843_s25 = smov (!%p173_p2), 107   ;;  %s844_s26 = smov (!%p173_p2), 87   ;;  %828 = vset.pattern.permute.xlu0 (!%p173_p2), %v848_v12  ;;  %829 = vset.pattern.permute.xlu1 (!%p173_p2), %v848_v12  ;;  %v637_v14 = vld [vmem:[%s944_s3 + $0x8] sm:$0xf] (!%p173_p2)  ;;  %vm258_vm6 = vcmask (!%p173_p2), 891904   ;;  %vm280_vm7 = vcmask (!%p173_p2), 883712  }
   0x9   : > { %s845_s27 = smov (!%p173_p2), 88   ;;  %s846_s28 = smov (!%p173_p2), 69   ;;  %vm301_vm8 = vcmask (!%p173_p2), 875520   ;;  %vm322_vm9 = vcmask (!%p173_p2), 728064   ;;  %vm343_vm10 = vcmask (!%p173_p2), 719872   ;;  %vm364_vm11 = vcmask (!%p173_p2), 711680  }
   0xa   : > { %s847_s29 = smov (!%p173_p2), 68   ;;  %s849_s6 = smov (!%p173_p2), 67   ;;  %vm385_vm12 = vcmask (!%p173_p2), 564224   ;;  %vm406_vm13 = vcmask (!%p173_p2), 556032   ;;  %vm427_vm14 = vcmask (!%p173_p2), 547840   ;;  %vm659_vm15 = vcmask (!%p173_p2), 519168  }
   0xd   : > { %s947_s16 = smov (!%p203_p3, %s728_s16), 1 }
   0xe   : > { %s806_s17 = smul.u32 24, %s947_s16 }
   0xf   : > { %s807_s13 = smul.u32 48, %s947_s16 }
  0x10   : > { %s207_s20 = scalar_lea.vmem %s941_s0, %s806_s17 }
  0x11   : > { %v224_v1 = vld [vmem:[%s207_s20] sm:$0xff]  ;;  %v226_v2 = vld [vmem:[%s207_s20 + $0x10] sm:$0xff]  ;;  %v225_v3 = vld [vmem:[%s207_s20 + $0x8] sm:$0xff]  ;;  %s212_s18 = scalar_lea.vmem %s942_s1, %s807_s13  ;;  %s217_s16 = scalar_lea.vmem %s945_s4, %s807_s13 }
  0x12   : > { %230 = vrot.lane.b32.xlu0 %v224_v1, %s839_s21  ;;  %234 = vrot.lane.b32.xlu1 %v226_v2, %s839_s21 }
  0x16   : > { %232 = vrot.lane.b32.xlu0 %v225_v3, %s839_s21 }
  0x84   : > { %v231_v4 = vpop.permute.xlu0 %230  ;;  %v235_v5 = vpop.permute.xlu1 %234 }
  0x85   : > { %242 = vst.msk [vmem:[#allocation2] sm:$0xff] %vm241_vm2, %v231_v4 }
  0x88   : > { %v233_v6 = vpop.permute.xlu0 %232 }
  0x89   : > { %v236_v7 = vsel %vm218_vm0, %v231_v4, %v233_v6  ;;  %v237_v8 = vsel %vm218_vm0, %v233_v6, %v235_v5 }
  0x8a   : > { %245 = vst.msk [vmem:[#allocation2 + $0x10] sm:$0xff] %vm244_vm3, %v237_v8 }
  0x8c   : > { %v268_v9 = vld [vmem:[#allocation2] sm:$0xff] }
  0x8d   : > { %274 = vrot.lane.b32.xlu0 %v268_v9, %s840_s22  ;;  %252 = vrot.lane.b32.xlu1 %v268_v9, %s841_s23 }
  0x91   : > { %316 = vrot.lane.b32.xlu0 %v268_v9, %s842_s24  ;;  %295 = vrot.lane.b32.xlu1 %v268_v9, %s843_s25  ;;  %v248_v10 = vld [vmem:[#allocation2 + $0x10] sm:$0xff] }
  0x95   : > { %358 = vrot.lane.b32.xlu0 %v268_v9, %s844_s26  ;;  %337 = vrot.lane.b32.xlu1 %v268_v9, %s845_s27 }
  0x99   : > { %379 = vrot.lane.b32.xlu1 %v268_v9, %s846_s28  ;;  %256 = vrot.lane.b32.xlu0 %v248_v10, %s841_s23 }
  0x9d   : > { %278 = vrot.lane.b32.xlu0 %v248_v10, %s840_s22  ;;  %254 = vrot.lane.b32.xlu1 %v236_v7, %s841_s23 }
  0xa1   : > { %299 = vrot.lane.b32.xlu0 %v248_v10, %s843_s25  ;;  %276 = vrot.lane.b32.xlu1 %v236_v7, %s840_s22 }
  0xa5   : > { %320 = vrot.lane.b32.xlu0 %v248_v10, %s842_s24  ;;  %297 = vrot.lane.b32.xlu1 %v236_v7, %s843_s25 }
  0xa9   : > { %341 = vrot.lane.b32.xlu0 %v248_v10, %s845_s27  ;;  %318 = vrot.lane.b32.xlu1 %v236_v7, %s842_s24 }
  0xad   : > { %362 = vrot.lane.b32.xlu0 %v248_v10, %s844_s26  ;;  %339 = vrot.lane.b32.xlu1 %v236_v7, %s845_s27 }
  0xb1   : > { %383 = vrot.lane.b32.xlu0 %v248_v10, %s846_s28  ;;  %360 = vrot.lane.b32.xlu1 %v236_v7, %s844_s26 }
  0xb5   : > { %404 = vrot.lane.b32.xlu0 %v248_v10, %s847_s29  ;;  %381 = vrot.lane.b32.xlu1 %v236_v7, %s846_s28 }
  0xb9   : > { %400 = vrot.lane.b32.xlu0 %v268_v9, %s847_s29  ;;  %402 = vrot.lane.b32.xlu1 %v236_v7, %s847_s29 }
  0xbd   : > { %425 = vrot.lane.b32.xlu0 %v248_v10, %s849_s6  ;;  %423 = vrot.lane.b32.xlu1 %v236_v7, %s849_s6 }
  0xc1   : > { %421 = vrot.lane.b32.xlu1 %v268_v9, %s849_s6  ;;  %640 = vperm.xlu0 %828, %v636_v13  }
  0xc5   : > { %645 = vperm.xlu1 %829, %v637_v14  }
  0xff   : > { %v253_v15 = vpop.permute.xlu1 %252  ;;  %v275_v16 = vpop.permute.xlu0 %274 }
 0x103   : > { %v296_v17 = vpop.permute.xlu1 %295  ;;  %v317_v18 = vpop.permute.xlu0 %316 }
 0x107   : > { %v338_v19 = vpop.permute.xlu1 %337  ;;  %v359_v20 = vpop.permute.xlu0 %358 }
 0x10b   : > { %v908_v21 = vpop.permute.xlu1 %379  ;;  %v257_v22 = vpop.permute.xlu0 %256 }
 0x10c   : > { %267 = vst.msk [vmem:[#allocation3 + $0x10] sm:$0xff] %vm266_vm5, %v257_v22 }
 0x10f   : > { %v255_v23 = vpop.permute.xlu1 %254  ;;  %v279_v24 = vpop.permute.xlu0 %278 }
 0x110   : > { %v259_v25 = vsel %vm258_vm6, %v253_v15, %v255_v23  ;;  %v260_v26 = vsel %vm258_vm6, %v255_v23, %v257_v22  ;;  %288 = vst.msk [vmem:[#allocation3 + $0x28] sm:$0xff] %vm266_vm5, %v279_v24 }
 0x113   : > { %v277_v27 = vpop.permute.xlu1 %276  ;;  %v300_v28 = vpop.permute.xlu0 %299  ;;  %v440_v35 = vld [vmem:[#allocation3 + $0x10] sm:$0xff] }
 0x114   : > { %v281_v29 = vsel %vm280_vm7, %v275_v16, %v277_v27  ;;  %v282_v30 = vsel %vm280_vm7, %v277_v27, %v279_v24  ;;  %309 = vst.msk [vmem:[#allocation3 + $0x40] sm:$0xff] %vm266_vm5, %v300_v28  ;;  %v470_v24 = vld [vmem:[%s212_s18 + $0x28] sm:$0xf] }
 0x115   : > { %v774_v31 = vpack.c.bf16 %v282_v30, %v260_v26  ;;  %v776_v32 = vpack.c.bf16 %v281_v29, %v259_v25  ;;  %v468_v25 = vld [vmem:[%s212_s18 + $0x18] sm:$0xf]  ;;  %v469_v29 = vld [vmem:[%s212_s18 + $0x20] sm:$0xf] }
 0x117   : > { %v298_v33 = vpop.permute.xlu1 %297  ;;  %v321_v34 = vpop.permute.xlu0 %320  ;;  %v443_v36 = vld [vmem:[#allocation3 + $0x28] sm:$0xff]  ;;  %775 = vmatprep.subr.bf16.mxu0 %v774_v31 }
 0x118   : > { %v302_v37 = vsel %vm301_vm8, %v296_v17, %v298_v33  ;;  %v303_v38 = vsel %vm301_vm8, %v298_v33, %v300_v28  ;;  %330 = vst.msk [vmem:[#allocation3 + $0x58] sm:$0xff] %vm266_vm5, %v321_v34  ;;  %v790_v39 = vpack.c.bf16 %v443_v36, %v440_v35  ;;  %777 = vmatpush1.bf16.msra.mxu0 %v776_v32  ;;  %v467_v28 = vld [vmem:[%s212_s18 + $0x10] sm:$0xff] }
 0x11a   : > { %791 = vmatprep.subr.bf16.mxu1 %v790_v39 }
 0x11b   : > { %v319_v40 = vpop.permute.xlu1 %318  ;;  %793 = vmatpush3.bf16.msra.mxu1 %v790_v39  ;;  %v342_v41 = vpop.permute.xlu0 %341  ;;  %v446_v48 = vld [vmem:[#allocation3 + $0x40] sm:$0xff] }
 0x11c   : > { %v323_v42 = vsel %vm322_vm9, %v317_v18, %v319_v40  ;;  %v324_v43 = vsel %vm322_vm9, %v319_v40, %v321_v34  ;;  %351 = vst.msk [vmem:[#allocation3 + $0x70] sm:$0xff] %vm266_vm5, %v342_v41 }
 0x11d   : > { %v778_v44 = vpack.c.bf16 %v324_v43, %v303_v38  ;;  %v780_v45 = vpack.c.bf16 %v323_v42, %v302_v37 }
 0x11f   : > { %v340_v46 = vpop.permute.xlu1 %339  ;;  %v363_v47 = vpop.permute.xlu0 %362  ;;  %v449_v49 = vld [vmem:[#allocation3 + $0x58] sm:$0xff]  ;;  %779 = vmatprep.subr.bf16.mxu0 %v778_v44 }
 0x120   : > { %v344_v50 = vsel %vm343_vm10, %v338_v19, %v340_v46  ;;  %v345_v51 = vsel %vm343_vm10, %v340_v46, %v342_v41  ;;  %372 = vst.msk [vmem:[#allocation3 + $0x88] sm:$0xff] %vm266_vm5, %v363_v47  ;;  %v794_v52 = vpack.c.bf16 %v449_v49, %v446_v48  ;;  %781 = vmatpush1.bf16.msra.mxu0 %v780_v45  ;;  %v437_v19 = vld [vmem:[%s943_s2 + $0x8] sm:$0xf] }
 0x122   : > { %795 = vmatprep.subr.bf16.mxu1 %v794_v52 }
 0x123   : > { %v361_v53 = vpop.permute.xlu1 %360  ;;  %797 = vmatpush3.bf16.msra.mxu1 %v794_v52  ;;  %v384_v54 = vpop.permute.xlu0 %383  ;;  %v452_v61 = vld [vmem:[#allocation3 + $0x70] sm:$0xff] }
 0x124   : > { %v365_v55 = vsel %vm364_vm11, %v359_v20, %v361_v53  ;;  %v366_v56 = vsel %vm364_vm11, %v361_v53, %v363_v47  ;;  %393 = vst.msk [vmem:[#allocation3 + $0xa0] sm:$0xff] %vm266_vm5, %v384_v54  ;;  %v465_v20 = vld [vmem:[%s212_s18] sm:$0xff] }
 0x125   : > { %v782_v57 = vpack.c.bf16 %v366_v56, %v345_v51  ;;  %v784_v58 = vpack.c.bf16 %v365_v55, %v344_v50 }
 0x127   : > { %v382_v59 = vpop.permute.xlu1 %381  ;;  %v405_v60 = vpop.permute.xlu0 %404  ;;  %v455_v62 = vld [vmem:[#allocation3 + $0x88] sm:$0xff]  ;;  %783 = vmatprep.subr.bf16.mxu0 %v782_v57 }
 0x128   : > { %v386_v63 = vsel %vm385_vm12, %v908_v21, %v382_v59  ;;  %v387_v1 = vsel %vm385_vm12, %v382_v59, %v384_v54  ;;  %414 = vst.msk [vmem:[#allocation3 + $0xb8] sm:$0xff] %vm266_vm5, %v405_v60  ;;  %v798_v2 = vpack.c.bf16 %v455_v62, %v452_v61  ;;  %785 = vmatpush1.bf16.msra.mxu0 %v784_v58 }
 0x12a   : > { %799 = vmatprep.subr.bf16.mxu1 %v798_v2 }
 0x12b   : > { %v403_v3 = vpop.permute.xlu1 %402  ;;  %801 = vmatpush3.bf16.msra.mxu1 %v798_v2  ;;  %v401_v4 = vpop.permute.xlu0 %400  ;;  %v458_v12 = vld [vmem:[#allocation3 + $0xa0] sm:$0xff] }
 0x12c   : > { %v408_v5 = vsel %vm406_vm13, %v403_v3, %v405_v60  ;;  %v407_v6 = vsel %vm406_vm13, %v401_v4, %v403_v3 }
 0x12d   : > { %v786_v7 = vpack.c.bf16 %v408_v5, %v387_v1  ;;  %v788_v8 = vpack.c.bf16 %v407_v6, %v386_v63 }
 0x12f   : > { %v424_v9 = vpop.permute.xlu1 %423  ;;  %v426_v10 = vpop.permute.xlu0 %425  ;;  %v461_v13 = vld [vmem:[#allocation3 + $0xb8] sm:$0xff]  ;;  %787 = vmatprep.subr.bf16.mxu0 %v786_v7 }
 0x130   : > { %v429_v14 = vsel %vm427_vm14, %v424_v9, %v426_v10  ;;  %435 = vst.msk [vmem:[#allocation3 + $0xd0] sm:$0xff] %vm266_vm5, %v426_v10  ;;  %v802_v15 = vpack.c.bf16 %v461_v13, %v458_v12  ;;  %789 = vmatpush1.bf16.msra.mxu0 %v788_v8 }
 0x131   : > { %494 = vmatprep.subr.mxu0 %v429_v14 }
 0x132   : > { %803 = vmatprep.subr.bf16.mxu1 %v802_v15 }
 0x133   : > { %v422_v16 = vpop.permute.xlu1 %421  ;;  %805 = vmatpush3.bf16.msra.mxu1 %v802_v15 }
 0x134   : > { %v428_v17 = vsel %vm427_vm14, %v422_v16, %v424_v9 }
 0x135   : > { %495 = vmatpush1.msra.mxu0 %v428_v17 }
 0x136   : > { %736 = vmatmul.mubr.msk.f32.vlgmr.msra.gmra.mrb[0].mxu0 %vm471_vm4, %v898_v11  ;;  %v466_v11 = vld [vmem:[%s212_s18 + $0x8] sm:$0xff] }
 0x137   : > { %v464_v18 = vld [vmem:[#allocation3 + $0xd0] sm:$0xff]  ;;  %548 = vmatprep.mubr.f32.mxu0 %v838_v0 }
 0x138   : > { %769 = vmatprep.subr.mxu1 %v464_v18 }
 0x139   : > { %770 = vmatpush3.msra.mxu1 %v464_v18 }
 0x13a   : > { %772 = vmatmul.mubr.msk.f32.vlgmr.msra.gmra.mrb[0].mxu1 %vm471_vm4, %v437_v19  ;;  %737 = vmatmul.mubr.msk.f32.gmra.mrb[2].mxu0 %vm471_vm4, %v437_v19 }
 0x140   : > { %v641_v26 = vpop.permute.xlu0 %640 }
 0x144   : > { %v646_v41 = vpop.permute.xlu1 %645 }
 0x209   : > { %v544_v21 = vpop.f32.mrb[0].mxu0 }
 0x20a   : > { %v545_v22 = vadd.f32 %v544_v21, %v465_v20  ;;  %v546_v0 = vpop.f32.mrb[1].mxu0 }
 0x20b   : > { %v547_v23 = vadd.f32 %v546_v0, %v466_v11 }
 0x20c   : > { %v630_v27 = vmul.f32 0.5, %v545_v22 }
 0x20d   : > { %v631_v30 = vmul.f32 0.5, %v547_v23  ;;  %v773_v31 = vpop.f32.mrb[0].mxu1  ;;  %v550_v32 = vpop.f32.mrb[2].mxu0 }
 0x20e   : > { %v627_v33 = vadd.f32 %v773_v31, %v470_v24  ;;  %v551_v34 = vadd.f32 %v550_v32, %v468_v25  ;;  %v621_v35 = vpop.f32.mrb[1].mxu1  ;;  %v648_v36 = vadd.f32 %v641_v26, %v630_v27  ;;  %v552_v37 = vpop.f32.mrb[3].mxu0 }
 0x20f   : > { %v622_v38 = vadd.f32 %v621_v35, %v467_v28  ;;  %v649_v39 = vadd.f32 %v641_v26, %v631_v30  ;;  %v553_v40 = vadd.f32 %v552_v37, %v469_v29 }
 0x210   : > { %v635_v42 = vmul.f32 0.5, %v627_v33  ;;  %v633_v43 = vmul.f32 0.5, %v551_v34  ;;  %654 = vst [vmem:[%s217_s16] sm:$0xff] %v648_v36 }
 0x211   : > { %v632_v44 = vmul.f32 0.5, %v622_v38  ;;  %655 = vst [vmem:[%s217_s16 + $0x8] sm:$0xff] %v649_v39  ;;  %v634_v45 = vmul.f32 0.5, %v553_v40 }
 0x212   : > { %v651_v46 = vadd.f32 %v646_v41, %v633_v43  ;;  %v653_v47 = vadd.f32 %v646_v41, %v635_v42 }
 0x213   : > { %v650_v48 = vadd.f32 %v641_v26, %v632_v44  ;;  %v652_v49 = vadd.f32 %v646_v41, %v634_v45 }
 0x214   : > { %657 = vst [vmem:[%s217_s16 + $0x18] sm:$0xf] %v651_v46  ;;  %660 = vst.msk [vmem:[%s217_s16 + $0x28] sm:$0xf] %vm659_vm15, %v653_v47 }
 0x215   : > { %656 = vst.msk [vmem:[%s217_s16 + $0x10] sm:$0xff] %vm266_vm5, %v650_v48  ;;  %658 = vst [vmem:[%s217_s16 + $0x20] sm:$0xf] %v652_v49 }
 0x216 PF: > { %s14_s15 = sadd.s32 1, %s836_s15  }
 0x217   : > { %p11_p4 = scmp.ge.s32.totalorder %s14_s15, 4  }
 0x219   :  { %13 = sbr.rel (!%p11_p4) target bundleno = 1 (0x1), region = 69 }

// kernel: model_forward.4
= control target key start
LH: loop header
LB: loop body
LE: loop exit
PB: predicated region body
PF: predicated region fallthrough
CT: control target
= control target key end

     0   :  { %s3967_s21 = smov 0   ;;  %s3969_s22 = smov 0   ;;  %s6018_s0 = inlined_call_operand.vmem [shape: f32[1,320], index: 0, kind: input, shape index: {}]   ;;  %s6019_s1 = inlined_call_operand.vmem [shape: f32[2,8,320], index: 1, kind: input, shape index: {}]   ;;  %s6020_s2 = inlined_call_operand.vmem [shape: f32[2,20,8], index: 2, kind: input, shape index: {}]   ;;  %s6021_s3 = inlined_call_operand.vmem [shape: f32[2,16,9], index: 3, kind: input, shape index: {}]   ;;  %s6022_s4 = inlined_call_operand.vmem [shape: f32[2,16,1], index: 4, kind: input, shape index: {}]   ;;  %s6023_s5 = inlined_call_operand.vmem [shape: f32[2,16,25], index: 5, kind: input, shape index: {}]   ;;  %s6024_s6 = inlined_call_operand.vmem [shape: f32[2,16,1], index: 6, kind: input, shape index: {}]   ;;  %s6025_s7 = inlined_call_operand.vmem [shape: f32[2,32,16], index: 7, kind: input, shape index: {}]   ;;  %s6026_s8 = inlined_call_operand.vmem [shape: f32[2,32,1], index: 8, kind: input, shape index: {}]   ;;  %s6027_s9 = inlined_call_operand.vmem [shape: f32[2,32,32], index: 9, kind: input, shape index: {}]   ;;  %s6028_s10 = inlined_call_operand.vmem [shape: f32[2,32,1], index: 10, kind: input, shape index: {}]   ;;  %s6029_s11 = inlined_call_operand.vmem [shape: f32[2,4,16], index: 11, kind: input, shape index: {}]   ;;  %s6030_s12 = inlined_call_operand.vmem [shape: f32[2,8,320], index: 12, kind: output, shape index: {}]  }
   0x1   :  { %6125 = sst [smem:[#allocation110_spill]] %s6018_s0  ;;  %s3971_s23 = smov 0  }
   0x2   :  { %6126 = sst [smem:[#allocation111_spill]] %s6019_s1  ;;  %s3973_s24 = smov 0  }
   0x3   :  { %6127 = sst [smem:[#allocation112_spill]] %s6020_s2  ;;  %s3975_s25 = smov 0  }
   0x4   :  { %6128 = sst [smem:[#allocation113_spill]] %s6021_s3 }
   0x5   :  { %6129 = sst [smem:[#allocation114_spill]] %s6022_s4 }
   0x6   :  { %6130 = sst [smem:[#allocation115_spill]] %s6023_s5 }
   0x7   :  { %6131 = sst [smem:[#allocation116_spill]] %s6024_s6 }
   0x8 LB: > { %6132 = sst [smem:[#allocation3_spill]] %s3834_s23  ;;  %s31_s26 = sadd.s32 1, %s3834_s23  ;;  %s3842_s25 = sphi %s3975_s25, %s22_s25   ;;  %s3838_s24 = sphi %s3973_s24, %s6388_s24   ;;  %s3834_s23 = sphi %s3971_s23, %s6387_s23   ;;  %s3830_s22 = sphi %s3969_s22, %s6386_s22   ;;  %s3826_s21 = sphi %s3967_s21, %s6385_s21  }
   0x9   : > { %6133 = sst [smem:[#allocation4_spill]] %s3838_s24  ;;  %s34_s27 = sadd.s32 1, %s3838_s24 }
   0xa   : > { %6134 = sst [smem:[#allocation5_spill]] %s3842_s25  ;;  %p32_p0 = scmp.ge.s32.totalorder %s31_s26, 2 }
   0xb   : > { %p3481_p1 = scmp.ge.s32.totalorder %s3842_s25, 1  ;;  %p473_p2 = scmp.lt.s32.totalorder %s3842_s25, 5 }
   0xc   : > { %s6390_s26 = smov (%p32_p0, %s31_s26), 0  ;;  %s6392_s27 = smov (!%p32_p0, %s34_s27), %s3838_s24 }
   0xd   : > { %6135 = sst [smem:[#allocation6_spill]] %s6390_s26  ;;  %p474_p3 = pnand %p3481_p1, %p473_p2 }
   0xe   : > { %p36_p4 = scmp.ge.s32.totalorder %s6392_s27, 2 }
   0xf   : > { %477 = sbr.rel (%p474_p3) target bundleno = 2371 (0x943), region = 68 }
  0x10   : > { %s6394_s27 = smov (%p36_p4, %s6392_s27), 0 }
  0x11   : > { %6136 = sst [smem:[#allocation7_spill]] %s6394_s27 }
  0x16   : > { %p564_p5 = scmp.lt.s32.totalorder %s3830_s22, 1  ;;  %p569_p6 = scmp.lt.s32.totalorder %s3826_s21, 1 }
  0x17   : > { %s6137_s1 = sld [smem:[#allocation111_spill]]  ;;  %s6138_s3 = sld [smem:[#allocation113_spill]] }
  0x18   : > { %s6396_s22 = smov (!%p564_p5, %s3830_s22), 1  ;;  %s6139_s2 = sld [smem:[#allocation112_spill]] }
  0x19   : > { %s570_s28 = scalar_select %p569_p6, %s3826_s21, 1 }
  0x1a   : > { %s3611_s29 = smul.u32 24, %s6396_s22  ;;  %s6140_s4 = sld [smem:[#allocation114_spill]] }
  0x1b   : > { %s3612_s30 = smul.u32 24, %s570_s28  ;;  %s3521_s13 = sshll.u32 %s570_s28, 4 }
  0x1c   : > { %s6141_s5 = sld [smem:[#allocation115_spill]]  ;;  %s6142_s6 = sld [smem:[#allocation116_spill]] }
  0x1d   : > { %s568_s16 = scalar_lea.vmem %s6137_s1, %s3611_s29  ;;  %s4007_s19 = scalar_lea.vmem %s6138_s3, %s3521_s13 }
  0x1e   : > { %s4012_s26 = scalar_lea.vmem %s6139_s2, %s3612_s30  ;;  %s3525_s18 = sshll.u32 %s570_s28, 5 }
  0x1f   : > { %s3500_s3 = sshll.u32 %s570_s28, 2  ;;  %s4032_s20 = scalar_lea.vmem %s6025_s7, %s3525_s18 }
  0x20   : > { %s4017_s22 = scalar_lea.vmem %s6140_s4, %s3521_s13  ;;  %s4037_s2 = scalar_lea.vmem %s6026_s8, %s3525_s18 }
  0x21   : > { %s4042_s4 = scalar_lea.vmem %s6027_s9, %s3525_s18  ;;  %s4047_s15 = scalar_lea.vmem %s6028_s10, %s3525_s18 }
  0x22   : > { %s4022_s14 = scalar_lea.vmem %s6141_s5, %s3521_s13  ;;  %s4027_s17 = scalar_lea.vmem %s6142_s6, %s3521_s13 }
  0x23   : > { %s4052_s27 = scalar_lea.vmem %s6029_s11, %s3500_s3  ;;  %s4057_s23 = scalar_lea.vmem %s6030_s12, %s3611_s29 }
  0x24   : > { %p3502_p7 = scmp.ne.s32.totalorder %s3826_s21, 0 }
  0x25   : > { %v627_v0 = vld [vmem:[%s568_s16] sm:$0xff] (!%p3502_p7)  ;;  %v628_v1 = vld [vmem:[%s568_s16 + $0x8] sm:$0xff] (!%p3502_p7)  ;;  %v629_v2 = vld [vmem:[%s568_s16 + $0x10] sm:$0xff] (!%p3502_p7)  ;;  %vm632_vm0 = vcmask (!%p3502_p7), 523264   ;;  %vm634_vm1 = vcmask (!%p3502_p7), 490496   ;;  %v3844_v3 = vmov (!%p3502_p7), 0.0  }
  0x26   : > { %626 = sbr.rel (%p3502_p7) target bundleno = 45 (0x2d), region = 72  ;;  %630 = vst [vmem:[%s4057_s23] sm:$0xff] (!%p3502_p7), %v627_v0  ;;  %631 = vst [vmem:[%s4057_s23 + $0x8] sm:$0xff] (!%p3502_p7), %v628_v1  ;;  %vm637_vm2 = vcmask (!%p3502_p7), 1048544   ;;  %vm639_vm3 = vcmask (!%p3502_p7), 457728  }
  0x27   : > { %633 = vst.msk [vmem:[%s4057_s23 + $0x10] sm:$0xff] (!%p3502_p7), %vm632_vm0, %v629_v2 }
  0x28   : > { %635 = vst.msk [vmem:[#allocation2] sm:$0xff] (!%p3502_p7), %vm634_vm1, %v3844_v3  ;;  %636 = vst.msk [vmem:[#allocation2 + $0x20] sm:$0xff] (!%p3502_p7), %vm634_vm1, %v3844_v3 }
  0x29   : > { %638 = vst.msk [vmem:[#allocation2 + $0x10] sm:$0xff] (!%p3502_p7), %vm637_vm2, %v3844_v3  ;;  %641 = vst.msk [vmem:[#allocation2 + $0x30] sm:$0xff] (!%p3502_p7), %vm637_vm2, %v3844_v3 }
  0x2a   : > { %640 = vst.msk [vmem:[#allocation2 + $0x18] sm:$0xff] (!%p3502_p7), %vm639_vm3, %v3844_v3  ;;  %642 = vst.msk [vmem:[#allocation2 + $0x38] sm:$0xff] (!%p3502_p7), %vm639_vm3, %v3844_v3 }
  0x2d PF: > { %v645_v4 = vld [vmem:[%s4057_s23 + $0x8] sm:$0xff]  ;;  %v644_v6 = vld [vmem:[%s4057_s23] sm:$0xff]  ;;  %v3845_v7 = vmov 1   ;;  %vm650_vm4 = vcmask 64512   ;;  %v6034_v10 = vmov 0.0   ;;  %vm3847_vm5 = vmmov 0  }
  0x2e   : > { %v4065_v5 = vld [vmem:[%s4022_s14 + $0x8] sm:$0xff]  ;;  %3711 = vset.pattern.permute.xlu1 %v3845_v7  ;;  %660 = vmatprep.subr.mxu0 %v645_v4  ;;  %v647_v8 = vld [vmem:[%s4012_s26] sm:$0xff]  ;;  %v646_v9 = vld [vmem:[%s4057_s23 + $0x10] sm:$0xff]  ;;  %v3848_v13 = vmov 2   ;;  %v6040_v14 = vmov 7   ;;  %v3850_v16 = vmov 3  }
  0x2f   : > { %919 = vperm.xlu1 %3711, %v4065_v5   ;;  %661 = vmatpush1.msra.mxu0 %v644_v6  ;;  %v4076_v11 = vld [vmem:[%s4022_s14] sm:$0xff]  ;;  %v648_v12 = vld [vmem:[%s4012_s26 + $0x8] sm:$0xff]  ;;  %v649_v15 = vld [vmem:[%s4012_s26 + $0x10] sm:$0xf]  ;;  %v6038_v17 = vmov 8   ;;  %v3852_v18 = vmov 10  }
  0x30   : > { %724 = vmatprep.mubr.f32.mxu0 %v6034_v10  ;;  %3550 = vmatprep.subr.mxu1 %v6034_v10  ;;  %v3853_v19 = vmov 4   ;;  %v3854_v20 = vmov 11   ;;  %v3855_v21 = vmov 5   ;;  %v3856_v22 = vmov 13   ;;  %v4131_v33 = vld [vmem:[%s4007_s19 + $0x8] sm:$0xff]  ;;  %v4139_v34 = vld [vmem:[%s4007_s19] sm:$0xff] }
  0x31   : > { %3503 = vmatmul.mubr.msk.f32.vlgmr.msra.gmra.mrb[0].mxu0 %vm650_vm4, %v647_v8  ;;  %3551 = vmatpush3.msra.mxu1 %v646_v9  ;;  %v6042_v23 = vmov 6   ;;  %v3858_v24 = vmov 14   ;;  %v3859_v25 = vmov 16   ;;  %v3860_v26 = vmov 17   ;;  %v4209_v58 = vld [vmem:[#allocation2 + $0x18] sm:$0xff]  ;;  %s3872_s3 = smov 68  }
  0x32   : > { %730 = vmatprep.mubr.f32.mxu0 %v6034_v10  ;;  %3552 = vmatprep.mubr.msk.f32.mxu1 %vm3847_vm5, %v6034_v10  ;;  %v3861_v27 = vmov 19   ;;  %v3862_v28 = vmov 9   ;;  %v3863_v29 = vmov 20   ;;  %v3864_v30 = vmov 22   ;;  %v4219_v63 = vld [vmem:[#allocation2 + $0x38] sm:$0xff]  ;;  %s3873_s5 = smov 60  }
  0x33   : > { %3712 = vset.pattern.permute.xlu1 %v3848_v13  ;;  %3553 = vmatmul.mubr.msk.f32.vlgmr.msra.gmra.mrb[0].mxu1 %vm650_vm4, %v647_v8  ;;  %v3865_v31 = vmov 23   ;;  %v3866_v32 = vmov 12   ;;  %v3867_v35 = vmov 15   ;;  %v3868_v36 = vmov 18   ;;  %s3874_s6 = smov 127   ;;  %s3875_s21 = smov 126  }
  0x34   : > { %964 = vperm.xlu1 %3712, %v4076_v11   ;;  %3555 = vmatprep.mubr.msk.f32.mxu1 %vm3847_vm5, %v6034_v10  ;;  %v3869_v37 = vmov 21   ;;  %v3870_v42 = vmov 24   ;;  %v6036_v45 = vmov 0   ;;  %vm6123_vm6 = vcmask 1043456   ;;  %s3876_s26 = smov 125   ;;  %s3877_s29 = smov 124  }
  0x35   : > { %3504 = vmatmul.mubr.msk.f32.gmra.mrb[2].mxu0 %vm650_vm4, %v648_v12  ;;  %3717 = vset.pattern.permute.xlu0 %v6040_v14  ;;  %vm880_vm7 = vcmask 1048032   ;;  %vm869_vm8 = vcmask 490496   ;;  %vm883_vm9 = vcmask 1014784   ;;  %s3878_s16 = smov 108   ;;  %s3879_s18 = smov 107   ;;  %vm946_vm10 = vcmask 1039360  }
  0x36   : > { %736 = vmatprep.mubr.f32.mxu0 %v6034_v10  ;;  %1224 = vperm.xlu0 %3717, %v4076_v11   ;;  %s3880_s24 = smov 106   ;;  %s3881_s0 = smov 105   ;;  %vm995_vm11 = vcmask 1031168   ;;  %vm1044_vm12 = vcmask 1022976   ;;  %vm1141_vm13 = vcmask 883712   ;;  %vm1190_vm14 = vcmask 875520  }
  0x37   : > { %3556 = vmatmul.mubr.msk.f32.gmra.mrb[2].mxu1 %vm650_vm4, %v648_v12  ;;  %s3882_s25 = smov 104   ;;  %s3883_s1 = smov 88   ;;  %vm1255_vm15 = vcmask 867328   ;;  %vm1352_vm0 = vcmask 859136   ;;  %vm1449_vm1 = vcmask 850944   ;;  %vm1498_vm2 = vcmask 719872  }
  0x38   : > { %3713 = vset.pattern.permute.xlu1 %v3850_v16  ;;  %3558 = vmatprep.mubr.msk.f32.mxu1 %vm3847_vm5, %v6034_v10  ;;  %s3884_s13 = smov 87   ;;  %s3885_s28 = smov 86   ;;  %vm1547_vm3 = vcmask 711680  }
  0x39   : > { %3505 = vmatmul.mubr.msk.f32.gmra.mrb[4].mxu0 %vm650_vm4, %v649_v15  ;;  %1013 = vperm.xlu1 %3713, %v4076_v11   ;;  %s6056_s30 = smov 85  }
  0x3a   : > { %3720 = vset.pattern.permute.xlu0 %v6038_v17 }
  0x3b   : > { %3559 = vmatmul.mubr.msk.f32.gmra.mrb[4].mxu1 %vm650_vm4, %v649_v15  ;;  %1325 = vperm.xlu0 %3720, %v4065_v5   ;;  %vm1644_vm4 = vcmask 703488  }
  0x3d   : > { %1017 = vperm.xlu1 %3713, %v4065_v5  }
  0x3f   : > { %3722 = vset.pattern.permute.xlu0 %v3852_v18 }
  0x40   : > { %1467 = vperm.xlu0 %3722, %v4076_v11  }
  0x41   : > { %3714 = vset.pattern.permute.xlu1 %v3853_v19 }
  0x42   : > { %1066 = vperm.xlu1 %3714, %v4065_v5  }
  0x44   : > { %3725 = vset.pattern.permute.xlu0 %v3854_v20 }
  0x45   : > { %1520 = vperm.xlu0 %3725, %v4065_v5  }
  0x46   : > { %3715 = vset.pattern.permute.xlu1 %v3855_v21 }
  0x47   : > { %1110 = vperm.xlu1 %3715, %v4076_v11  }
  0x49   : > { %3727 = vset.pattern.permute.xlu0 %v3856_v22 }
  0x4a   : > { %1710 = vperm.xlu0 %3727, %v4076_v11  }
  0x4b   : > { %3716 = vset.pattern.permute.xlu1 %v6042_v23 }
  0x4c   : > { %1159 = vperm.xlu1 %3716, %v4076_v11  }
  0x4e   : > { %3730 = vset.pattern.permute.xlu0 %v3858_v24 }
  0x4f   : > { %1811 = vperm.xlu0 %3730, %v4065_v5  }
  0x50   : > { %1163 = vperm.xlu1 %3716, %v4065_v5  }
  0x53   : > { %3732 = vset.pattern.permute.xlu0 %v3859_v25 }
  0x54   : > { %3718 = vset.pattern.permute.xlu1 %v6040_v14  ;;  %1923 = vperm.xlu0 %3732, %v4076_v11  }
  0x55   : > { %1228 = vperm.xlu1 %3718, %v4065_v5  }
  0x58   : > { %3735 = vset.pattern.permute.xlu0 %v3860_v26 }
  0x59   : > { %3719 = vset.pattern.permute.xlu1 %v6038_v17  ;;  %2044 = vperm.xlu0 %3735, %v4065_v5  }
  0x5a   : > { %1321 = vperm.xlu1 %3719, %v4076_v11  }
  0x5d   : > { %3737 = vset.pattern.permute.xlu0 %v3861_v27 }
  0x5e   : > { %3721 = vset.pattern.permute.xlu1 %v3862_v28  ;;  %2274 = vperm.xlu0 %3737, %v4076_v11  }
  0x5f   : > { %1418 = vperm.xlu1 %3721, %v4076_v11  }
  0x62   : > { %3740 = vset.pattern.permute.xlu0 %v3863_v29 }
  0x63   : > { %1422 = vperm.xlu1 %3721, %v4065_v5   ;;  %2337 = vperm.xlu0 %3740, %v4065_v5  }
  0x67   : > { %3723 = vset.pattern.permute.xlu1 %v3852_v18  ;;  %3742 = vset.pattern.permute.xlu0 %v3864_v30 }
  0x68   : > { %1471 = vperm.xlu1 %3723, %v4065_v5   ;;  %2451 = vperm.xlu0 %3742, %v4076_v11  }
  0x6c   : > { %3724 = vset.pattern.permute.xlu1 %v3854_v20  ;;  %3745 = vset.pattern.permute.xlu0 %v3865_v31 }
  0x6d   : > { %1516 = vperm.xlu1 %3724, %v4076_v11   ;;  %2514 = vperm.xlu0 %3745, %v4065_v5  }
  0x71   : > { %3726 = vset.pattern.permute.xlu1 %v3866_v32  ;;  %3746 = vset.pattern.permute.xlu0 %v3845_v7 }
  0x72   : > { %1613 = vperm.xlu1 %3726, %v4076_v11   ;;  %915 = vperm.xlu0 %3746, %v4076_v11  }
  0x76   : > { %1617 = vperm.xlu1 %3726, %v4065_v5   ;;  %1277 = vperm.xlu0 %3746, %v4131_v33  }
  0x7a   : > { %3728 = vset.pattern.permute.xlu1 %v3856_v22  ;;  %3750 = vset.pattern.permute.xlu0 %v3848_v13 }
  0x7b   : > { %1714 = vperm.xlu1 %3728, %v4065_v5   ;;  %968 = vperm.xlu0 %3750, %v4065_v5  }
  0x7f   : > { %3729 = vset.pattern.permute.xlu1 %v3858_v24  ;;  %1370 = vperm.xlu0 %3750, %v4139_v34  }
  0x80   : > { %1807 = vperm.xlu1 %3729, %v4076_v11  }
  0x83   : > { %3753 = vset.pattern.permute.xlu0 %v3850_v16 }
  0x84   : > { %3731 = vset.pattern.permute.xlu1 %v3867_v35  ;;  %1569 = vperm.xlu0 %3753, %v4131_v33  }
  0x85   : > { %1864 = vperm.xlu1 %3731, %v4076_v11  }
  0x88   : > { %3754 = vset.pattern.permute.xlu0 %v3853_v19 }
  0x89   : > { %1868 = vperm.xlu1 %3731, %v4065_v5   ;;  %1062 = vperm.xlu0 %3754, %v4076_v11  }
  0x8d   : > { %3733 = vset.pattern.permute.xlu1 %v3859_v25  ;;  %1662 = vperm.xlu0 %3754, %v4139_v34  }
  0x8e   : > { %1927 = vperm.xlu1 %3733, %v4065_v5  }
  0x91   : > { %3755 = vset.pattern.permute.xlu0 %v3855_v21 }
  0x92   : > { %3734 = vset.pattern.permute.xlu1 %v3860_v26  ;;  %1114 = vperm.xlu0 %3755, %v4065_v5  }
  0x93   : > { %2040 = vperm.xlu1 %3734, %v4076_v11  }
  0x97   : > { %3736 = vset.pattern.permute.xlu1 %v3868_v36 }
  0x98   : > { %2157 = vperm.xlu1 %3736, %v4076_v11  }
  0x9c   : > { %2161 = vperm.xlu1 %3736, %v4065_v5  }
  0xa0   : > { %3738 = vset.pattern.permute.xlu1 %v3861_v27 }
  0xa1   : > { %2278 = vperm.xlu1 %3738, %v4065_v5  }
  0xa5   : > { %3739 = vset.pattern.permute.xlu1 %v3863_v29 }
  0xa6   : > { %2333 = vperm.xlu1 %3739, %v4076_v11  }
  0xaa   : > { %3741 = vset.pattern.permute.xlu1 %v3869_v37 }
  0xab   : > { %2392 = vperm.xlu1 %3741, %v4076_v11  }
  0xae   : > { %v4159_v38 = vpop.permute.xlu1 %919 }
  0xaf   : > { %2396 = vperm.xlu1 %3741, %v4065_v5  }
  0xb3   : > { %v4162_v39 = vpop.permute.xlu1 %964  ;;  %3743 = vset.pattern.permute.xlu1 %v3864_v30 }
  0xb4   : > { %2455 = vperm.xlu1 %3743, %v4065_v5  }
  0xb5   : > { %v4232_v25 = vpop.permute.xlu0 %1224 }
  0xb8   : > { %v4165_v40 = vpop.permute.xlu1 %1013  ;;  %3744 = vset.pattern.permute.xlu1 %v3865_v31 }
  0xb9   : > { %2510 = vperm.xlu1 %3744, %v4076_v11  }
  0xbc   : > { %v4168_v41 = vpop.permute.xlu1 %1017 }
  0xbd   : > { %3747 = vset.pattern.permute.xlu1 %v3870_v42 }
  0xbe   : > { %2569 = vperm.xlu1 %3747, %v4076_v11  }
  0xc1   : > { %v4171_v43 = vpop.permute.xlu1 %1066 }
  0xc2   : > { %2573 = vperm.xlu1 %3747, %v4065_v5  }
  0xc6   : > { %v4174_v44 = vpop.permute.xlu1 %1110  ;;  %3748 = vset.pattern.permute.xlu1 %v6036_v45 }
  0xc7   : > { %905 = vperm.xlu1 %3748, %v4065_v5  }
  0xcb   : > { %v4178_v46 = vpop.permute.xlu1 %1159  ;;  %3749 = vset.pattern.permute.xlu1 %v3845_v7 }
  0xcc   : > { %1273 = vperm.xlu1 %3749, %v4139_v34  }
  0xcf   : > { %v4182_v47 = vpop.permute.xlu1 %1163 }
  0xd0   : > { %3751 = vset.pattern.permute.xlu1 %v3848_v13 }
  0xd1   : > { %1374 = vperm.xlu1 %3751, %v4131_v33  }
  0xd4   : > { %v4186_v48 = vpop.permute.xlu1 %1228 }
  0xd5   : > { %3752 = vset.pattern.permute.xlu1 %v3850_v16 }
  0xd6   : > { %1565 = vperm.xlu1 %3752, %v4139_v34  }
  0xd9   : > { %v4190_v49 = vpop.permute.xlu1 %1321 }
  0xda   : > { %3756 = vset.pattern.permute.xlu1 %v3853_v19 }
  0xde   : > { %v4193_v50 = vpop.permute.xlu1 %1418 }
  0xe2   : > { %v4195_v51 = vpop.permute.xlu1 %1422 }
  0xe7   : > { %v4197_v52 = vpop.permute.xlu1 %1471 }
  0xec   : > { %v4199_v53 = vpop.permute.xlu1 %1516 }
  0xf1   : > { %v4201_v54 = vpop.permute.xlu1 %1613 }
  0xf5   : > { %v4203_v55 = vpop.permute.xlu1 %1617 }
  0xfa   : > { %v4205_v56 = vpop.permute.xlu1 %1714 }
  0xff   : > { %v4207_v57 = vpop.permute.xlu1 %1807 }
 0x104   : > { %v4211_v59 = vpop.f32.mrb[0].mxu0  ;;  %v4213_v60 = vpop.permute.xlu1 %1864 }
 0x105   : > { %6143 = vst [vmem:[#allocation8_spill] sm:$0xff] %v4211_v59  ;;  %v4215_v61 = vpop.f32.mrb[1].mxu0  ;;  %v1874_v62 = vmul.f32 %v4213_v60, %v4209_v58  ;;  %v823_v1 = vmax.f32 %v4211_v59, 0.0 }
 0x106   : > { %6144 = vst [vmem:[#allocation9_spill] sm:$0xff] %v4215_v61  ;;  %v4221_v0 = vpop.f32.mrb[0].mxu1  ;;  %v824_v4 = vmax.f32 %v4215_v61, 0.0 }
 0x107   : > { %6145 = vst [vmem:[#allocation10_spill] sm:$0xff] %v4221_v0  ;;  %1893 = vrot.lane.b32.xlu1 %v1874_v62, %s3872_s3  ;;  %v825_v2 = vmax.f32 %v4221_v0, 0.0  ;;  %v3554_v3 = vpop.f32.mrb[1].mxu1  ;;  %v842_v13 = vrot.slane %v823_v1, 4 }
 0x108   : > { %v732_v5 = vpop.f32.mrb[2].mxu0  ;;  %v4227_v6 = vpop.permute.xlu1 %1868  ;;  %v845_v20 = vrot.slane %v824_v4, 4 }
 0x109   : > { %v826_v7 = vmax.f32 %v732_v5, 0.0  ;;  %v734_v8 = vpop.f32.mrb[3].mxu0  ;;  %v1878_v9 = vmul.f32 %v4227_v6, %v4219_v63  ;;  %v848_v16 = vrot.slane %v825_v2, 4  ;;  %v4240_v4 = vpop.permute.xlu0 %1325 }
 0x10a   : > { %v827_v11 = vmax.f32 %v734_v8, 0.0  ;;  %v814_v12 = vpop.f32.mrb[2].mxu1 }
 0x10b   : > { %v843_v15 = vrot.slane %v826_v7, 4  ;;  %1901 = vrot.lane.b32.xlu1 %v1878_v9, %s3872_s3  ;;  %v828_v18 = vmax.f32 %v814_v12, 0.0  ;;  %v3557_v19 = vpop.f32.mrb[3].mxu1 }
 0x10c   : > { %v846_v22 = vrot.slane %v827_v11, 4  ;;  %v738_v24 = vpop.f32.mrb[4].mxu0 }
 0x10d   : > { %v829_v26 = vmax.f32 %v738_v24, 0.0  ;;  %v740_v27 = vpop.f32.mrb[5].mxu0  ;;  %v849_v28 = vrot.slane %v828_v18, 4  ;;  %v844_v29 = vsel %vm6123_vm6, %v842_v13, %v843_v15  ;;  %v4244_v7 = vpop.permute.xlu0 %1467 }
 0x10e   : > { %v830_v30 = vmax.f32 %v740_v27, 0.0  ;;  %857 = vrot.lane.b32.xlu0 %v844_v29, %s3873_s5  ;;  %v847_v31 = vsel %vm6123_vm6, %v845_v20, %v846_v22  ;;  %v819_v32 = vpop.f32.mrb[4].mxu1  ;;  %v4248_v9 = vpop.permute.xlu1 %1927 }
 0x10f   : > { %v851_v35 = vrot.slane %v829_v26, 4  ;;  %1666 = vperm.xlu1 %3756, %v4131_v33   ;;  %v850_v36 = vsel %vm6123_vm6, %v848_v16, %v849_v28  ;;  %v831_v37 = vmax.f32 %v819_v32, 0.0  ;;  %v3560_v42 = vpop.f32.mrb[5].mxu1 }
 0x110   : > { %v853_v62 = vrot.slane %v830_v30, 4 }
 0x111   : > { %v852_v1 = vsel %vm6123_vm6, %v843_v15, %v851_v35  ;;  %v855_v2 = vrot.slane %v831_v37, 4  ;;  %v4246_v8 = vpop.permute.xlu0 %1520 }
 0x112   : > { %859 = vrot.lane.b32.xlu0 %v847_v31, %s3873_s5  ;;  %v854_v3 = vsel %vm6123_vm6, %v846_v22, %v853_v62  ;;  %v4252_v12 = vpop.permute.xlu1 %2040 }
 0x113   : > { %861 = vrot.lane.b32.xlu1 %v850_v36, %s3873_s5  ;;  %v856_v5 = vsel %vm6123_vm6, %v849_v28, %v855_v2  ;;  %vm2490_vm6 = vcmask 375808  }
 0x114   : > { %3757 = vset.pattern.permute.xlu1 %v3855_v21 }
 0x115   : > { %v4250_v11 = vpop.permute.xlu0 %1710 }
 0x116   : > { %865 = vrot.lane.b32.xlu0 %v854_v3, %s3873_s5 }
 0x117   : > { %863 = vrot.lane.b32.xlu1 %v852_v1, %s3873_s5  ;;  %v4256_v15 = vpop.permute.xlu1 %2157 }
 0x119   : > { %v4254_v13 = vpop.permute.xlu0 %1811 }
 0x11b   : > { %867 = vrot.lane.b32.xlu1 %v856_v5, %s3873_s5  ;;  %v4260_v21 = vpop.permute.xlu1 %2161  ;;  %s3887_s5 = smov 84  }
 0x11d   : > { %v4258_v16 = vpop.permute.xlu0 %1923 }
 0x120   : > { %v4264_v19 = vpop.permute.xlu1 %2278 }
 0x121   : > { %v4262_v18 = vpop.permute.xlu0 %2044 }
 0x125   : > { %v4266_v20 = vpop.permute.xlu0 %2274  ;;  %v4268_v22 = vpop.permute.xlu1 %2333 }
 0x129   : > { %v4270_v24 = vpop.permute.xlu0 %2337 }
 0x12a   : > { %v4272_v26 = vpop.permute.xlu1 %2392 }
 0x12d   : > { %v4274_v27 = vpop.permute.xlu0 %2451 }
 0x12e   : > { %v4276_v28 = vpop.permute.xlu1 %2396 }
 0x131   : > { %v4278_v29 = vpop.permute.xlu0 %2514 }
 0x133   : > { %v4280_v30 = vpop.permute.xlu1 %2455 }
 0x135   : > { %v4282_v31 = vpop.permute.xlu0 %915 }
 0x138   : > { %v4284_v32 = vpop.permute.xlu1 %2510 }
 0x139   : > { %v4286_v35 = vpop.permute.xlu0 %1277 }
 0x13a   : > { %6146 = vst [vmem:[#allocation11_spill] sm:$0xff] %v4286_v35 }
 0x13d   : > { %v4288_v36 = vpop.permute.xlu1 %2569  ;;  %v4290_v37 = vpop.permute.xlu0 %968 }
 0x141   : > { %v4292_v42 = vpop.permute.xlu1 %2573  ;;  %v4294_v62 = vpop.permute.xlu0 %1370 }
 0x142   : > { %6147 = vst [vmem:[#allocation12_spill] sm:$0xff] %v4294_v62 }
 0x145   : > { %v4296_v1 = vpop.permute.xlu0 %1569 }
 0x146   : > { %6148 = vst [vmem:[#allocation13_spill] sm:$0xff] %v4296_v1  ;;  %v4298_v2 = vpop.permute.xlu1 %905 }
 0x147   : > { %6149 = vst [vmem:[#allocation14_spill] sm:$0xff] %v4298_v2 }
 0x149   : > { %v4300_v3 = vpop.permute.xlu0 %1062 }
 0x14b   : > { %v4302_v5 = vpop.permute.xlu1 %1273 }
 0x14c   : > { %6150 = vst [vmem:[#allocation15_spill] sm:$0xff] %v4302_v5 }
 0x14d   : > { %v4304_v10 = vpop.permute.xlu0 %1662 }
 0x14e   : > { %6151 = vst [vmem:[#allocation16_spill] sm:$0xff] %v4304_v10 }
 0x150   : > { %v4306_v45 = vpop.permute.xlu1 %1374 }
 0x151   : > { %6152 = vst [vmem:[#allocation17_spill] sm:$0xff] %v4306_v45  ;;  %v4308_v17 = vpop.permute.xlu0 %1114 }
 0x155   : > { %v4310_v14 = vpop.permute.xlu1 %1565 }
 0x156   : > { %6153 = vst [vmem:[#allocation18_spill] sm:$0xff] %v4310_v14 }
 0x179   : > { %v4313_v61 = vpop.permute.xlu1 %1893 }
 0x17a   : > { %6154 = vst [vmem:[#allocation19_spill] sm:$0xff] %v4313_v61 }
 0x17d   : > { %v4323_v1 = vpop.permute.xlu1 %1901 }
 0x17e   : > { %6155 = vst [vmem:[#allocation20_spill] sm:$0xff] %v4323_v1 }
 0x180   : > { %v858_v23 = vpop.permute.xlu0 %857 }
 0x181   : > { %881 = vst.msk [vmem:[#allocation2] sm:$0xff] %vm880_vm7, %v858_v23 }
 0x184   : > { %v860_v59 = vpop.permute.xlu0 %859 }
 0x185   : > { %v4316_v0 = vsel %vm869_vm8, %v858_v23, %v860_v59 }
 0x186   : > { %882 = vst [vmem:[#allocation2 + $0x8] sm:$0xff] %v4316_v0  ;;  %v923_v2 = vmul.f32 %v4282_v31, %v4316_v0  ;;  %v972_v61 = vmul.f32 %v4162_v39, %v4316_v0  ;;  %v1021_v1 = vmul.f32 %v4165_v40, %v4316_v0  ;;  %v1118_v35 = vmul.f32 %v4174_v44, %v4316_v0 }
 0x188   : > { %v4321_v10 = vld [vmem:[#allocation2] sm:$0xff]  ;;  %936 = vrot.lane.b32.xlu0 %v923_v2, %s3874_s6 }
 0x189   : > { %v922_v14 = vmul.f32 %v4282_v31, %v4321_v10  ;;  %v971_v23 = vmul.f32 %v4162_v39, %v4321_v10 }
 0x18b   : > { %934 = vrot.lane.b32.xlu1 %v922_v14, %s3874_s6  ;;  %v1020_v14 = vmul.f32 %v4165_v40, %v4321_v10 }
 0x18c   : > { %985 = vrot.lane.b32.xlu0 %v972_v61, %s3875_s21  ;;  %v1070_v61 = vmul.f32 %v4300_v3, %v4316_v0 }
 0x18e   : > { %v4334_v45 = vpop.permute.xlu1 %1666 }
 0x18f   : > { %6156 = vst [vmem:[#allocation21_spill] sm:$0xff] %v4334_v45  ;;  %983 = vrot.lane.b32.xlu1 %v971_v23, %s3875_s21  ;;  %v866_v23 = vpop.permute.xlu0 %865 }
 0x190   : > { %1034 = vrot.lane.b32.xlu0 %v1021_v1, %s3876_s26  ;;  %v1069_v1 = vmul.f32 %v4300_v3, %v4321_v10 }
 0x192   : > { %v862_v2 = vpop.permute.xlu1 %861 }
 0x193   : > { %v871_v62 = vsel %vm869_vm8, %v860_v59, %v862_v2  ;;  %1032 = vrot.lane.b32.xlu1 %v1020_v14, %s3876_s26  ;;  %v1117_v59 = vmul.f32 %v4174_v44, %v4321_v10  ;;  %v1167_v14 = vmul.f32 %v4178_v46, %v4316_v0 }
 0x194   : > { %884 = vst.msk [vmem:[#allocation2 + $0x10] sm:$0xff] %vm883_vm9, %v871_v62  ;;  %1083 = vrot.lane.b32.xlu0 %v1070_v61, %s3877_s29  ;;  %v1231_v61 = vmul.f32 %v4232_v25, %v4321_v10 }
 0x196   : > { %v864_v45 = vpop.permute.xlu1 %863 }
 0x197   : > { %1081 = vrot.lane.b32.xlu1 %v1069_v1, %s3877_s29  ;;  %v4354_v5 = vsel %vm869_vm8, %v864_v45, %v866_v23  ;;  %885 = vst.msk [vmem:[#allocation2 + $0x20] sm:$0xff] %vm880_vm7, %v864_v45  ;;  %v1166_v45 = vmul.f32 %v4178_v46, %v4321_v10  ;;  %v1329_v1 = vmul.f32 %v4190_v49, %v4316_v0  ;;  %vm1838_vm7 = vcmask 687104  }
 0x198   : > { %886 = vst [vmem:[#allocation2 + $0x28] sm:$0xff] %v4354_v5  ;;  %1131 = vrot.lane.b32.xlu0 %v1118_v35, %s3878_s16  ;;  %v1232_v35 = vmul.f32 %v4232_v25, %v4316_v0 }
 0x19a   : > { %v868_v62 = vpop.permute.xlu1 %867 }
 0x19b   : > { %1129 = vrot.lane.b32.xlu1 %v1117_v59, %s3878_s16  ;;  %v873_v2 = vsel %vm869_vm8, %v866_v23, %v868_v62  ;;  %v1328_v23 = vmul.f32 %v4190_v49, %v4321_v10  ;;  %v1426_v59 = vmul.f32 %v4193_v50, %v4316_v0  ;;  %v1425_v62 = vmul.f32 %v4193_v50, %v4321_v10 }
 0x19c   : > { %887 = vst.msk [vmem:[#allocation2 + $0x30] sm:$0xff] %vm883_vm9, %v873_v2  ;;  %1180 = vrot.lane.b32.xlu0 %v1167_v14, %s3879_s18  ;;  %v1475_v14 = vmul.f32 %v4244_v7, %v4316_v0  ;;  %v1474_v2 = vmul.f32 %v4244_v7, %v4321_v10  ;;  %vm1741_vm8 = vcmask 695296  }
 0x19f   : > { %1178 = vrot.lane.b32.xlu1 %v1166_v45, %s3879_s18  ;;  %v1524_v45 = vmul.f32 %v4199_v53, %v4316_v0 }
 0x1a0   : > { %1245 = vrot.lane.b32.xlu0 %v1232_v35, %s3880_s24  ;;  %v1523_v35 = vmul.f32 %v4199_v53, %v4321_v10 }
 0x1a3   : > { %1243 = vrot.lane.b32.xlu1 %v1231_v61, %s3880_s24  ;;  %v1621_v61 = vmul.f32 %v4201_v54, %v4316_v0 }
 0x1a4   : > { %1342 = vrot.lane.b32.xlu0 %v1329_v1, %s3881_s0  ;;  %v4401_v1 = vld [vmem:[#allocation2 + $0x10] sm:$0xff] }
 0x1a7   : > { %1340 = vrot.lane.b32.xlu1 %v1328_v23, %s3881_s0  ;;  %v1620_v23 = vmul.f32 %v4201_v54, %v4321_v10 }
 0x1a8   : > { %1439 = vrot.lane.b32.xlu0 %v1426_v59, %s3882_s25  ;;  %v1719_v59 = vmul.f32 %v4250_v11, %v4401_v1 }
 0x1ab   : > { %1437 = vrot.lane.b32.xlu1 %v1425_v62, %s3882_s25  ;;  %v1717_v62 = vmul.f32 %v4250_v11, %v4321_v10 }
 0x1ac   : > { %1488 = vrot.lane.b32.xlu0 %v1475_v14, %s3883_s1  ;;  %v1815_v14 = vmul.f32 %v4207_v57, %v4316_v0 }
 0x1af   : > { %1486 = vrot.lane.b32.xlu1 %v1474_v2, %s3883_s1  ;;  %v1814_v2 = vmul.f32 %v4207_v57, %v4321_v10 }
 0x1b0   : > { %1537 = vrot.lane.b32.xlu0 %v1524_v45, %s3884_s13  ;;  %v1873_v45 = vmul.f32 %v4213_v60, %v4401_v1 }
 0x1b3   : > { %1535 = vrot.lane.b32.xlu1 %v1523_v35, %s3884_s13  ;;  %v1871_v35 = vmul.f32 %v4213_v60, %v4321_v10 }
 0x1b4   : > { %1634 = vrot.lane.b32.xlu0 %v1621_v61, %s3885_s28  ;;  %v1931_v61 = vmul.f32 %v4258_v16, %v4316_v0 }
 0x1b7   : > { %1632 = vrot.lane.b32.xlu1 %v1620_v23, %s3885_s28  ;;  %v4427_v23 = vld [vmem:[#allocation2 + $0x20] sm:$0xff] }
 0x1b8   : > { %1733 = vrot.lane.b32.xlu0 %v1719_v59, %s6056_s30  ;;  %v1930_v59 = vmul.f32 %v4258_v16, %v4321_v10 }
 0x1bb   : > { %1729 = vrot.lane.b32.xlu1 %v1717_v62, %s6056_s30  ;;  %s6058_s30 = smov 67   ;;  %v925_v62 = vmul.f32 %v4159_v38, %v4427_v23 }
 0x1bc   : > { %1828 = vrot.lane.b32.xlu0 %v1815_v14, %s3887_s5  ;;  %v924_v14 = vmul.f32 %v4282_v31, %v4401_v1  ;;  %v1022_v31 = vmul.f32 %v4165_v40, %v4401_v1  ;;  %v1119_v40 = vmul.f32 %v4174_v44, %v4401_v1  ;;  %v1233_v44 = vmul.f32 %v4232_v25, %v4401_v1 }
 0x1bd   : > { %v1427_v25 = vmul.f32 %v4193_v50, %v4401_v1  ;;  %v1525_v50 = vmul.f32 %v4199_v53, %v4401_v1  ;;  %v1718_v53 = vmul.f32 %v4250_v11, %v4316_v0 }
 0x1bf   : > { %1826 = vrot.lane.b32.xlu1 %v1814_v2, %s3887_s5  ;;  %v974_v2 = vmul.f32 %v4290_v37, %v4427_v23 }
 0x1c0   : > { %1891 = vrot.lane.b32.xlu0 %v1873_v45, %s3872_s3  ;;  %v973_v45 = vmul.f32 %v4162_v39, %v4401_v1  ;;  %v1071_v39 = vmul.f32 %v4300_v3, %v4401_v1  ;;  %v1168_v3 = vmul.f32 %v4178_v46, %v4401_v1  ;;  %v1330_v46 = vmul.f32 %v4190_v49, %v4401_v1 }
 0x1c1   : > { %v1476_v49 = vmul.f32 %v4244_v7, %v4401_v1  ;;  %v1622_v7 = vmul.f32 %v4201_v54, %v4401_v1 }
 0x1c3   : > { %1887 = vrot.lane.b32.xlu1 %v1871_v35, %s3872_s3  ;;  %v1023_v35 = vmul.f32 %v4168_v41, %v4427_v23 }
 0x1c4   : > { %1948 = vrot.lane.b32.xlu0 %v1931_v61, %s6058_s30  ;;  %v1072_v61 = vmul.f32 %v4171_v43, %v4427_v23 }
 0x1c7   : > { %1946 = vrot.lane.b32.xlu1 %v1930_v59, %s6058_s30  ;;  %v1120_v59 = vmul.f32 %v4308_v17, %v4427_v23  ;;  %s6157_s30 = smov 85  }
 0x1c8   : > { %940 = vrot.lane.b32.xlu0 %v925_v62, %s3874_s6  ;;  %v1169_v62 = vmul.f32 %v4182_v47, %v4427_v23 }
 0x1cb   : > { %938 = vrot.lane.b32.xlu1 %v924_v14, %s3874_s6  ;;  %v1234_v14 = vmul.f32 %v4186_v48, %v4427_v23 }
 0x1cc   : > { %989 = vrot.lane.b32.xlu0 %v974_v2, %s3875_s21  ;;  %v1331_v2 = vmul.f32 %v4240_v4, %v4427_v23 }
 0x1cf   : > { %987 = vrot.lane.b32.xlu1 %v973_v45, %s3875_s21  ;;  %v1428_v45 = vmul.f32 %v4195_v51, %v4427_v23 }
 0x1d0   : > { %1038 = vrot.lane.b32.xlu0 %v1023_v35, %s3876_s26  ;;  %v1477_v35 = vmul.f32 %v4197_v52, %v4427_v23 }
 0x1d3   : > { %1036 = vrot.lane.b32.xlu1 %v1022_v31, %s3876_s26  ;;  %v1526_v31 = vmul.f32 %v4246_v8, %v4427_v23 }
 0x1d4   : > { %1087 = vrot.lane.b32.xlu0 %v1072_v61, %s3877_s29  ;;  %v1623_v61 = vmul.f32 %v4203_v55, %v4427_v23 }
 0x1d7   : > { %1085 = vrot.lane.b32.xlu1 %v1071_v39, %s3877_s29  ;;  %v1817_v39 = vmul.f32 %v4254_v13, %v4427_v23 }
 0x1d8   : > { %1135 = vrot.lane.b32.xlu0 %v1120_v59, %s3878_s16 }
 0x1db   : > { %1133 = vrot.lane.b32.xlu1 %v1119_v40, %s3878_s16  ;;  %v1875_v40 = vmul.f32 %v4227_v6, %v4427_v23 }
 0x1dc   : > { %1184 = vrot.lane.b32.xlu0 %v1169_v62, %s3879_s18  ;;  %v4515_v62 = vld [vmem:[#allocation2 + $0x30] sm:$0xff] }
 0x1dd   : > { %v927_v11 = vmul.f32 %v4159_v38, %v4515_v62 }
 0x1df   : > { %1182 = vrot.lane.b32.xlu1 %v1168_v3, %s3879_s18  ;;  %v1816_v3 = vmul.f32 %v4207_v57, %v4401_v1 }
 0x1e0   : > { %1249 = vrot.lane.b32.xlu0 %v1234_v14, %s3880_s24 }
 0x1e3   : > { %1247 = vrot.lane.b32.xlu1 %v1233_v44, %s3880_s24 }
 0x1e4   : > { %1346 = vrot.lane.b32.xlu0 %v1331_v2, %s3881_s0  ;;  %v1872_v2 = vmul.f32 %v4213_v60, %v4316_v0 }
 0x1e7   : > { %1344 = vrot.lane.b32.xlu1 %v1330_v46, %s3881_s0 }
 0x1e8   : > { %1443 = vrot.lane.b32.xlu0 %v1428_v45, %s3882_s25  ;;  %v976_v45 = vmul.f32 %v4290_v37, %v4515_v62 }
 0x1eb   : > { %1441 = vrot.lane.b32.xlu1 %v1427_v25, %s3882_s25  ;;  %v1720_v25 = vmul.f32 %v4205_v56, %v4427_v23 }
 0x1ec   : > { %1492 = vrot.lane.b32.xlu0 %v1477_v35, %s3883_s1 }
 0x1ef   : > { %1490 = vrot.lane.b32.xlu1 %v1476_v49, %s3883_s1  ;;  %v1025_v49 = vmul.f32 %v4168_v41, %v4515_v62 }
 0x1f0   : > { %1541 = vrot.lane.b32.xlu0 %v1526_v31, %s3884_s13  ;;  %v926_v31 = vmul.f32 %v4159_v38, %v4354_v5 }
 0x1f3   : > { %1539 = vrot.lane.b32.xlu1 %v1525_v50, %s3884_s13 }
 0x1f4   : > { %1638 = vrot.lane.b32.xlu0 %v1623_v61, %s3885_s28  ;;  %v1074_v61 = vmul.f32 %v4171_v43, %v4515_v62 }
 0x1f7   : > { %1636 = vrot.lane.b32.xlu1 %v1622_v7, %s3885_s28 }
 0x1f8   : > { %1832 = vrot.lane.b32.xlu0 %v1817_v39, %s3887_s5  ;;  %v975_v39 = vmul.f32 %v4290_v37, %v4354_v5 }
 0x1fa   : > { %v4511_v59 = vpop.permute.xlu0 %936 }
 0x1fb   : > { %1731 = vrot.lane.b32.xlu1 %v1718_v53, %s6157_s30 }
 0x1fc   : > { %1895 = vrot.lane.b32.xlu0 %v1875_v40, %s3872_s3  ;;  %v1122_v40 = vmul.f32 %v4308_v17, %v4515_v62 }
 0x1fd   : > { %v4519_v54 = vpop.permute.xlu1 %934 }
 0x1fe   : > { %v4523_v14 = vpop.permute.xlu0 %985 }
 0x1ff   : > { %1830 = vrot.lane.b32.xlu1 %v1816_v3, %s3887_s5  ;;  %v1024_v3 = vmul.f32 %v4168_v41, %v4354_v5 }
 0x200   : > { %944 = vrot.lane.b32.xlu0 %v927_v11, %s3874_s6 }
 0x201   : > { %v4529_v44 = vpop.permute.xlu1 %983 }
 0x202   : > { %v4533_v46 = vpop.permute.xlu0 %1034 }
 0x203   : > { %1889 = vrot.lane.b32.xlu1 %v1872_v2, %s3872_s3  ;;  %v1171_v2 = vmul.f32 %v4182_v47, %v4515_v62 }
 0x204   : > { %993 = vrot.lane.b32.xlu0 %v976_v45, %s3875_s21  ;;  %v1073_v45 = vmul.f32 %v4171_v43, %v4354_v5 }
 0x205   : > { %v4539_v57 = vpop.permute.xlu1 %1032 }
 0x206   : > { %v4543_v35 = vpop.permute.xlu0 %1083 }
 0x207   : > { %1735 = vrot.lane.b32.xlu1 %v1720_v25, %s6157_s30 }
 0x208   : > { %1042 = vrot.lane.b32.xlu0 %v1025_v49, %s3876_s26  ;;  %v1236_v49 = vmul.f32 %v4186_v48, %v4515_v62 }
 0x209   : > { %v4549_v60 = vpop.permute.xlu1 %1081 }
 0x20a   : > { %v4553_v50 = vpop.permute.xlu0 %1131 }
 0x20b   : > { %942 = vrot.lane.b32.xlu1 %v926_v31, %s3874_s6  ;;  %v1121_v31 = vmul.f32 %v4308_v17, %v4354_v5 }
 0x20c   : > { %1091 = vrot.lane.b32.xlu0 %v1074_v61, %s3877_s29 }
 0x20d   : > { %v4559_v7 = vpop.permute.xlu1 %1129 }
 0x20e   : > { %v4563_v53 = vpop.permute.xlu0 %1180 }
 0x20f   : > { %991 = vrot.lane.b32.xlu1 %v975_v39, %s3875_s21  ;;  %v1333_v39 = vmul.f32 %v4240_v4, %v4515_v62 }
 0x210   : > { %1139 = vrot.lane.b32.xlu0 %v1122_v40, %s3878_s16  ;;  %v1170_v40 = vmul.f32 %v4182_v47, %v4354_v5 }
 0x211   : > { %v4569_v38 = vpop.permute.xlu1 %1178 }
 0x212   : > { %v4573_v11 = vpop.permute.xlu0 %1245 }
 0x213   : > { %1040 = vrot.lane.b32.xlu1 %v1024_v3, %s3876_s26  ;;  %s6169_s26 = smov 67  }
 0x214   : > { %1188 = vrot.lane.b32.xlu0 %v1171_v2, %s3879_s18  ;;  %v1430_v2 = vmul.f32 %v4195_v51, %v4515_v62 }
 0x215   : > { %v4579_v37 = vpop.permute.xlu1 %1243 }
 0x216   : > { %v4583_v25 = vpop.permute.xlu0 %1342 }
 0x217   : > { %1089 = vrot.lane.b32.xlu1 %v1073_v45, %s3877_s29  ;;  %v1235_v45 = vmul.f32 %v4186_v48, %v4354_v5  ;;  %s3890_s29 = smov 65  }
 0x218   : > { %1253 = vrot.lane.b32.xlu0 %v1236_v49, %s3880_s24 }
 0x219   : > { %v4589_v41 = vpop.permute.xlu1 %1340 }
 0x21a   : > { %v4593_v61 = vpop.permute.xlu0 %1439 }
 0x21b   : > { %1137 = vrot.lane.b32.xlu1 %v1121_v31, %s3878_s16  ;;  %v1479_v31 = vmul.f32 %v4197_v52, %v4515_v62 }
 0x21c   : > { %1350 = vrot.lane.b32.xlu0 %v1333_v39, %s3881_s0  ;;  %v1332_v39 = vmul.f32 %v4240_v4, %v4354_v5 }
 0x21d   : > { %v4599_v43 = vpop.permute.xlu1 %1437 }
 0x21e   : > { %v4603_v3 = vpop.permute.xlu0 %1488 }
 0x21f   : > { %1186 = vrot.lane.b32.xlu1 %v1170_v40, %s3879_s18 }
 0x220   : > { %1447 = vrot.lane.b32.xlu0 %v1430_v2, %s3882_s25  ;;  %v1528_v2 = vmul.f32 %v4246_v8, %v4515_v62 }
 0x221   : > { %v4609_v17 = vpop.permute.xlu1 %1486 }
 0x222   : > { %v4613_v49 = vpop.permute.xlu0 %1537 }
 0x223   : > { %6158 = vst [vmem:[#allocation22_spill] sm:$0xff] %v4613_v49  ;;  %1251 = vrot.lane.b32.xlu1 %v1235_v45, %s3880_s24  ;;  %v1429_v45 = vmul.f32 %v4195_v51, %v4354_v5 }
 0x224   : > { %1496 = vrot.lane.b32.xlu0 %v1479_v31, %s3883_s1 }
 0x225   : > { %v4619_v47 = vpop.permute.xlu1 %1535 }
 0x226   : > { %6159 = vst [vmem:[#allocation23_spill] sm:$0xff] %v4619_v47  ;;  %v4623_v40 = vpop.permute.xlu0 %1634  ;;  %v1625_v47 = vmul.f32 %v4203_v55, %v4515_v62 }
 0x227   : > { %6160 = vst [vmem:[#allocation24_spill] sm:$0xff] %v4623_v40  ;;  %1348 = vrot.lane.b32.xlu1 %v1332_v39, %s3881_s0  ;;  %v1478_v39 = vmul.f32 %v4197_v52, %v4354_v5  ;;  %v2051_v40 = vmul.f32 %v4262_v18, %v4427_v23  ;;  %s3891_s0 = smov 64  }
 0x228   : > { %1545 = vrot.lane.b32.xlu0 %v1528_v2, %s3884_s13 }
 0x229   : > { %v4629_v48 = vpop.permute.xlu1 %1632 }
 0x22a   : > { %6161 = vst [vmem:[#allocation25_spill] sm:$0xff] %v4629_v48  ;;  %v4633_v31 = vpop.permute.xlu0 %1733  ;;  %v1721_v48 = vmul.f32 %v4205_v56, %v4354_v5 }
 0x22b   : > { %6162 = vst [vmem:[#allocation26_spill] sm:$0xff] %v4633_v31  ;;  %1445 = vrot.lane.b32.xlu1 %v1429_v45, %s3882_s25  ;;  %v1527_v45 = vmul.f32 %v4246_v8, %v4354_v5  ;;  %v1819_v31 = vmul.f32 %v4254_v13, %v4515_v62  ;;  %s3892_s25 = smov 48  }
 0x22c   : > { %1642 = vrot.lane.b32.xlu0 %v1625_v47, %s3885_s28 }
 0x22d   : > { %v4639_v4 = vpop.permute.xlu1 %1729 }
 0x22e   : > { %6163 = vst [vmem:[#allocation27_spill] sm:$0xff] %v4639_v4  ;;  %v4643_v2 = vpop.permute.xlu0 %1828  ;;  %v1933_v4 = vmul.f32 %v4258_v16, %v4209_v58 }
 0x22f   : > { %6164 = vst [vmem:[#allocation28_spill] sm:$0xff] %v4643_v2  ;;  %1494 = vrot.lane.b32.xlu1 %v1478_v39, %s3883_s1  ;;  %v1624_v39 = vmul.f32 %v4203_v55, %v4354_v5 }
 0x230   : > { %1737 = vrot.lane.b32.xlu0 %v1721_v48, %s6157_s30 }
 0x231   : > { %v4649_v51 = vpop.permute.xlu1 %1826 }
 0x232   : > { %6165 = vst [vmem:[#allocation29_spill] sm:$0xff] %v4649_v51  ;;  %v4653_v47 = vpop.permute.xlu0 %1891 }
 0x233   : > { %6166 = vst [vmem:[#allocation30_spill] sm:$0xff] %v4653_v47  ;;  %1543 = vrot.lane.b32.xlu1 %v1527_v45, %s3884_s13  ;;  %v1722_v45 = vmul.f32 %v4205_v56, %v4515_v62  ;;  %v1934_v47 = vmul.f32 %v4248_v9, %v4427_v23 }
 0x234   : > { %1836 = vrot.lane.b32.xlu0 %v1819_v31, %s3887_s5 }
 0x235   : > { %v4659_v52 = vpop.permute.xlu1 %1887 }
 0x236   : > { %6167 = vst [vmem:[#allocation31_spill] sm:$0xff] %v4659_v52  ;;  %v4663_v48 = vpop.permute.xlu0 %1948  ;;  %v1877_v52 = vmul.f32 %v4227_v6, %v4515_v62 }
 0x237   : > { %6168 = vst [vmem:[#allocation32_spill] sm:$0xff] %v4663_v48  ;;  %1640 = vrot.lane.b32.xlu1 %v1624_v39, %s3885_s28  ;;  %v1818_v39 = vmul.f32 %v4254_v13, %v4354_v5  ;;  %v1937_v48 = vmul.f32 %v4248_v9, %v4219_v63 }
 0x238   : > { %1952 = vrot.lane.b32.xlu0 %v1933_v4, %s6169_s26 }
 0x239   : > { %v4669_v8 = vpop.permute.xlu1 %1946 }
 0x23a   : > { %6170 = vst [vmem:[#allocation33_spill] sm:$0xff] %v4669_v8  ;;  %v4673_v31 = vpop.permute.xlu0 %940  ;;  %v1935_v8 = vmul.f32 %v4248_v9, %v4354_v5 }
 0x23b   : > { %1739 = vrot.lane.b32.xlu1 %v1722_v45, %s6157_s30  ;;  %v1876_v45 = vmul.f32 %v4227_v6, %v4354_v5  ;;  %s3895_s30 = smov 45  }
 0x23c   : > { %1899 = vrot.lane.b32.xlu0 %v1877_v52, %s3872_s3 }
 0x23d   : > { %v4679_v55 = vpop.permute.xlu1 %938 }
 0x23e   : > { %v4683_v4 = vpop.permute.xlu0 %989 }
 0x23f   : > { %1834 = vrot.lane.b32.xlu1 %v1818_v39, %s3887_s5  ;;  %v1932_v39 = vmul.f32 %v4258_v16, %v4401_v1  ;;  %s3896_s5 = smov 44  }
 0x240   : > { %1956 = vrot.lane.b32.xlu0 %v1935_v8, %s6169_s26 }
 0x241   : > { %v4689_v56 = vpop.permute.xlu1 %987 }
 0x242   : > { %v4693_v52 = vpop.permute.xlu0 %1038 }
 0x243   : > { %6171 = vst [vmem:[#allocation34_spill] sm:$0xff] %v4693_v52  ;;  %1897 = vrot.lane.b32.xlu1 %v1876_v45, %s3872_s3  ;;  %s3889_s3 = smov 66   ;;  %v1936_v45 = vmul.f32 %v4248_v9, %v4515_v62 }
 0x244   : > { %1960 = vrot.lane.b32.xlu0 %v1937_v48, %s6169_s26  ;;  %v2049_v48 = vmul.f32 %v4252_v12, %v4401_v1 }
 0x245   : > { %v4699_v13 = vpop.permute.xlu1 %1036 }
 0x246   : > { %v4703_v8 = vpop.permute.xlu0 %1087 }
 0x247   : > { %6172 = vst [vmem:[#allocation35_spill] sm:$0xff] %v4703_v8  ;;  %1950 = vrot.lane.b32.xlu1 %v1932_v39, %s6169_s26  ;;  %v6174_v39 = vmov 6  }
 0x248   : > { %1763 = vperm.xlu0 %3755, %v4131_v33  }
 0x249   : > { %v4707_v6 = vpop.permute.xlu1 %1085 }
 0x24a   : > { %v4711_v51 = vpop.permute.xlu0 %1135 }
 0x24b   : > { %6173 = vst [vmem:[#allocation36_spill] sm:$0xff] %v4711_v51  ;;  %1954 = vrot.lane.b32.xlu1 %v1934_v47, %s6169_s26 }
 0x24c   : > { %2067 = vrot.lane.b32.xlu0 %v2049_v48, %s3889_s3  ;;  %v2053_v48 = vmul.f32 %v4262_v18, %v4515_v62 }
 0x24d   : > { %v4717_v16 = vpop.permute.xlu1 %1133  ;;  %3758 = vset.pattern.permute.xlu0 %v6174_v39 }
 0x24e   : > { %v4722_v2 = vpop.permute.xlu0 %1184 }
 0x24f   : > { %6175 = vst [vmem:[#allocation37_spill] sm:$0xff] %v4722_v2  ;;  %1958 = vrot.lane.b32.xlu1 %v1936_v45, %s6169_s26  ;;  %v2047_v2 = vmul.f32 %v4252_v12, %v4321_v10  ;;  %v2048_v45 = vmul.f32 %v4252_v12, %v4316_v0 }
 0x250   : > { %2071 = vrot.lane.b32.xlu0 %v2051_v40, %s3889_s3 }
 0x251   : > { %v4728_v47 = vpop.permute.xlu1 %1182 }
 0x252   : > { %v4730_v51 = vpop.permute.xlu0 %1249 }
 0x253   : > { %6176 = vst [vmem:[#allocation38_spill] sm:$0xff] %v4730_v51  ;;  %1759 = vperm.xlu1 %3757, %v4139_v34  }
 0x254   : > { %2075 = vrot.lane.b32.xlu0 %v2053_v48, %s3889_s3  ;;  %v2165_v48 = vmul.f32 %v4256_v15, %v4316_v0 }
 0x255   : > { %v4736_v9 = vpop.permute.xlu1 %1247 }
 0x256   : > { %v4740_v8 = vpop.permute.xlu0 %1346 }
 0x257   : > { %6177 = vst [vmem:[#allocation39_spill] sm:$0xff] %v4740_v8  ;;  %2063 = vrot.lane.b32.xlu1 %v2047_v2, %s3889_s3  ;;  %v6181_v8 = vmov 7  }
 0x258   : > { %1982 = vperm.xlu0 %3758, %v4139_v34   ;;  %3759 = vset.pattern.permute.xlu1 %v6174_v39  ;;  %v2050_v39 = vmul.f32 %v4252_v12, %v4209_v58  ;;  %v2169_v12 = vmul.f32 %v4260_v21, %v4354_v5 }
 0x259   : > { %v4745_v40 = vpop.permute.xlu1 %1344 }
 0x25a   : > { %6178 = vst [vmem:[#allocation40_spill] sm:$0xff] %v4745_v40  ;;  %v4749_v51 = vpop.permute.xlu0 %1443 }
 0x25b   : > { %6179 = vst [vmem:[#allocation41_spill] sm:$0xff] %v4749_v51  ;;  %2065 = vrot.lane.b32.xlu1 %v2048_v45, %s3889_s3  ;;  %v2167_v51 = vmul.f32 %v4256_v15, %v4209_v58 }
 0x25c   : > { %2182 = vrot.lane.b32.xlu0 %v2165_v48, %s3890_s29  ;;  %v2052_v48 = vmul.f32 %v4262_v18, %v4354_v5 }
 0x25d   : > { %v4755_v2 = vpop.permute.xlu1 %1441  ;;  %3761 = vset.pattern.permute.xlu0 %v6181_v8 }
 0x25e   : > { %6180 = vst [vmem:[#allocation42_spill] sm:$0xff] %v4755_v2  ;;  %v4760_v49 = vpop.permute.xlu0 %1492 }
 0x25f   : > { %6182 = vst [vmem:[#allocation43_spill] sm:$0xff] %v4760_v49  ;;  %2069 = vrot.lane.b32.xlu1 %v2050_v39, %s3889_s3  ;;  %v2054_v39 = vmul.f32 %v4262_v18, %v4219_v63  ;;  %v2164_v18 = vmul.f32 %v4256_v15, %v4321_v10 }
 0x260   : > { %2186 = vrot.lane.b32.xlu0 %v2167_v51, %s3890_s29 }
 0x261   : > { %v4766_v45 = vpop.permute.xlu1 %1490 }
 0x262   : > { %6183 = vst [vmem:[#allocation44_spill] sm:$0xff] %v4766_v45  ;;  %v4770_v2 = vpop.permute.xlu0 %1541  ;;  %v2171_v45 = vmul.f32 %v4260_v21, %v4219_v63 }
 0x263   : > { %6184 = vst [vmem:[#allocation45_spill] sm:$0xff] %v4770_v2  ;;  %2073 = vrot.lane.b32.xlu1 %v2052_v48, %s3889_s3 }
 0x264   : > { %2190 = vrot.lane.b32.xlu0 %v2169_v12, %s3890_s29 }
 0x265   : > { %v4776_v49 = vpop.permute.xlu1 %1539 }
 0x266   : > { %6185 = vst [vmem:[#allocation46_spill] sm:$0xff] %v4776_v49  ;;  %v4780_v51 = vpop.permute.xlu0 %1638 }
 0x267   : > { %6186 = vst [vmem:[#allocation47_spill] sm:$0xff] %v4780_v51  ;;  %2077 = vrot.lane.b32.xlu1 %v2054_v39, %s3889_s3  ;;  %v2283_v39 = vmul.f32 %v4266_v20, %v4401_v1  ;;  %s6226_s3 = sld [smem:[#allocation110_spill]] }
 0x268   : > { %2194 = vrot.lane.b32.xlu0 %v2171_v45, %s3890_s29 }
 0x269   : > { %v4786_v2 = vpop.permute.xlu1 %1636 }
 0x26a   : > { %6187 = vst [vmem:[#allocation48_spill] sm:$0xff] %v4786_v2  ;;  %v4788_v52 = vpop.permute.xlu0 %1832 }
 0x26b   : > { %6188 = vst [vmem:[#allocation49_spill] sm:$0xff] %v4788_v52  ;;  %1986 = vperm.xlu1 %3759, %v4131_v33   ;;  %v6192_v52 = vmov 8  }
 0x26c   : > { %2103 = vperm.xlu0 %3761, %v4131_v33   ;;  %v2166_v33 = vmul.f32 %v4256_v15, %v4401_v1  ;;  %v2287_v15 = vmul.f32 %v4264_v19, %v4515_v62 }
 0x26d   : > { %v4792_v48 = vpop.permute.xlu1 %1731 }
 0x26e   : > { %6189 = vst [vmem:[#allocation50_spill] sm:$0xff] %v4792_v48  ;;  %v4796_v12 = vpop.permute.xlu0 %1895  ;;  %v4837_v48 = vld [vmem:[%s4007_s19] sm:$0xff] }
 0x26f   : > { %6190 = vst [vmem:[#allocation51_spill] sm:$0xff] %v4796_v12  ;;  %2180 = vrot.lane.b32.xlu1 %v2164_v18, %s3890_s29  ;;  %v2285_v12 = vmul.f32 %v4264_v19, %v4427_v23 }
 0x270   : > { %2301 = vrot.lane.b32.xlu0 %v2283_v39, %s3891_s0  ;;  %3760 = vset.pattern.permute.xlu1 %v6181_v8  ;;  %v2168_v8 = vmul.f32 %v4260_v21, %v4427_v23 }
 0x271   : > { %v4803_v45 = vpop.permute.xlu1 %1830  ;;  %3762 = vset.pattern.permute.xlu0 %v6192_v52 }
 0x272   : > { %6191 = vst [vmem:[#allocation52_spill] sm:$0xff] %v4803_v45  ;;  %v4808_v51 = vpop.permute.xlu0 %944 }
 0x273   : > { %2184 = vrot.lane.b32.xlu1 %v2166_v33, %s3890_s29 }
 0x274   : > { %2305 = vrot.lane.b32.xlu0 %v2285_v12, %s3891_s0  ;;  %v2170_v12 = vmul.f32 %v4260_v21, %v4515_v62  ;;  %v2281_v21 = vmul.f32 %v4266_v20, %v4321_v10 }
 0x275   : > { %v4814_v18 = vpop.permute.xlu1 %1889 }
 0x276   : > { %6193 = vst [vmem:[#allocation53_spill] sm:$0xff] %v4814_v18  ;;  %v4818_v39 = vpop.permute.xlu0 %993 }
 0x277   : > { %2188 = vrot.lane.b32.xlu1 %v2168_v8, %s3890_s29  ;;  %v6196_v8 = vmov 0  }
 0x278   : > { %2309 = vrot.lane.b32.xlu0 %v2287_v15, %s3891_s0 }
 0x279   : > { %v4824_v45 = vpop.permute.xlu1 %1735 }
 0x27a   : > { %6194 = vst [vmem:[#allocation54_spill] sm:$0xff] %v4824_v45  ;;  %v4828_v33 = vpop.permute.xlu0 %1042  ;;  %v3794_v45 = vld [vmem:[%s4022_s14] sm:$0xff]  ;;  %s3893_s14 = smov 47  }
 0x27b   : > { %2192 = vrot.lane.b32.xlu1 %v2170_v12, %s3890_s29  ;;  %s3897_s29 = smov 18  }
 0x27c   : > { %2216 = vperm.xlu0 %3762, %v4139_v34   ;;  %v2341_v34 = vmul.f32 %v4268_v22, %v4316_v0 }
 0x27d   : > { %v4832_v18 = vpop.permute.xlu1 %942 }
 0x27e   : > { %v4834_v2 = vpop.permute.xlu0 %1091 }
 0x27f   : > { %6195 = vst [vmem:[#allocation55_spill] sm:$0xff] %v4834_v2  ;;  %2099 = vperm.xlu1 %3760, %v4837_v48   ;;  %v2282_v2 = vmul.f32 %v4266_v20, %v4316_v0 }
 0x280   : > { %3763 = vset.pattern.permute.xlu0 %v6196_v8 }
 0x281   : > { %v4841_v15 = vpop.permute.xlu1 %991  ;;  %900 = vperm.xlu0 %3763, %v3794_v45   ;;  %v2343_v45 = vmul.f32 %v4268_v22, %v4209_v58 }
 0x282   : > { %v4846_v12 = vpop.permute.xlu0 %1139 }
 0x283   : > { %6197 = vst [vmem:[#allocation56_spill] sm:$0xff] %v4846_v12  ;;  %2297 = vrot.lane.b32.xlu1 %v2281_v21, %s3891_s0 }
 0x284   : > { %3764 = vset.pattern.permute.xlu1 %v6192_v52  ;;  %v2284_v52 = vmul.f32 %v4266_v20, %v4209_v58  ;;  %v2347_v20 = vmul.f32 %v4270_v24, %v4219_v63 }
 0x285   : > { %v4852_v49 = vpop.permute.xlu1 %1040  ;;  %2358 = vrot.lane.b32.xlu0 %v2341_v34, %s3892_s25  ;;  %v2345_v34 = vmul.f32 %v4270_v24, %v4354_v5 }
 0x286   : > { %v4857_v40 = vpop.permute.xlu0 %1188 }
 0x287   : > { %6198 = vst [vmem:[#allocation57_spill] sm:$0xff] %v4857_v40  ;;  %2299 = vrot.lane.b32.xlu1 %v2282_v2, %s3891_s0  ;;  %v2286_v2 = vmul.f32 %v4264_v19, %v4354_v5 }
 0x289   : > { %v4862_v21 = vpop.permute.xlu1 %1089  ;;  %2362 = vrot.lane.b32.xlu0 %v2343_v45, %s3892_s25 }
 0x28a   : > { %6199 = vst [vmem:[#allocation58_spill] sm:$0xff] %v4862_v21  ;;  %v4867_v12 = vpop.permute.xlu0 %1253 }
 0x28b   : > { %6200 = vst [vmem:[#allocation59_spill] sm:$0xff] %v4867_v12  ;;  %2303 = vrot.lane.b32.xlu1 %v2284_v52, %s3891_s0  ;;  %v2288_v52 = vmul.f32 %v4264_v19, %v4219_v63  ;;  %v2402_v19 = vmul.f32 %v4272_v26, %v4209_v58 }
 0x28d   : > { %v4872_v40 = vpop.permute.xlu1 %1137  ;;  %2366 = vrot.lane.b32.xlu0 %v2345_v34, %s3892_s25  ;;  %v2400_v34 = vmul.f32 %v4272_v26, %v4316_v0 }
 0x28e   : > { %v4877_v21 = vpop.permute.xlu0 %1350 }
 0x28f   : > { %6201 = vst [vmem:[#allocation60_spill] sm:$0xff] %v4877_v21  ;;  %2307 = vrot.lane.b32.xlu1 %v2286_v2, %s3891_s0 }
 0x291   : > { %v4882_v45 = vpop.permute.xlu1 %1186  ;;  %2370 = vrot.lane.b32.xlu0 %v2347_v20, %s3892_s25 }
 0x292   : > { %6202 = vst [vmem:[#allocation61_spill] sm:$0xff] %v4882_v45  ;;  %v4887_v12 = vpop.permute.xlu0 %1447  ;;  %v4898_v45 = vld [vmem:[%s4007_s19 + $0x8] sm:$0xff]  ;;  %s3894_s19 = smov 46  }
 0x293   : > { %6203 = vst [vmem:[#allocation62_spill] sm:$0xff] %v4887_v12  ;;  %2311 = vrot.lane.b32.xlu1 %v2288_v52, %s3891_s0  ;;  %v2340_v52 = vmul.f32 %v4268_v22, %v4321_v10 }
 0x295   : > { %v4892_v21 = vpop.permute.xlu1 %1251  ;;  %2417 = vrot.lane.b32.xlu0 %v2400_v34, %s3893_s14  ;;  %v2404_v34 = vmul.f32 %v4276_v28, %v4354_v5 }
 0x296   : > { %6204 = vst [vmem:[#allocation63_spill] sm:$0xff] %v4892_v21  ;;  %v4895_v2 = vpop.permute.xlu0 %1496  ;;  %v2342_v21 = vmul.f32 %v4268_v22, %v4401_v1  ;;  %v2459_v22 = vmul.f32 %v4274_v27, %v4316_v0 }
 0x297   : > { %6205 = vst [vmem:[#allocation64_spill] sm:$0xff] %v4895_v2  ;;  %2220 = vperm.xlu1 %3764, %v4898_v45  }
 0x299   : > { %v4903_v20 = vpop.permute.xlu1 %1348  ;;  %2421 = vrot.lane.b32.xlu0 %v2402_v19, %s3893_s14  ;;  %v2406_v19 = vmul.f32 %v4276_v28, %v4219_v63  ;;  %v2461_v63 = vmul.f32 %v4274_v27, %v4209_v58  ;;  %v4956_v58 = vld [vmem:[#allocation2 + $0x38] sm:$0xff] }
 0x29a   : > { %6206 = vst [vmem:[#allocation65_spill] sm:$0xff] %v4903_v20  ;;  %v4908_v12 = vpop.permute.xlu0 %1545 }
 0x29b   : > { %6207 = vst [vmem:[#allocation66_spill] sm:$0xff] %v4908_v12  ;;  %2356 = vrot.lane.b32.xlu1 %v2340_v52, %s3892_s25  ;;  %v2344_v12 = vmul.f32 %v4270_v24, %v4427_v23 }
 0x29c   : > { %3765 = vset.pattern.permute.xlu1 %v6196_v8 }
 0x29d   : > { %v4914_v2 = vpop.permute.xlu1 %1445  ;;  %2425 = vrot.lane.b32.xlu0 %v2404_v34, %s3893_s14 }
 0x29e   : > { %6208 = vst [vmem:[#allocation67_spill] sm:$0xff] %v4914_v2  ;;  %v4920_v20 = vpop.permute.xlu0 %1642 }
 0x29f   : > { %2360 = vrot.lane.b32.xlu1 %v2342_v21, %s3892_s25  ;;  %6209 = vst [vmem:[#allocation68_spill] sm:$0xff] %v4920_v20  ;;  %v2346_v21 = vmul.f32 %v4270_v24, %v4515_v62  ;;  %v2683_v20 = vld [vmem:[%s4027_s17 + $0x8] sm:$0xff] }
 0x2a1   : > { %v4924_v52 = vpop.permute.xlu1 %1494  ;;  %2429 = vrot.lane.b32.xlu0 %v2406_v19, %s3893_s14 }
 0x2a2   : > { %6210 = vst [vmem:[#allocation69_spill] sm:$0xff] %v4924_v52  ;;  %v4936_v34 = vpop.permute.xlu0 %1737 }
 0x2a3   : > { %2364 = vrot.lane.b32.xlu1 %v2344_v12, %s3892_s25  ;;  %6212 = vst [vmem:[#allocation71_spill] sm:$0xff] %v4936_v34  ;;  %v2399_v12 = vmul.f32 %v4272_v26, %v4321_v10 }
 0x2a5   : > { %v4932_v8 = vpop.permute.xlu1 %1543  ;;  %2476 = vrot.lane.b32.xlu0 %v2459_v22, %s3894_s19  ;;  %v2463_v22 = vmul.f32 %v4280_v30, %v4354_v5 }
 0x2a6   : > { %6211 = vst [vmem:[#allocation70_spill] sm:$0xff] %v4932_v8  ;;  %v4948_v24 = vpop.permute.xlu0 %1836 }
 0x2a7   : > { %2368 = vrot.lane.b32.xlu1 %v2346_v21, %s3892_s25  ;;  %6214 = vst [vmem:[#allocation73_spill] sm:$0xff] %v4948_v24  ;;  %v2401_v21 = vmul.f32 %v4272_v26, %v4401_v1  ;;  %v2403_v24 = vmul.f32 %v4276_v28, %v4427_v23  ;;  %v2405_v26 = vmul.f32 %v4276_v28, %v4515_v62 }
 0x2a8   : > { %v2521_v28 = vmul.f32 %v4278_v29, %v4427_v23 }
 0x2a9   : > { %2480 = vrot.lane.b32.xlu0 %v2461_v63, %s3894_s19  ;;  %v4945_v19 = vpop.permute.xlu1 %1640  ;;  %v2465_v63 = vmul.f32 %v4956_v58, %v4280_v30 }
 0x2aa   : > { %6213 = vst [vmem:[#allocation72_spill] sm:$0xff] %v4945_v19 }
 0x2ab   : > { %2415 = vrot.lane.b32.xlu1 %v2399_v12, %s3893_s14  ;;  %v4962_v12 = vpop.permute.xlu0 %1952 }
 0x2ac   : > { %6216 = vst [vmem:[#allocation75_spill] sm:$0xff] %v4962_v12  ;;  %v2519_v12 = vmul.f32 %v4284_v32, %v4401_v1 }
 0x2ad   : > { %2484 = vrot.lane.b32.xlu0 %v2463_v22, %s3894_s19  ;;  %v4960_v34 = vpop.permute.xlu1 %1739 }
 0x2ae   : > { %6215 = vst [vmem:[#allocation74_spill] sm:$0xff] %v4960_v34  ;;  %v2458_v34 = vmul.f32 %v4274_v27, %v4321_v10 }
 0x2af   : > { %2419 = vrot.lane.b32.xlu1 %v2401_v21, %s3893_s14  ;;  %v4973_v21 = vpop.permute.xlu0 %1899 }
 0x2b0   : > { %6218 = vst [vmem:[#allocation77_spill] sm:$0xff] %v4973_v21 }
 0x2b1   : > { %2488 = vrot.lane.b32.xlu0 %v2465_v63, %s3894_s19  ;;  %v4971_v22 = vpop.permute.xlu1 %1834  ;;  %v2460_v63 = vmul.f32 %v4274_v27, %v4401_v1  ;;  %v2576_v27 = vmul.f32 %v4288_v36, %v4321_v10 }
 0x2b2   : > { %6217 = vst [vmem:[#allocation76_spill] sm:$0xff] %v4971_v22 }
 0x2b3   : > { %2423 = vrot.lane.b32.xlu1 %v2403_v24, %s3893_s14  ;;  %v4986_v24 = vpop.permute.xlu0 %1956 }
 0x2b4   : > { %6220 = vst [vmem:[#allocation79_spill] sm:$0xff] %v4986_v24 }
 0x2b5   : > { %2691 = vperm.xlu0 %3763, %v2683_v20   ;;  %v4984_v20 = vpop.permute.xlu1 %1897 }
 0x2b6   : > { %6219 = vst [vmem:[#allocation78_spill] sm:$0xff] %v4984_v20 }
 0x2b7   : > { %2427 = vrot.lane.b32.xlu1 %v2405_v26, %s3893_s14  ;;  %v4999_v21 = vpop.permute.xlu0 %1960 }
 0x2b8   : > { %6222 = vst [vmem:[#allocation81_spill] sm:$0xff] %v4999_v21 }
 0x2b9   : > { %2537 = vrot.lane.b32.xlu0 %v2519_v12, %s3895_s30  ;;  %v2523_v12 = vmul.f32 %v4278_v29, %v4515_v62  ;;  %v4997_v26 = vpop.permute.xlu1 %1950 }
 0x2ba   : > { %6221 = vst [vmem:[#allocation80_spill] sm:$0xff] %v4997_v26 }
 0x2bb   : > { %2474 = vrot.lane.b32.xlu1 %v2458_v34, %s3894_s19  ;;  %v2462_v34 = vmul.f32 %v4280_v30, %v4427_v23 }
 0x2bd   : > { %2541 = vrot.lane.b32.xlu0 %v2521_v28, %s3895_s30  ;;  %v2464_v28 = vmul.f32 %v4280_v30, %v4515_v62  ;;  %v5012_v21 = vpop.permute.xlu1 %1954 }
 0x2be   : > { %6223 = vst [vmem:[#allocation82_spill] sm:$0xff] %v5012_v21 }
 0x2bf   : > { %2478 = vrot.lane.b32.xlu1 %v2460_v63, %s3894_s19  ;;  %v2652_v63 = vlaneseq }
 0x2c1   : > { %2545 = vrot.lane.b32.xlu0 %v2523_v12, %s3895_s30  ;;  %v2578_v12 = vmul.f32 %v4288_v36, %v4401_v1  ;;  %v5016_v26 = vshrl.u32 %v2652_v63, 7  ;;  %v5026_v22 = vpop.permute.xlu1 %1958  ;;  %v643_v63 = vld [vmem:[%s6226_s3] sm:$0x7] }
 0x2c2   : > { %6225 = vst [vmem:[#allocation84_spill] sm:$0xff] %v5026_v22 }
 0x2c3   : > { %2482 = vrot.lane.b32.xlu1 %v2462_v34, %s3894_s19  ;;  %v2682_v34 = vld [vmem:[%s4027_s17] sm:$0xff]  ;;  %v2654_v20 = vsub.s32 0, %v5016_v26 }
 0x2c5   : > { %2592 = vrot.lane.b32.xlu0 %v2576_v27, %s3896_s5  ;;  %v2580_v27 = vmul.f32 %v4292_v42, %v4427_v23 }
 0x2c7   : > { %2486 = vrot.lane.b32.xlu1 %v2464_v28, %s3894_s19  ;;  %v5008_v24 = vpop.permute.xlu0 %1763  ;;  %v2517_v28 = vmul.f32 %v4284_v32, %v4321_v10  ;;  %v2518_v10 = vmul.f32 %v4284_v32, %v4316_v0 }
 0x2c9   : > { %2596 = vrot.lane.b32.xlu0 %v2578_v12, %s3896_s5 }
 0x2cb   : > { %2686 = vperm.xlu1 %3765, %v2682_v34   ;;  %v5018_v30 = vpop.permute.xlu0 %2067  ;;  %v2582_v34 = vmul.f32 %v4292_v42, %v4515_v62 }
 0x2cc   : > { %6224 = vst [vmem:[#allocation83_spill] sm:$0xff] %v5018_v30  ;;  %v2662_v30 = vsub.s32 2, %v5016_v26 }
 0x2cd   : > { %2600 = vrot.lane.b32.xlu0 %v2580_v27, %s3896_s5  ;;  %v5039_v27 = vrot.slane %v643_v63, %v2654_v20 }
 0x2cf   : > { %2533 = vrot.lane.b32.xlu1 %v2517_v28, %s3895_s30  ;;  %v5032_v12 = vpop.permute.xlu0 %2071  ;;  %6228 = vst [vmem:[#allocation86_spill] sm:$0xff] %v5039_v27  ;;  %v5047_v28 = vld [vmem:[#allocation2 + $0x18] sm:$0xff] }
 0x2d0   : > { %6227 = vst [vmem:[#allocation85_spill] sm:$0xff] %v5032_v12  ;;  %v2520_v12 = vmul.f32 %v5047_v28, %v4284_v32 }
 0x2d1   : > { %2604 = vrot.lane.b32.xlu0 %v2582_v34, %s3896_s5  ;;  %v5053_v34 = vrot.slane %v643_v63, %v2662_v30  ;;  %v2524_v30 = vmul.f32 %v4956_v58, %v4278_v29 }
 0x2d2   : > { %v5042_v22 = vpop.permute.xlu1 %1759 }
 0x2d3   : > { %2535 = vrot.lane.b32.xlu1 %v2518_v10, %s3895_s30  ;;  %v5045_v21 = vpop.permute.xlu0 %2075  ;;  %6230 = vst [vmem:[#allocation88_spill] sm:$0xff] %v5053_v34  ;;  %v2522_v10 = vmul.f32 %v4278_v29, %v4354_v5 }
 0x2d4   : > { %6229 = vst [vmem:[#allocation87_spill] sm:$0xff] %v5045_v21 }
 0x2d5   : > { %2706 = vrot.lane.b32.xlu0 %v5039_v27, %s3897_s29 }
 0x2d6   : > { %v5055_v20 = vpop.permute.xlu1 %2063 }
 0x2d7   : > { %6231 = vst [vmem:[#allocation89_spill] sm:$0xff] %v5055_v20  ;;  %2539 = vrot.lane.b32.xlu1 %v2520_v12, %s3895_s30  ;;  %v5058_v19 = vpop.permute.xlu0 %1982  ;;  %v6236_v20 = vld [vmem:[#allocation15_spill] sm:$0xff] }
 0x2d9   : > { %2710 = vrot.lane.b32.xlu0 %v5053_v34, %s3897_s29  ;;  %v1281_v34 = vmul.f32 %v6236_v20, %v4316_v0 }
 0x2da   : > { %v5064_v21 = vpop.permute.xlu1 %2065 }
 0x2db   : > { %6232 = vst [vmem:[#allocation90_spill] sm:$0xff] %v5064_v21  ;;  %2543 = vrot.lane.b32.xlu1 %v2522_v10, %s3895_s30  ;;  %v5067_v32 = vpop.permute.xlu0 %2182  ;;  %v2577_v21 = vmul.f32 %v4288_v36, %v4316_v0 }
 0x2dc   : > { %6233 = vst [vmem:[#allocation91_spill] sm:$0xff] %v5067_v32 }
 0x2dd   : > { %1214 = vperm.xlu0 %3763, %v4898_v45   ;;  %v6239_v45 = vld [vmem:[#allocation11_spill] sm:$0xff] }
 0x2de   : > { %v5072_v12 = vpop.permute.xlu1 %2069 }
 0x2df   : > { %6234 = vst [vmem:[#allocation92_spill] sm:$0xff] %v5072_v12  ;;  %2547 = vrot.lane.b32.xlu1 %v2524_v30, %s3895_s30  ;;  %v5075_v27 = vpop.permute.xlu0 %2186  ;;  %v1283_v12 = vmul.f32 %v6239_v45, %v4427_v23  ;;  %v2579_v30 = vmul.f32 %v5047_v28, %v4288_v36 }
 0x2e0   : > { %6235 = vst [vmem:[#allocation93_spill] sm:$0xff] %v5075_v27 }
 0x2e1   : > { %1294 = vrot.lane.b32.xlu0 %v1281_v34, %s3874_s6  ;;  %v1285_v34 = vmul.f32 %v6239_v45, %v4515_v62 }
 0x2e2   : > { %v5082_v10 = vpop.permute.xlu1 %2073 }
 0x2e3   : > { %6237 = vst [vmem:[#allocation15_spill] sm:$0xff] %v5082_v10  ;;  %2594 = vrot.lane.b32.xlu1 %v2577_v21, %s3896_s5  ;;  %v5085_v29 = vpop.permute.xlu0 %2190  ;;  %v2581_v21 = vmul.f32 %v4292_v42, %v4354_v5  ;;  %v2583_v10 = vmul.f32 %v4956_v58, %v4292_v42 }
 0x2e4   : > { %6238 = vst [vmem:[#allocation94_spill] sm:$0xff] %v5085_v29 }
 0x2e5   : > { %1298 = vrot.lane.b32.xlu0 %v1283_v12, %s3874_s6  ;;  %v2658_v12 = vsub.s32 1, %v5016_v26  ;;  %v6248_v26 = vld [vmem:[#allocation17_spill] sm:$0xff] }
 0x2e6   : > { %v5092_v27 = vpop.permute.xlu1 %2077  ;;  %v1380_v32 = vmul.f32 %v6248_v26, %v4427_v23 }
 0x2e7   : > { %6240 = vst [vmem:[#allocation11_spill] sm:$0xff] %v5092_v27  ;;  %2598 = vrot.lane.b32.xlu1 %v2579_v30, %s3896_s5  ;;  %v5095_v0 = vpop.permute.xlu0 %2194  ;;  %v5108_v27 = vld [vmem:[#allocation2 + $0x8] sm:$0xff]  ;;  %v6244_v30 = vld [vmem:[#allocation12_spill] sm:$0xff] }
 0x2e8   : > { %6241 = vst [vmem:[#allocation95_spill] sm:$0xff] %v5095_v0  ;;  %6243 = vst [vmem:[#allocation97_spill] sm:$0xff] %v5108_v27  ;;  %v1378_v0 = vmul.f32 %v5108_v27, %v6244_v30 }
 0x2e9   : > { %1302 = vrot.lane.b32.xlu0 %v1285_v34, %s3874_s6  ;;  %v5118_v34 = vrot.slane %v643_v63, %v2658_v12  ;;  %v6253_v12 = vld [vmem:[#allocation18_spill] sm:$0xff] }
 0x2ea   : > { %v5102_v29 = vpop.permute.xlu1 %1986 }
 0x2eb   : > { %2602 = vrot.lane.b32.xlu1 %v2581_v21, %s3896_s5  ;;  %v5105_v36 = vpop.permute.xlu0 %2103  ;;  %6246 = vst [vmem:[#allocation98_spill] sm:$0xff] %v5118_v34 }
 0x2ec   : > { %6242 = vst [vmem:[#allocation96_spill] sm:$0xff] %v5105_v36 }
 0x2ed   : > { %1391 = vrot.lane.b32.xlu0 %v1378_v0, %s3875_s21  ;;  %v1382_v0 = vmul.f32 %v6248_v26, %v4515_v62 }
 0x2ee   : > { %v5115_v5 = vpop.permute.xlu1 %2180 }
 0x2ef   : > { %6245 = vst [vmem:[#allocation12_spill] sm:$0xff] %v5115_v5  ;;  %2606 = vrot.lane.b32.xlu1 %v2583_v10, %s3896_s5  ;;  %v5120_v21 = vpop.permute.xlu0 %2301  ;;  %v5161_v5 = vld [vmem:[#allocation2 + $0x28] sm:$0xff] }
 0x2f0   : > { %6247 = vst [vmem:[#allocation99_spill] sm:$0xff] %v5120_v21  ;;  %v5141_v21 = vld [vmem:[#allocation2] sm:$0xff] }
 0x2f1   : > { %1395 = vrot.lane.b32.xlu0 %v1380_v32, %s3875_s21  ;;  %v1573_v32 = vmul.f32 %v5108_v27, %v6253_v12 }
 0x2f2   : > { %v5125_v8 = vpop.permute.xlu1 %2184 }
 0x2f3   : > { %6249 = vst [vmem:[#allocation17_spill] sm:$0xff] %v5125_v8  ;;  %2708 = vrot.lane.b32.xlu1 %v5118_v34, %s3897_s29  ;;  %v5129_v42 = vpop.permute.xlu0 %2305  ;;  %v1280_v8 = vmul.f32 %v5141_v21, %v6236_v20 }
 0x2f4   : > { %6250 = vst [vmem:[#allocation100_spill] sm:$0xff] %v5129_v42 }
 0x2f5   : > { %1399 = vrot.lane.b32.xlu0 %v1382_v0, %s3875_s21 }
 0x2f6   : > { %v5134_v63 = vpop.permute.xlu1 %2188 }
 0x2f7   : > { %6251 = vst [vmem:[#allocation101_spill] sm:$0xff] %v5134_v63  ;;  %1209 = vperm.xlu1 %3765, %v4837_v48   ;;  %v5137_v10 = vpop.permute.xlu0 %2309  ;;  %v6256_v48 = vld [vmem:[#allocation13_spill] sm:$0xff] }
 0x2f8   : > { %6252 = vst [vmem:[#allocation102_spill] sm:$0xff] %v5137_v10  ;;  %v1575_v63 = vmul.f32 %v6256_v48, %v4427_v23  ;;  %v1282_v10 = vmul.f32 %v6236_v20, %v4401_v1  ;;  %6257 = vst [vmem:[#allocation13_spill] sm:$0xff] %v5161_v5  ;;  %v6259_v20 = vld [vmem:[#allocation16_spill] sm:$0xff] }
 0x2f9   : > { %1586 = vrot.lane.b32.xlu0 %v1573_v32, %s3878_s16  ;;  %v1577_v32 = vmul.f32 %v6256_v48, %v4515_v62 }
 0x2fa   : > { %v5146_v42 = vpop.permute.xlu1 %2192 }
 0x2fb   : > { %6254 = vst [vmem:[#allocation18_spill] sm:$0xff] %v5146_v42  ;;  %1292 = vrot.lane.b32.xlu1 %v1280_v8, %s3874_s6  ;;  %v5149_v0 = vpop.permute.xlu0 %2216  ;;  %v1284_v8 = vmul.f32 %v5161_v5, %v6239_v45  ;;  %v6262_v45 = vld [vmem:[#allocation21_spill] sm:$0xff] }
 0x2fc   : > { %6255 = vst [vmem:[#allocation103_spill] sm:$0xff] %v5149_v0 }
 0x2fd   : > { %1590 = vrot.lane.b32.xlu0 %v1575_v63, %s3878_s16  ;;  %v1670_v63 = vmul.f32 %v5108_v27, %v6259_v20 }
 0x2fe   : > { %v5156_v34 = vpop.permute.xlu1 %2099 }
 0x2ff   : > { %1296 = vrot.lane.b32.xlu1 %v1282_v10, %s3874_s6  ;;  %v1377_v10 = vmul.f32 %v5141_v21, %v6244_v30 }
 0x300   : > { %v901_v42 = vpop.permute.xlu0 %900 }
 0x301   : > { %1594 = vrot.lane.b32.xlu0 %v1577_v32, %s3878_s16  ;;  %v1672_v32 = vmul.f32 %v6262_v45, %v4427_v23 }
 0x302   : > { %v5166_v0 = vpop.permute.xlu1 %2297 }
 0x303   : > { %6258 = vst [vmem:[#allocation104_spill] sm:$0xff] %v5166_v0  ;;  %1300 = vrot.lane.b32.xlu1 %v1284_v8, %s3874_s6  ;;  %v1379_v8 = vmul.f32 %v6244_v30, %v4401_v1  ;;  %v1381_v30 = vmul.f32 %v5161_v5, %v6248_v26  ;;  %v909_v26 = vmul.f32 %v5108_v27, %v901_v42  ;;  %s3899_s6 = smov 21  }
 0x304   : > { %v5171_v52 = vpop.permute.xlu0 %2358 }
 0x305   : > { %6260 = vst [vmem:[#allocation16_spill] sm:$0xff] %v5171_v52  ;;  %1683 = vrot.lane.b32.xlu0 %v1670_v63, %s3879_s18  ;;  %v908_v52 = vmul.f32 %v5141_v21, %v901_v42  ;;  %v1674_v63 = vmul.f32 %v6262_v45, %v4515_v62 }
 0x306   : > { %v5176_v2 = vpop.permute.xlu1 %2299 }
 0x307   : > { %6261 = vst [vmem:[#allocation105_spill] sm:$0xff] %v5176_v2  ;;  %1389 = vrot.lane.b32.xlu1 %v1377_v10, %s3875_s21 }
 0x308   : > { %v5181_v0 = vpop.permute.xlu0 %2362 }
 0x309   : > { %6263 = vst [vmem:[#allocation21_spill] sm:$0xff] %v5181_v0  ;;  %1687 = vrot.lane.b32.xlu0 %v1672_v32, %s3879_s18  ;;  %v947_v0 = vsel %vm946_vm10, %v4519_v54, %v4511_v59  ;;  %v996_v54 = vsel %vm995_vm11, %v4529_v44, %v4523_v14 }
 0x30a   : > { %v5187_v36 = vpop.permute.xlu1 %2303  ;;  %v957_v32 = vadd.f32 %v947_v0, %v908_v52  ;;  %v910_v52 = vmul.f32 %v901_v42, %v4401_v1  ;;  %v5228_v1 = vld [vmem:[#allocation2 + $0x10] sm:$0xff] }
 0x30b   : > { %6264 = vst [vmem:[#allocation106_spill] sm:$0xff] %v5187_v36  ;;  %1393 = vrot.lane.b32.xlu1 %v1379_v8, %s3875_s21  ;;  %v1767_v8 = vmul.f32 %v5108_v27, %v5042_v22  ;;  %v1574_v42 = vmul.f32 %v5228_v1, %v6253_v12 }
 0x30c   : > { %v5192_v10 = vpop.permute.xlu0 %2366  ;;  %v1006_v0 = vadd.f32 %v996_v54, %v957_v32 }
 0x30d   : > { %6265 = vst [vmem:[#allocation107_spill] sm:$0xff] %v5192_v10  ;;  %1691 = vrot.lane.b32.xlu0 %v1674_v63, %s3879_s18  ;;  %v1572_v10 = vmul.f32 %v5141_v21, %v6253_v12  ;;  %v1093_v12 = vsel %vm883_vm9, %v4549_v60, %v4543_v35  ;;  %v1046_v60 = vsel %vm1044_vm12, %v4533_v46, %v4699_v13 }
 0x30e   : > { %v5200_v2 = vpop.permute.xlu1 %2307 }
 0x30f   : > { %6266 = vst [vmem:[#allocation108_spill] sm:$0xff] %v5200_v2  ;;  %1397 = vrot.lane.b32.xlu1 %v1381_v30, %s3875_s21  ;;  %v1769_v30 = vmul.f32 %v5008_v24, %v4427_v23  ;;  %v959_v23 = vadd.f32 %v4679_v55, %v910_v52  ;;  %s3900_s21 = smov 89  }
 0x310   : > { %v5205_v36 = vpop.permute.xlu0 %2370 }
 0x311   : > { %6267 = vst [vmem:[#allocation109_spill] sm:$0xff] %v5205_v36  ;;  %1780 = vrot.lane.b32.xlu0 %v1767_v8, %s3880_s24  ;;  %v948_v36 = vsel %vm946_vm10, %v4511_v59, %v4679_v55  ;;  %v1045_v8 = vsel %vm1044_vm12, %v4539_v57, %v4533_v46  ;;  %v1771_v59 = vmul.f32 %v5008_v24, %v4515_v62 }
 0x312   : > { %v5215_v63 = vpop.permute.xlu1 %2311  ;;  %v958_v2 = vadd.f32 %v948_v36, %v909_v26  ;;  %v997_v57 = vsel %vm995_vm11, %v4523_v14, %v4689_v56  ;;  %v1576_v55 = vmul.f32 %v5161_v5, %v6256_v48  ;;  %v1008_v26 = vadd.f32 %v4689_v56, %v959_v23 }
 0x313   : > { %1584 = vrot.lane.b32.xlu1 %v1572_v10, %s3878_s16  ;;  %v1055_v10 = vadd.f32 %v1045_v8, %v1006_v0  ;;  %v1990_v14 = vmul.f32 %v5108_v27, %v5058_v19  ;;  %v1142_v48 = vsel %vm1141_vm13, %v4559_v7, %v4553_v50  ;;  %v1669_v56 = vmul.f32 %v5141_v21, %v6259_v20 }
 0x314   : > { %v5223_v44 = vpop.permute.xlu0 %2417  ;;  %v1007_v54 = vadd.f32 %v997_v57, %v958_v2  ;;  %v1057_v8 = vadd.f32 %v4699_v13, %v1008_v26  ;;  %v1992_v46 = vmul.f32 %v5047_v28, %v5058_v19  ;;  %v1094_v7 = vsel %vm883_vm9, %v4543_v35, %v4707_v6 }
 0x315   : > { %1784 = vrot.lane.b32.xlu0 %v1769_v30, %s3880_s24  ;;  %v1103_v52 = vadd.f32 %v1093_v12, %v1055_v10  ;;  %v1671_v13 = vmul.f32 %v5228_v1, %v6259_v20  ;;  %v1994_v35 = vmul.f32 %v5161_v5, %v5102_v29  ;;  %v1256_v20 = vsel %vm1255_vm15, %v4579_v37, %v4573_v11 }
 0x316   : > { %v5234_v32 = vpop.permute.xlu1 %2220  ;;  %v1056_v30 = vadd.f32 %v1046_v60, %v1007_v54  ;;  %v1105_v12 = vadd.f32 %v4707_v6, %v1057_v8  ;;  %v1673_v6 = vmul.f32 %v5161_v5, %v6262_v45  ;;  %v1192_v37 = vsel %vm1190_vm14, %v4563_v53, %v4728_v47  ;;  %v6268_v45 = vld [vmem:[#allocation14_spill] sm:$0xff] }
 0x317   : > { %1588 = vrot.lane.b32.xlu1 %v1574_v42, %s3878_s16  ;;  %v1152_v42 = vadd.f32 %v1142_v48, %v1103_v52  ;;  %v1766_v8 = vmul.f32 %v5141_v21, %v5042_v22 }
 0x318   : > { %v5242_v36 = vpop.permute.xlu0 %2421  ;;  %v1104_v57 = vadd.f32 %v1094_v7, %v1056_v30  ;;  %v913_v30 = vmul.f32 %v6268_v45, %v4515_v62  ;;  %v2628_v62 = vld [vmem:[%s4017_s22 + $0x8] sm:$0xff] }
 0x319   : > { %1788 = vrot.lane.b32.xlu0 %v1771_v59, %s3880_s24  ;;  %v1191_v59 = vsel %vm1190_vm14, %v4569_v38, %v4563_v53  ;;  %v1143_v38 = vsel %vm1141_vm13, %v4553_v50, %v4717_v16  ;;  %v1996_v50 = vmul.f32 %v4956_v58, %v5102_v29 }
 0x31a   : > { %v5251_v0 = vpop.permute.xlu1 %2356  ;;  %v1201_v54 = vadd.f32 %v1191_v59, %v1152_v42  ;;  %v1153_v52 = vadd.f32 %v1143_v38, %v1104_v57  ;;  %v5325_v57 = vld [vmem:[#allocation2 + $0x20] sm:$0xff]  ;;  %v949_v38 = vsel %vm946_vm10, %v4673_v31, %v4832_v18  ;;  %v1499_v31 = vsel %vm1498_vm2, %v4609_v17, %v4603_v3 }
 0x31b   : > { %1592 = vrot.lane.b32.xlu1 %v1576_v55, %s3878_s16 }
 0x31c   : > { %v5259_v2 = vpop.permute.xlu0 %2425  ;;  %v1266_v60 = vadd.f32 %v1256_v20, %v1201_v54  ;;  %v1202_v42 = vadd.f32 %v1192_v37, %v1153_v52  ;;  %v950_v20 = vsel %vm946_vm10, %v4832_v18, %v4808_v51  ;;  %v999_v18 = vsel %vm995_vm11, %v4841_v15, %v4818_v39 }
 0x31d   : > { %2007 = vrot.lane.b32.xlu0 %v1990_v14, %s3883_s1  ;;  %v1154_v14 = vadd.f32 %v4717_v16, %v1105_v12  ;;  %v1353_v16 = vsel %vm1352_vm0, %v4589_v41, %v4583_v25  ;;  %v911_v41 = vmul.f32 %v5325_v57, %v6268_v45  ;;  %v912_v12 = vmul.f32 %v5161_v5, %v6268_v45  ;;  %v6270_v45 = vld [vmem:[#allocation55_spill] sm:$0xff] }
 0x31e   : > { %v5268_v23 = vpop.permute.xlu1 %2360  ;;  %v1363_v7 = vadd.f32 %v1353_v16, %v1266_v60 }
 0x31f   : > { %1681 = vrot.lane.b32.xlu1 %v1669_v56, %s3879_s18  ;;  %v1203_v53 = vadd.f32 %v4728_v47, %v1154_v14  ;;  %v1257_v47 = vsel %vm1255_vm15, %v4573_v11, %v4736_v9  ;;  %v960_v37 = vadd.f32 %v949_v38, %v911_v41  ;;  %v961_v17 = vadd.f32 %v950_v20, %v912_v12  ;;  %v6273_v41 = vld [vmem:[#allocation22_spill] sm:$0xff] }
 0x320   : > { %v5276_v10 = vpop.permute.xlu0 %2429  ;;  %v1267_v52 = vadd.f32 %v1257_v47, %v1202_v42  ;;  %v6275_v12 = vld [vmem:[#allocation58_spill] sm:$0xff] }
 0x321   : > { %2011 = vrot.lane.b32.xlu0 %v1992_v46, %s3883_s1  ;;  %v962_v46 = vadd.f32 %v4808_v51, %v913_v30  ;;  %v998_v51 = vsel %vm995_vm11, %v4683_v4, %v4841_v15  ;;  %v6272_v4 = vld [vmem:[#allocation34_spill] sm:$0xff]  ;;  %v1048_v15 = vsel %vm1044_vm12, %v4852_v49, %v4828_v33 }
 0x322   : > { %v5285_v55 = vpop.permute.xlu1 %2364 }
 0x323   : > { %1685 = vrot.lane.b32.xlu1 %v1671_v13, %s3879_s18  ;;  %v1450_v13 = vsel %vm1449_vm1, %v4599_v43, %v4593_v61  ;;  %v1011_v54 = vadd.f32 %v4818_v39, %v962_v46  ;;  %v1768_v43 = vmul.f32 %v5228_v1, %v5042_v22  ;;  %v6269_v22 = vld [vmem:[#allocation40_spill] sm:$0xff]  ;;  %v1047_v39 = vsel %vm1044_vm12, %v6272_v4, %v4852_v49  ;;  %v6276_v49 = vld [vmem:[#allocation35_spill] sm:$0xff] }
 0x324   : > { %v5293_v26 = vpop.permute.xlu0 %2476  ;;  %v1460_v14 = vadd.f32 %v1450_v13, %v1363_v7  ;;  %v1010_v46 = vadd.f32 %v999_v18, %v961_v17  ;;  %v6274_v13 = vld [vmem:[#allocation23_spill] sm:$0xff]  ;;  %vm1903_vm12 = vcmask 556032   ;;  %v6282_v4 = vld [vmem:[#allocation24_spill] sm:$0xff] }
 0x325   : > { %2015 = vrot.lane.b32.xlu0 %v1994_v35, %s3883_s1  ;;  %v1060_v11 = vadd.f32 %v4828_v33, %v1011_v54  ;;  %v1548_v47 = vsel %vm1547_vm3, %v6274_v13, %v6273_v41  ;;  %v1095_v33 = vsel %vm883_vm9, %v6276_v49, %v6275_v12  ;;  %v6277_v54 = vld [vmem:[#allocation42_spill] sm:$0xff]  ;;  %v6288_v49 = vld [vmem:[#allocation59_spill] sm:$0xff] }
 0x326   : > { %v5302_v48 = vpop.permute.xlu1 %2368  ;;  %v1509_v7 = vadd.f32 %v1499_v31, %v1460_v14  ;;  %v1451_v38 = vsel %vm1449_vm1, %v4593_v61, %v6277_v54  ;;  %v1096_v14 = vsel %vm883_vm9, %v6275_v12, %v6270_v45  ;;  %v6280_v31 = vld [vmem:[#allocation36_spill] sm:$0xff]  ;;  %vm1962_vm9 = vcmask 547840  }
 0x327   : > { %1689 = vrot.lane.b32.xlu1 %v1673_v6, %s3879_s18  ;;  %v1268_v6 = vadd.f32 %v4736_v9, %v1203_v53  ;;  %v2107_v9 = vmul.f32 %v5108_v27, %v5156_v34  ;;  %v1108_v30 = vadd.f32 %v6270_v45, %v1060_v11  ;;  %v6283_v45 = vld [vmem:[#allocation25_spill] sm:$0xff] }
 0x328   : > { %v5312_v56 = vpop.permute.xlu0 %2480  ;;  %v1558_v17 = vadd.f32 %v1548_v47, %v1509_v7  ;;  %v6287_v7 = vld [vmem:[#allocation44_spill] sm:$0xff] }
 0x329   : > { %2019 = vrot.lane.b32.xlu0 %v1996_v50, %s3883_s1  ;;  %v1354_v50 = vsel %vm1352_vm0, %v4583_v25, %v6269_v22  ;;  %v1009_v25 = vadd.f32 %v998_v51, %v960_v37  ;;  %v1365_v53 = vadd.f32 %v6269_v22, %v1268_v6  ;;  %v1144_v51 = vsel %vm1141_vm13, %v6280_v31, %v4872_v40  ;;  %v6281_v22 = vld [vmem:[#allocation57_spill] sm:$0xff] }
 0x32a   : > { %v5322_v59 = vpop.permute.xlu1 %2415  ;;  %v1364_v42 = vadd.f32 %v1354_v50, %v1267_v52  ;;  %v6278_v52 = vld [vmem:[#allocation56_spill] sm:$0xff]  ;;  %v1500_v13 = vsel %vm1498_vm2, %v4603_v3, %v6287_v7 }
 0x32b   : > { %1778 = vrot.lane.b32.xlu1 %v1766_v8, %s3880_s24  ;;  %v1770_v8 = vmul.f32 %v5161_v5, %v5008_v24  ;;  %v2109_v24 = vmul.f32 %v5047_v28, %v5156_v34  ;;  %v1058_v20 = vadd.f32 %v1047_v39, %v1009_v25  ;;  %v1157_v11 = vadd.f32 %v6278_v52, %v1108_v30 }
 0x32c   : > { %v5339_v35 = vpop.permute.xlu0 %2484  ;;  %v1461_v18 = vadd.f32 %v1451_v38, %v1364_v42  ;;  %v1462_v37 = vadd.f32 %v6277_v54, %v1365_v53  ;;  %v1645_v39 = vsel %vm1644_vm4, %v6283_v45, %v6282_v4  ;;  %v6285_v42 = vld [vmem:[#allocation37_spill] sm:$0xff]  ;;  %v6290_v54 = vld [vmem:[#allocation63_spill] sm:$0xff]  ;;  %v6291_v38 = vld [vmem:[#allocation38_spill] sm:$0xff] }
 0x32d   : > { %2636 = vperm.xlu0 %3763, %v2628_v62   ;;  %v1106_v61 = vadd.f32 %v1095_v33, %v1058_v20  ;;  %v1206_v50 = vadd.f32 %v6281_v22, %v1157_v11  ;;  %v1258_v20 = vsel %vm1255_vm15, %v6291_v38, %v6290_v54  ;;  %v1991_v11 = vmul.f32 %v5228_v1, %v5058_v19  ;;  %v6295_v45 = vld [vmem:[#allocation65_spill] sm:$0xff] }
 0x32e   : > { %v5351_v60 = vpop.permute.xlu1 %2419  ;;  %v1655_v31 = vadd.f32 %v1645_v39, %v1558_v17  ;;  %v6297_v17 = vld [vmem:[#allocation50_spill] sm:$0xff]  ;;  %v6298_v39 = vld [vmem:[#allocation27_spill] sm:$0xff] }
 0x32f   : > { %1782 = vrot.lane.b32.xlu1 %v1768_v43, %s3880_s24  ;;  %v1059_v43 = vadd.f32 %v1048_v15, %v1010_v46  ;;  %v1145_v15 = vsel %vm1141_vm13, %v4872_v40, %v6278_v52  ;;  %v6286_v46 = vld [vmem:[#allocation96_spill] sm:$0xff]  ;;  %v1155_v12 = vadd.f32 %v1144_v51, %v1106_v61  ;;  %v1271_v33 = vadd.f32 %v6288_v49, %v1206_v50  ;;  %v6293_v61 = vld [vmem:[#allocation29_spill] sm:$0xff]  ;;  %v6294_v50 = vld [vmem:[#allocation46_spill] sm:$0xff] }
 0x330   : > { %v5369_v16 = vpop.permute.xlu0 %2488  ;;  %v2111_v53 = vmul.f32 %v5161_v5, %v6286_v46  ;;  %v1510_v52 = vadd.f32 %v1500_v13, %v1461_v18  ;;  %v1549_v18 = vsel %vm1547_vm3, %v6273_v41, %v6294_v50  ;;  %v1259_v41 = vsel %vm1255_vm15, %v6290_v54, %v6288_v49  ;;  %v6305_v49 = vld [vmem:[#allocation30_spill] sm:$0xff] }
 0x331   : > { %6271 = vst [vmem:[#allocation14_spill] sm:$0xff] %v5369_v16  ;;  %2124 = vrot.lane.b32.xlu0 %v2107_v9, %s3884_s13  ;;  %v1989_v9 = vmul.f32 %v5141_v21, %v5058_v19  ;;  %v1107_v47 = vadd.f32 %v1096_v14, %v1059_v43  ;;  %v1511_v14 = vadd.f32 %v6287_v7, %v1462_v37 }
 0x332   : > { %v5381_v62 = vpop.permute.xlu1 %2423  ;;  %v2113_v37 = vmul.f32 %v4956_v58, %v6286_v46 }
 0x333   : > { %1786 = vrot.lane.b32.xlu1 %v1770_v8, %s3880_s24  ;;  %v6284_v8 = vld [vmem:[#allocation61_spill] sm:$0xff]  ;;  %v1156_v3 = vadd.f32 %v1145_v15, %v1107_v47  ;;  %v1742_v15 = vsel %vm1741_vm8, %v6298_v39, %v6297_v17  ;;  %v6301_v47 = vld [vmem:[#allocation67_spill] sm:$0xff] }
 0x334   : > { %v5396_v6 = vpop.permute.xlu0 %2691  ;;  %v1193_v25 = vsel %vm1190_vm14, %v6285_v42, %v6284_v8  ;;  %v1194_v40 = vsel %vm1190_vm14, %v6284_v8, %v6281_v22  ;;  %v6296_v8 = vld [vmem:[#allocation39_spill] sm:$0xff] }
 0x335   : > { %6279 = vst [vmem:[#allocation40_spill] sm:$0xff] %v5396_v6  ;;  %2128 = vrot.lane.b32.xlu0 %v2109_v24, %s3884_s13  ;;  %v1204_v43 = vadd.f32 %v1193_v25, %v1155_v12  ;;  %v1355_v19 = vsel %vm1352_vm0, %v6296_v8, %v6295_v45  ;;  %v1205_v42 = vadd.f32 %v1194_v40, %v1156_v3  ;;  %v6302_v12 = vld [vmem:[#allocation41_spill] sm:$0xff]  ;;  %v6304_v39 = vld [vmem:[#allocation19_spill] sm:$0xff] }
 0x336   : > { %v5409_v30 = vpop.permute.xlu1 %2427  ;;  %v1452_v38 = vsel %vm1449_vm1, %v6302_v12, %v6301_v47  ;;  %v5475_v54 = vsel %vm1903_vm12, %v6305_v49, %v6304_v39  ;;  %v6307_v12 = vld [vmem:[#allocation43_spill] sm:$0xff] }
 0x337   : > { %2005 = vrot.lane.b32.xlu1 %v1989_v9, %s3883_s1  ;;  %v6292_v9 = vld [vmem:[#allocation28_spill] sm:$0xff]  ;;  %v1269_v25 = vadd.f32 %v1258_v20, %v1204_v43  ;;  %v6303_v20 = vld [vmem:[#allocation62_spill] sm:$0xff]  ;;  %v1752_v43 = vadd.f32 %v1742_v15, %v1655_v31  ;;  %v1270_v15 = vadd.f32 %v1259_v41, %v1205_v42 }
 0x338   : > { %v5427_v24 = vpop.permute.xlu0 %2537  ;;  %v1839_v22 = vsel %vm1838_vm7, %v6293_v61, %v6292_v9  ;;  %v1993_v61 = vmul.f32 %v5325_v57, %v5102_v29  ;;  %v6309_v31 = vld [vmem:[#allocation48_spill] sm:$0xff] }
 0x339   : > { %6289 = vst [vmem:[#allocation55_spill] sm:$0xff] %v5427_v24  ;;  %2132 = vrot.lane.b32.xlu0 %v2111_v53, %s3884_s13  ;;  %v6299_v53 = vld [vmem:[#allocation60_spill] sm:$0xff]  ;;  %v1366_v40 = vadd.f32 %v1355_v19, %v1269_v25 }
 0x33a   : > { %v5439_v51 = vpop.permute.xlu1 %2474  ;;  %v1368_v7 = vadd.f32 %v6299_v53, %v1271_v33  ;;  %v1560_v33 = vadd.f32 %v6294_v50, %v1511_v14  ;;  %v1646_v50 = vsel %vm1644_vm4, %v6282_v4, %v6309_v31 }
 0x33b   : > { %2009 = vrot.lane.b32.xlu1 %v1991_v11, %s3883_s1  ;;  %v1559_v11 = vadd.f32 %v1549_v18, %v1510_v52  ;;  %v1356_v52 = vsel %vm1352_vm0, %v6295_v45, %v6299_v53  ;;  %v6306_v18 = vld [vmem:[#allocation69_spill] sm:$0xff]  ;;  %v1463_v25 = vadd.f32 %v1452_v38, %v1366_v40  ;;  %v1453_v45 = vsel %vm1449_vm1, %v6301_v47, %v6303_v20  ;;  %v6312_v53 = vld [vmem:[#allocation70_spill] sm:$0xff] }
 0x33c   : > { %v5457_v13 = vpop.permute.xlu0 %2541  ;;  %v1465_v3 = vadd.f32 %v6303_v20, %v1368_v7  ;;  %v1501_v19 = vsel %vm1498_vm2, %v6307_v12, %v6306_v18  ;;  %v6310_v7 = vld [vmem:[#allocation64_spill] sm:$0xff]  ;;  %v6313_v12 = vld [vmem:[#allocation45_spill] sm:$0xff]  ;;  %v1367_v42 = vadd.f32 %v1356_v52, %v1270_v15  ;;  %v1657_v38 = vadd.f32 %v6309_v31, %v1560_v33 }
 0x33d   : > { %6300 = vst [vmem:[#allocation34_spill] sm:$0xff] %v5457_v13  ;;  %2136 = vrot.lane.b32.xlu0 %v2113_v37, %s3884_s13  ;;  %v6308_v37 = vld [vmem:[#allocation103_spill] sm:$0xff]  ;;  %v1656_v16 = vadd.f32 %v1646_v50, %v1559_v11  ;;  %v1512_v41 = vadd.f32 %v1501_v19, %v1463_v25  ;;  %v1849_v40 = vadd.f32 %v1839_v22, %v1752_v43  ;;  %v6314_v11 = vld [vmem:[#allocation66_spill] sm:$0xff]  ;;  %v6315_v50 = vld [vmem:[#allocation72_spill] sm:$0xff]  ;;  %vm2079_vm0 = vcmask 539648  }
 0x33e   : > { %v5470_v8 = vpop.permute.xlu1 %2478  ;;  %v2224_v14 = vmul.f32 %v5108_v27, %v6308_v37  ;;  %v1514_v39 = vadd.f32 %v6310_v7, %v1465_v3  ;;  %v5498_v27 = vld [vmem:[#allocation2 + $0x30] sm:$0xff]  ;;  %v1502_v47 = vsel %vm1498_vm2, %v6306_v18, %v6310_v7  ;;  %v2226_v52 = vmul.f32 %v5047_v28, %v6308_v37  ;;  %v6317_v19 = vld [vmem:[#allocation32_spill] sm:$0xff]  ;;  %v6318_v33 = vld [vmem:[#allocation33_spill] sm:$0xff] }
 0x33f   : > { %2013 = vrot.lane.b32.xlu1 %v1993_v61, %s3883_s1  ;;  %v1550_v61 = vsel %vm1547_vm3, %v6313_v12, %v6312_v53  ;;  %v1995_v4 = vmul.f32 %v5498_v27, %v5102_v29  ;;  %v6316_v12 = vld [vmem:[#allocation47_spill] sm:$0xff]  ;;  %v1963_v22 = vsel %vm1962_vm9, %v6318_v33, %v6317_v19  ;;  %v6319_v43 = vld [vmem:[#allocation26_spill] sm:$0xff]  ;;  %v1464_v18 = vadd.f32 %v1453_v45, %v1367_v42  ;;  %v2627_v15 = vld [vmem:[%s4017_s22] sm:$0xff]  ;;  %s3898_s22 = smov 39  }
 0x340   : > { %v5490_v6 = vpop.permute.xlu0 %2545  ;;  %v1563_v20 = vadd.f32 %v6314_v11, %v1514_v39  ;;  %v1647_v29 = vsel %vm1644_vm4, %v6316_v12, %v6315_v50  ;;  %v1561_v31 = vadd.f32 %v1550_v61, %v1512_v41  ;;  %v6320_v7 = vld [vmem:[#allocation53_spill] sm:$0xff]  ;;  %v6321_v39 = vld [vmem:[#allocation31_spill] sm:$0xff]  ;;  %v1551_v28 = vsel %vm1547_vm3, %v6312_v53, %v6314_v11  ;;  %v6322_v12 = vld [vmem:[#allocation68_spill] sm:$0xff] }
 0x341   : > { %6311 = vst [vmem:[#allocation22_spill] sm:$0xff] %v5490_v6  ;;  %2241 = vrot.lane.b32.xlu0 %v2224_v14, %s3885_s28  ;;  %v1743_v14 = vsel %vm1741_vm8, %v6297_v17, %v6319_v43  ;;  %v1513_v13 = vadd.f32 %v1502_v47, %v1464_v18  ;;  %v1754_v45 = vadd.f32 %v6319_v43, %v1657_v38  ;;  %v6324_v53 = vld [vmem:[#allocation52_spill] sm:$0xff]  ;;  %v6325_v38 = vld [vmem:[#allocation71_spill] sm:$0xff]  ;;  %vm2196_vm1 = vcmask 531456  }
 0x342   : > { %v5504_v3 = vpop.permute.xlu1 %2482  ;;  %v1660_v6 = vadd.f32 %v6322_v12, %v1563_v20  ;;  %v1753_v33 = vadd.f32 %v1743_v14, %v1656_v16  ;;  %v1658_v17 = vadd.f32 %v1647_v29, %v1561_v31  ;;  %v1648_v41 = vsel %vm1644_vm4, %v6315_v50, %v6322_v12  ;;  %v6327_v50 = vld [vmem:[#allocation76_spill] sm:$0xff]  ;;  %v6329_v12 = vld [vmem:[#allocation73_spill] sm:$0xff] }
 0x343   : > { %2017 = vrot.lane.b32.xlu1 %v1995_v4, %s3883_s1  ;;  %v1904_v4 = vsel %vm1903_vm12, %v6321_v39, %v6320_v7  ;;  %v6323_v39 = vld [vmem:[#allocation74_spill] sm:$0xff]  ;;  %v2228_v16 = vmul.f32 %v5161_v5, %v5234_v32  ;;  %v1840_v47 = vsel %vm1838_vm7, %v6292_v9, %v6324_v53  ;;  %v1562_v11 = vadd.f32 %v1551_v28, %v1513_v13 }
 0x344   : > { %v5523_v25 = vpop.permute.xlu0 %2592  ;;  %v1916_v61 = vadd.f32 %v1904_v4, %v1849_v40  ;;  %v1757_v24 = vadd.f32 %v6323_v39, %v1660_v6  ;;  %v6326_v40 = vld [vmem:[#allocation54_spill] sm:$0xff]  ;;  %v1745_v6 = vsel %vm1741_vm8, %v6325_v38, %v6323_v39  ;;  %v1850_v14 = vadd.f32 %v1840_v47, %v1753_v33  ;;  %v6334_v47 = vld [vmem:[#allocation89_spill] sm:$0xff] }
 0x345   : > { %2245 = vrot.lane.b32.xlu0 %v2226_v52, %s3885_s28  ;;  %v1744_v20 = vsel %vm1741_vm8, %v6326_v40, %v6325_v38  ;;  %v6328_v52 = vld [vmem:[#allocation49_spill] sm:$0xff]  ;;  %v2106_v9 = vmul.f32 %v5141_v21, %v5156_v34  ;;  %v1659_v13 = vadd.f32 %v1648_v41, %v1562_v11  ;;  %v1851_v31 = vadd.f32 %v6324_v53, %v1754_v45 }
 0x346   : > { %v5534_v42 = vpop.permute.xlu1 %2486  ;;  %v1841_v43 = vsel %vm1838_vm7, %v6328_v52, %v6327_v50  ;;  %v1755_v18 = vadd.f32 %v1744_v20, %v1658_v17  ;;  %v1905_v28 = vsel %vm1903_vm12, %v6320_v7, %v6305_v49  ;;  %v1854_v39 = vadd.f32 %v6329_v12, %v1757_v24  ;;  %v6332_v49 = vld [vmem:[#allocation77_spill] sm:$0xff]  ;;  %v6333_v7 = vld [vmem:[#allocation90_spill] sm:$0xff]  ;;  %v6335_v20 = vld [vmem:[#allocation20_spill] sm:$0xff] }
 0x347   : > { %2631 = vperm.xlu1 %3765, %v2627_v15   ;;  %v1975_v15 = vadd.f32 %v1963_v22, %v1916_v61  ;;  %v1842_v33 = vsel %vm1838_vm7, %v6327_v50, %v6329_v12  ;;  %v2230_v17 = vmul.f32 %v4956_v58, %v5234_v32  ;;  %v1756_v41 = vadd.f32 %v1745_v6, %v1659_v13  ;;  %v6330_v22 = vld [vmem:[#allocation78_spill] sm:$0xff]  ;;  %v6331_v61 = vld [vmem:[#allocation51_spill] sm:$0xff] }
 0x348   : > { %v5548_v29 = vpop.permute.xlu0 %2596  ;;  %v1852_v45 = vadd.f32 %v1841_v43, %v1755_v18  ;;  %vm2313_vm8 = vcmask 523264   ;;  %v1908_v24 = vsel %vm1903_vm12, %v6330_v22, %v6332_v49  ;;  %v2080_v11 = vsel %vm2079_vm0, %v6334_v47, %v6333_v7  ;;  %v6336_v18 = vld [vmem:[#allocation79_spill] sm:$0xff]  ;;  %v6337_v12 = vld [vmem:[#allocation82_spill] sm:$0xff] }
 0x349   : > { %2249 = vrot.lane.b32.xlu0 %v2228_v16, %s3885_s28  ;;  %v1907_v16 = vsel %vm1903_vm12, %v6331_v61, %v6330_v22  ;;  %v1917_v38 = vadd.f32 %v1905_v28, %v1850_v14  ;;  %v2108_v58 = vmul.f32 %v5228_v1, %v5156_v34  ;;  %v1853_v40 = vadd.f32 %v1842_v33, %v1756_v41  ;;  %v6338_v28 = vld [vmem:[#allocation80_spill] sm:$0xff]  ;;  %v6341_v41 = vld [vmem:[#allocation75_spill] sm:$0xff] }
 0x34a   : > { %v5560_v4 = vpop.permute.xlu1 %2686  ;;  %v1909_v6 = vsel %vm1903_vm12, %v6332_v49, %v6335_v20  ;;  %v1918_v50 = vadd.f32 %v5475_v54, %v1851_v31  ;;  %v2092_v52 = vadd.f32 %v2080_v11, %v1975_v15  ;;  %v1966_v14 = vsel %vm1962_vm9, %v6337_v12, %v6336_v18  ;;  %v6340_v31 = vld [vmem:[#allocation81_spill] sm:$0xff]  ;;  %v6342_v22 = vld [vmem:[#allocation91_spill] sm:$0xff]  ;;  %v6343_v61 = vld [vmem:[#allocation12_spill] sm:$0xff] }
 0x34b   : > { %2122 = vrot.lane.b32.xlu1 %v2106_v9, %s3884_s13  ;;  %v1919_v9 = vadd.f32 %v1907_v16, %v1852_v45  ;;  %v1921_v13 = vadd.f32 %v1909_v6, %v1854_v39  ;;  %vm2372_vm7 = vcmask 392192   ;;  %v1920_v34 = vadd.f32 %v1908_v24, %v1853_v40  ;;  %v6344_v24 = vld [vmem:[#allocation98_spill] sm:$0xff]  ;;  %v6346_v12 = vld [vmem:[#allocation85_spill] sm:$0xff] }
 0x34c   : > { %v5575_v53 = vpop.permute.xlu0 %2600  ;;  %v1964_v33 = vsel %vm1962_vm9, %v6317_v19, %v6338_v28  ;;  %vm2431_vm12 = vcmask 384000   ;;  %v1965_v45 = vsel %vm1962_vm9, %v6338_v28, %v6341_v41  ;;  %v2197_v16 = vsel %vm2196_vm1, %v6343_v61, %v6342_v22  ;;  %v6353_v41 = vld [vmem:[#allocation105_spill] sm:$0xff] }
 0x34d   : > { %2253 = vrot.lane.b32.xlu0 %v2230_v17, %s3885_s28  ;;  %v6339_v17 = vld [vmem:[#allocation84_spill] sm:$0xff]  ;;  %v1976_v19 = vadd.f32 %v1964_v33, %v1917_v38  ;;  %v2110_v49 = vmul.f32 %v5325_v57, %v6286_v46  ;;  %v1978_v47 = vadd.f32 %v1966_v14, %v1919_v9  ;;  %v1977_v11 = vadd.f32 %v1965_v45, %v1918_v50  ;;  %v6347_v38 = vld [vmem:[#allocation87_spill] sm:$0xff] }
 0x34e   : > { %v5590_v43 = vpop.permute.xlu1 %2533  ;;  %v1967_v54 = vsel %vm1962_vm9, %v6336_v18, %v6339_v17  ;;  %v1968_v15 = vsel %vm1962_vm9, %v6339_v17, %v6340_v31  ;;  %v6345_v18 = vld [vmem:[#allocation15_spill] sm:$0xff]  ;;  %vm2549_vm9 = vcmask 367616   ;;  %v6352_v31 = vld [vmem:[#allocation101_spill] sm:$0xff]  ;;  %v6354_v45 = vld [vmem:[#allocation104_spill] sm:$0xff] }
 0x34f   : > { %2126 = vrot.lane.b32.xlu1 %v2108_v58, %s3884_s13  ;;  %v2209_v58 = vadd.f32 %v2197_v16, %v2092_v52  ;;  %v1979_v20 = vadd.f32 %v1967_v54, %v1920_v34  ;;  %v1980_v6 = vadd.f32 %v1968_v15, %v1921_v13  ;;  %v2083_v28 = vsel %vm2079_vm0, %v6346_v12, %v6345_v18  ;;  %v6348_v17 = vld [vmem:[#allocation83_spill] sm:$0xff]  ;;  %v6349_v52 = vld [vmem:[#allocation92_spill] sm:$0xff]  ;;  %v6351_v54 = vld [vmem:[#allocation94_spill] sm:$0xff] }
 0x350   : > { %v5605_v39 = vpop.permute.xlu0 %2604  ;;  %v2084_v33 = vsel %vm2079_vm0, %v6345_v18, %v6347_v38  ;;  %v2081_v50 = vsel %vm2079_vm0, %v6333_v7, %v6348_v17  ;;  %v2082_v9 = vsel %vm2079_vm0, %v6348_v17, %v6349_v52  ;;  %v6350_v14 = vld [vmem:[#allocation11_spill] sm:$0xff]  ;;  %v2200_v15 = vsel %vm2196_vm1, %v6352_v31, %v6351_v54  ;;  %v6355_v52 = vld [vmem:[#allocation17_spill] sm:$0xff]  ;;  %v6356_v31 = vld [vmem:[#allocation18_spill] sm:$0xff] }
 0x351   : > { %2666 = vrot.lane.b32.xlu0 %v6344_v24, %s3898_s22  ;;  %v2085_v13 = vsel %vm2079_vm0, %v6347_v38, %v6350_v14  ;;  %v2314_v61 = vsel %vm2313_vm8, %v6354_v45, %v6353_v41  ;;  %v2093_v7 = vadd.f32 %v2081_v50, %v1976_v19  ;;  %v2112_v16 = vmul.f32 %v5498_v27, %v6286_v46  ;;  %v6357_v45 = vld [vmem:[#allocation95_spill] sm:$0xff]  ;;  %v6358_v46 = vld [vmem:[#allocation93_spill] sm:$0xff] }
 0x352   : > { %v5617_v40 = vpop.permute.xlu1 %2535  ;;  %v2096_v24 = vadd.f32 %v2084_v33, %v1979_v20  ;;  %v2094_v18 = vadd.f32 %v2082_v9, %v1977_v11  ;;  %v2326_v12 = vadd.f32 %v2314_v61, %v2209_v58  ;;  %v2097_v17 = vadd.f32 %v2085_v13, %v1980_v6  ;;  %v6359_v58 = vld [vmem:[#allocation108_spill] sm:$0xff]  ;;  %v6361_v33 = vld [vmem:[#allocation102_spill] sm:$0xff] }
 0x353   : > { %2130 = vrot.lane.b32.xlu1 %v2110_v49, %s3884_s13  ;;  %v2095_v49 = vadd.f32 %v2083_v28, %v1978_v47  ;;  %v2198_v14 = vsel %vm2196_vm1, %v6342_v22, %v6355_v52  ;;  %v2201_v5 = vsel %vm2196_vm1, %v6351_v54, %v6356_v31  ;;  %v2202_v19 = vsel %vm2196_vm1, %v6356_v31, %v6357_v45  ;;  %v6360_v20 = vld [vmem:[#allocation100_spill] sm:$0xff]  ;;  %v6363_v45 = vld [vmem:[#allocation99_spill] sm:$0xff] }
 0x354   : > { %v5635_v34 = vpop.permute.xlu0 %2706  ;;  %v2199_v47 = vsel %vm2196_vm1, %v6355_v52, %v6358_v46  ;;  %v2317_v6 = vsel %vm2313_vm8, %v6360_v20, %v6359_v58  ;;  %v2223_v22 = vmul.f32 %v5141_v21, %v6308_v37  ;;  %v2318_v50 = vsel %vm2313_vm8, %v6359_v58, %v6361_v33  ;;  %v6362_v13 = vld [vmem:[#allocation16_spill] sm:$0xff] }
 0x355   : > { %v2212_v11 = vadd.f32 %v2200_v15, %v2095_v49  ;;  %v2319_v9 = vsel %vm2313_vm8, %v6361_v33, %v5215_v63  ;;  %v2373_v54 = vsel %vm2372_vm7, %v5251_v0, %v6362_v13  ;;  %v2210_v15 = vadd.f32 %v2198_v14, %v2093_v7 }
 0x356   : > { %v5645_v38 = vpop.permute.xlu1 %2539  ;;  %v2213_v61 = vadd.f32 %v2201_v5, %v2096_v24  ;;  %v2211_v49 = vadd.f32 %v2199_v47, %v2094_v18  ;;  %v2385_v52 = vadd.f32 %v2373_v54, %v2326_v12  ;;  %v2315_v46 = vsel %vm2313_vm8, %v6353_v41, %v6363_v45  ;;  %v6364_v5 = vld [vmem:[#allocation106_spill] sm:$0xff] }
 0x357   : > { %2134 = vrot.lane.b32.xlu1 %v2112_v16, %s3884_s13  ;;  %v2214_v16 = vadd.f32 %v2202_v19, %v2097_v17  ;;  %v2432_v58 = vsel %vm2431_vm12, %v5322_v59, %v5223_v44  ;;  %v2225_v63 = vmul.f32 %v5228_v1, %v6308_v37  ;;  %vm2608_vm0 = vcmask 359424   ;;  %v6365_v17 = vld [vmem:[#allocation107_spill] sm:$0xff] }
 0x358   : > { %v5665_v28 = vpop.permute.xlu0 %2710  ;;  %v2316_v0 = vsel %vm2313_vm8, %v6363_v45, %v6364_v5  ;;  %v2329_v7 = vadd.f32 %v2317_v6, %v2212_v11  ;;  %v2330_v24 = vadd.f32 %v2318_v50, %v2213_v61  ;;  %v2327_v41 = vadd.f32 %v2315_v46, %v2210_v15  ;;  %v6367_v50 = vld [vmem:[#allocation109_spill] sm:$0xff] }
 0x359   : > { %v2331_v18 = vadd.f32 %v2319_v9, %v2214_v16  ;;  %v2376_v59 = vsel %vm2372_vm7, %v5285_v55, %v6365_v17  ;;  %v2377_v14 = vsel %vm2372_vm7, %v6365_v17, %v5302_v48  ;;  %v2491_v37 = vsel %vm2490_vm6, %v5439_v51, %v5293_v26 }
 0x35a   : > { %v5676_v31 = vpop.permute.xlu1 %2543  ;;  %v2328_v19 = vadd.f32 %v2316_v0, %v2211_v49  ;;  %v2444_v47 = vadd.f32 %v2432_v58, %v2385_v52  ;;  %v2227_v20 = vmul.f32 %v5325_v57, %v5234_v32  ;;  %v2229_v6 = vmul.f32 %v5498_v27, %v5234_v32 }
 0x35b   : > { %2239 = vrot.lane.b32.xlu1 %v2223_v22, %s3885_s28  ;;  %v2374_v55 = vsel %vm2372_vm7, %v6362_v13, %v5268_v23  ;;  %v6366_v22 = vld [vmem:[#allocation21_spill] sm:$0xff]  ;;  %v2378_v51 = vsel %vm2372_vm7, %v5302_v48, %v6367_v50  ;;  %v2550_v9 = vsel %vm2549_vm9, %v5590_v43, %v5617_v40  ;;  %v2388_v54 = vadd.f32 %v2376_v59, %v2329_v7  ;;  %v6368_v7 = vld [vmem:[#allocation55_spill] sm:$0xff]  ;;  %v6369_v59 = vld [vmem:[#allocation34_spill] sm:$0xff] }
 0x35c   : > { %v5690_v12 = vpop.permute.xlu0 %1214  ;;  %v2375_v33 = vsel %vm2372_vm7, %v5268_v23, %v6366_v22  ;;  %v2389_v32 = vadd.f32 %v2377_v14, %v2330_v24  ;;  %v2433_v13 = vsel %vm2431_vm12, %v5223_v44, %v5351_v60  ;;  %v2503_v15 = vadd.f32 %v2491_v37, %v2444_v47  ;;  %v6371_v50 = vld [vmem:[#allocation22_spill] sm:$0xff] }
 0x35d   : > { %v2386_v23 = vadd.f32 %v2374_v55, %v2327_v41  ;;  %v2434_v48 = vsel %vm2431_vm12, %v5351_v60, %v5242_v36  ;;  %v2435_v43 = vsel %vm2431_vm12, %v5381_v62, %v5259_v2  ;;  %v2436_v16 = vsel %vm2431_vm12, %v5259_v2, %v5409_v30  ;;  %v6370_v55 = vld [vmem:[#allocation14_spill] sm:$0xff] }
 0x35e   : > { %v2548_v11 = vpop.permute.xlu1 %2547  ;;  %v2387_v49 = vadd.f32 %v2375_v33, %v2328_v19  ;;  %v2390_v52 = vadd.f32 %v2378_v51, %v2331_v18  ;;  %v2437_v44 = vsel %vm2431_vm12, %v5409_v30, %v5276_v10  ;;  %v2562_v45 = vadd.f32 %v2550_v9, %v2503_v15 }
 0x35f   : > { %2243 = vrot.lane.b32.xlu1 %v2225_v63, %s3885_s28  ;;  %v2445_v58 = vadd.f32 %v2433_v13, %v2386_v23  ;;  %v2492_v36 = vsel %vm2490_vm6, %v5293_v26, %v5470_v8  ;;  %v2493_v60 = vsel %vm2490_vm6, %v5470_v8, %v5312_v56  ;;  %v2447_v63 = vadd.f32 %v2435_v43, %v2388_v54 }
 0x360   : > { %v5721_v61 = vpop.permute.xlu0 %1294  ;;  %v2446_v62 = vadd.f32 %v2434_v48, %v2387_v49  ;;  %v2448_v5 = vadd.f32 %v2436_v16, %v2389_v32  ;;  %v2449_v0 = vadd.f32 %v2437_v44, %v2390_v52  ;;  %v2494_v26 = vsel %vm2490_vm6, %v5504_v3, %v5339_v35 }
 0x361   : > { %v2551_v56 = vsel %vm2549_vm9, %v5617_v40, %v6368_v7  ;;  %v2552_v8 = vsel %vm2549_vm9, %v6368_v7, %v5645_v38  ;;  %v2495_v18 = vsel %vm2490_vm6, %v5339_v35, %v5534_v42  ;;  %v2553_v3 = vsel %vm2549_vm9, %v6369_v59, %v5676_v31 }
 0x362   : > { %v2595_v46 = vpop.permute.xlu1 %2594  ;;  %v2505_v24 = vadd.f32 %v2493_v60, %v2446_v62  ;;  %v1222_v14 = vmul.f32 %v5498_v27, %v5690_v12  ;;  %v2506_v37 = vadd.f32 %v2494_v26, %v2447_v63  ;;  %v2496_v22 = vsel %vm2490_vm6, %v5534_v42, %v6370_v55 }
 0x363   : > { %v2609_v2 = vsel %vm2608_vm0, %v5523_v25, %v2595_v46  ;;  %2247 = vrot.lane.b32.xlu1 %v2227_v20, %s3885_s28  ;;  %v2504_v25 = vadd.f32 %v2492_v36, %v2445_v58  ;;  %v2610_v40 = vsel %vm2608_vm0, %v2595_v46, %v5548_v29  ;;  %v2507_v33 = vadd.f32 %v2495_v18, %v2448_v5  ;;  %v6373_v46 = vld [vmem:[#allocation88_spill] sm:$0xff] }
 0x364   : > { %v2621_v10 = vadd.f32 %v2609_v2, %v2562_v45  ;;  %v5744_v30 = vpop.permute.xlu0 %1298  ;;  %v2564_v19 = vadd.f32 %v2552_v8, %v2505_v24  ;;  %v2554_v27 = vsel %vm2549_vm9, %v5676_v31, %v6371_v50  ;;  %v2555_v13 = vsel %vm2549_vm9, %v6371_v50, %v2548_v11  ;;  %v6372_v31 = vld [vmem:[#allocation86_spill] sm:$0xff]  ;;  %v6374_v58 = vld [vmem:[#allocation40_spill] sm:$0xff] }
 0x365   : > { %v2563_v35 = vadd.f32 %v2551_v56, %v2504_v25  ;;  %v2508_v23 = vadd.f32 %v2496_v22, %v2449_v0  ;;  %v2566_v48 = vadd.f32 %v2554_v27, %v2507_v33  ;;  %vm2712_vm6 = vcmask 146432  }
 0x366   : > { %v2694_v41 = vadd.f32 %v5560_v4, %v2621_v10  ;;  %v2599_v17 = vpop.permute.xlu1 %2598 }
 0x367   : > { %v2611_v38 = vsel %vm2608_vm0, %v5548_v29, %v2599_v17  ;;  %2251 = vrot.lane.b32.xlu1 %v2229_v6, %s3885_s28  ;;  %v2565_v29 = vadd.f32 %v2553_v3, %v2506_v37  ;;  %v2622_v9 = vadd.f32 %v2610_v40, %v2563_v35  ;;  %v2567_v49 = vadd.f32 %v2555_v13, %v2508_v23 }
 0x368   : > { %v2700_v47 = vmax.f32 %v2694_v41, 0.0  ;;  %v5769_v20 = vpop.permute.xlu0 %1302  ;;  %v2623_v54 = vadd.f32 %v2611_v38, %v2564_v19  ;;  %v6375_v19 = vld [vmem:[#allocation97_spill] sm:$0xff] }
 0x369   : > { %v1319_v51 = vadd.f32 %v5769_v20, %v1222_v14  ;;  %v2695_v11 = vadd.f32 %v5560_v4, %v2622_v9 }
 0x36a   : > { %v5779_v6 = vmul.f32 %v5635_v34, %v2700_v47  ;;  %v2603_v32 = vpop.permute.xlu1 %2602 }
 0x36b   : > { %v2612_v42 = vsel %vm2608_vm0, %v5575_v53, %v2603_v32  ;;  %v2613_v15 = vsel %vm2608_vm0, %v2603_v32, %v5605_v39  ;;  %2664 = vrot.lane.b32.xlu1 %v6372_v31, %s3898_s22  ;;  %v2696_v53 = vadd.f32 %v5560_v4, %v2623_v54  ;;  %v2701_v63 = vmax.f32 %v2695_v11, 0.0 }
 0x36c   : > { %v2624_v43 = vadd.f32 %v2612_v42, %v2565_v29  ;;  %2730 = vrot.lane.b32.xlu0 %v5779_v6, %s3899_s6  ;;  %v5791_v16 = vpop.permute.xlu0 %1391  ;;  %v2625_v52 = vadd.f32 %v2613_v15, %v2566_v48  ;;  %v6376_v29 = vld [vmem:[#allocation13_spill] sm:$0xff] }
 0x36d   : > { %v2702_v5 = vmax.f32 %v2696_v53, 0.0  ;;  %v1221_v9 = vmul.f32 %v6376_v29, %v5690_v12 }
 0x36e   : > { %v2607_v44 = vpop.permute.xlu1 %2606  ;;  %v2697_v36 = vadd.f32 %v6374_v58, %v2624_v43  ;;  %v2698_v62 = vadd.f32 %v6374_v58, %v2625_v52 }
 0x36f   : > { %v2614_v45 = vsel %vm2608_vm0, %v5605_v39, %v2607_v44  ;;  %2668 = vrot.lane.b32.xlu1 %v6373_v46, %s3898_s22 }
 0x370   : > { %v2626_v60 = vadd.f32 %v2614_v45, %v2567_v49  ;;  %v1396_v2 = vpop.permute.xlu0 %1395  ;;  %v2703_v26 = vmax.f32 %v2697_v36, 0.0  ;;  %v2704_v24 = vmax.f32 %v2698_v62, 0.0 }
 0x372   : > { %v2709_v10 = vpop.permute.xlu1 %2708  ;;  %v2699_v39 = vadd.f32 %v6374_v58, %v2626_v60  ;;  %v5813_v41 = vmul.f32 %v5635_v34, %v2703_v26 }
 0x373   : > { %v2713_v4 = vsel %vm2712_vm6, %v5635_v34, %v2709_v10  ;;  %v2714_v0 = vsel %vm2712_vm6, %v2709_v10, %v5665_v28 }
 0x374   : > { %v5804_v7 = vmul.f32 %v2713_v4, %v2701_v63  ;;  %v5806_v56 = vmul.f32 %v2714_v0, %v2702_v5  ;;  %v1400_v8 = vpop.permute.xlu0 %1399  ;;  %v2705_v28 = vmax.f32 %v2699_v39, 0.0  ;;  %v5815_v17 = vmul.f32 %v2713_v4, %v2704_v24 }
 0x375   : > { %v1416_v25 = vadd.f32 %v1400_v8, %v1319_v51  ;;  %v1220_v51 = vmul.f32 %v5325_v57, %v5690_v12 }
 0x376   : > { %v1210_v18 = vpop.permute.xlu1 %1209  ;;  %2732 = vrot.lane.b32.xlu1 %v5804_v7, %s3899_s6  ;;  %2734 = vrot.lane.b32.xlu0 %v5806_v56, %s3899_s6  ;;  %v5824_v38 = vmul.f32 %v2714_v0, %v2705_v28 }
 0x377   : > { %v1217_v3 = vmul.f32 %v5141_v21, %v1210_v18  ;;  %v1219_v35 = vmul.f32 %v5228_v1, %v1210_v18  ;;  %v1218_v47 = vmul.f32 %v6375_v19, %v1210_v18 }
 0x378   : > { %v1587_v59 = vpop.permute.xlu0 %1586 }
 0x37a   : > { %v1293_v40 = vpop.permute.xlu1 %1292  ;;  %2736 = vrot.lane.b32.xlu1 %v5813_v41, %s3899_s6  ;;  %2738 = vrot.lane.b32.xlu0 %v5815_v17, %s3899_s6 }
 0x37b   : > { %v1304_v14 = vsel %vm946_vm10, %v1293_v40, %v5721_v61 }
 0x37c   : > { %v1314_v34 = vadd.f32 %v1304_v14, %v1217_v3  ;;  %v1591_v37 = vpop.permute.xlu0 %1590 }
 0x37e   : > { %v1297_v55 = vpop.permute.xlu1 %1296  ;;  %2740 = vrot.lane.b32.xlu1 %v5824_v38, %s3899_s6 }
 0x37f   : > { %v1305_v21 = vsel %vm946_vm10, %v5721_v61, %v1297_v55  ;;  %v1316_v22 = vadd.f32 %v1297_v55, %v1219_v35 }
 0x380   : > { %v1315_v33 = vadd.f32 %v1305_v21, %v1218_v47  ;;  %v1595_v50 = vpop.permute.xlu0 %1594 }
 0x381   : > { %v1611_v27 = vadd.f32 %v1595_v50, %v1416_v25 }
 0x382   : > { %v1301_v1 = vpop.permute.xlu1 %1300 }
 0x383   : > { %v1306_v54 = vsel %vm946_vm10, %v5744_v30, %v1301_v1  ;;  %v1307_v32 = vsel %vm946_vm10, %v1301_v1, %v5769_v20  ;;  %vm2670_vm10 = vcmask 318464  }
 0x384   : > { %v1317_v13 = vadd.f32 %v1306_v54, %v1220_v51  ;;  %v1318_v42 = vadd.f32 %v1307_v32, %v1221_v9  ;;  %v5840_v61 = vpop.permute.xlu0 %1683 }
 0x386   : > { %v1390_v15 = vpop.permute.xlu1 %1389 }
 0x387   : > { %v1401_v31 = vsel %vm995_vm11, %v1390_v15, %v5791_v16 }
 0x388   : > { %v1411_v23 = vadd.f32 %v1401_v31, %v1314_v34  ;;  %v1688_v57 = vpop.permute.xlu0 %1687 }
 0x38a   : > { %v1394_v48 = vpop.permute.xlu1 %1393 }
 0x38b   : > { %v1402_v12 = vsel %vm995_vm11, %v5791_v16, %v1394_v48  ;;  %v1413_v43 = vadd.f32 %v1394_v48, %v1316_v22 }
 0x38c   : > { %v1412_v49 = vadd.f32 %v1402_v12, %v1315_v33  ;;  %v1692_v30 = vpop.permute.xlu0 %1691 }
 0x38d   : > { %v5846_v11 = vadd.f32 %v1692_v30, %v1611_v27 }
 0x38e   : > { %v1398_v20 = vpop.permute.xlu1 %1397 }
 0x38f   : > { %v1403_v53 = vsel %vm995_vm11, %v1396_v2, %v1398_v20  ;;  %v1404_v52 = vsel %vm995_vm11, %v1398_v20, %v1400_v8  ;;  %vm2742_vm11 = vcmask 171008  }
 0x390   : > { %v1414_v44 = vadd.f32 %v1403_v53, %v1317_v13  ;;  %v1415_v45 = vadd.f32 %v1404_v52, %v1318_v42  ;;  %v1781_v46 = vpop.permute.xlu0 %1780 }
 0x392   : > { %v1585_v58 = vpop.permute.xlu1 %1584 }
 0x393   : > { %v1596_v36 = vsel %vm1141_vm13, %v1585_v58, %v1587_v59 }
 0x394   : > { %v1606_v60 = vadd.f32 %v1596_v36, %v1411_v23  ;;  %v1785_v62 = vpop.permute.xlu0 %1784 }
 0x396   : > { %v1589_v63 = vpop.permute.xlu1 %1588 }
 0x397   : > { %v1597_v16 = vsel %vm1141_vm13, %v1587_v59, %v1589_v63  ;;  %v1608_v5 = vadd.f32 %v1589_v63, %v1413_v43 }
 0x398   : > { %v1607_v10 = vadd.f32 %v1597_v16, %v1412_v49  ;;  %v5852_v4 = vpop.permute.xlu0 %1788 }
 0x39a   : > { %v1593_v0 = vpop.permute.xlu1 %1592 }
 0x39b   : > { %v1598_v2 = vsel %vm1141_vm13, %v1591_v37, %v1593_v0  ;;  %v1599_v26 = vsel %vm1141_vm13, %v1593_v0, %v1595_v50  ;;  %vm2777_vm13 = vcmask 728064  }
 0x39c   : > { %v1609_v39 = vadd.f32 %v1598_v2, %v1414_v44  ;;  %v1610_v8 = vadd.f32 %v1599_v26, %v1415_v45  ;;  %v2008_v25 = vpop.permute.xlu0 %2007 }
 0x39e   : > { %v1682_v24 = vpop.permute.xlu1 %1681 }
 0x39f   : > { %v1693_v48 = vsel %vm1190_vm14, %v1682_v24, %v5840_v61 }
 0x3a0   : > { %v2012_v18 = vpop.permute.xlu0 %2011 }
 0x3a2   : > { %v1686_v28 = vpop.permute.xlu1 %1685 }
 0x3a3   : > { %v1694_v3 = vsel %vm1190_vm14, %v5840_v61, %v1686_v28  ;;  %v1705_v40 = vadd.f32 %v1686_v28, %v1608_v5 }
 0x3a4   : > { %v1704_v59 = vadd.f32 %v1694_v3, %v1607_v10  ;;  %v2016_v34 = vpop.permute.xlu0 %2015 }
 0x3a6   : > { %v1690_v14 = vpop.permute.xlu1 %1689 }
 0x3a7   : > { %v1695_v35 = vsel %vm1190_vm14, %v1688_v57, %v1690_v14  ;;  %v1696_v19 = vsel %vm1190_vm14, %v1690_v14, %v1692_v30  ;;  %v1703_v30 = vadd.f32 %v1693_v48, %v1606_v60  ;;  %vm2808_vm14 = vcmask 130048  }
 0x3a8   : > { %v1706_v37 = vadd.f32 %v1695_v35, %v1609_v39  ;;  %v1707_v47 = vadd.f32 %v1696_v19, %v1610_v8  ;;  %v5860_v21 = vpop.permute.xlu0 %2019 }
 0x3aa   : > { %v1779_v55 = vpop.permute.xlu1 %1778 }
 0x3ab   : > { %v1790_v49 = vsel %vm1255_vm15, %v1779_v55, %v1781_v46 }
 0x3ac   : > { %v5862_v50 = vpop.permute.xlu0 %2636  ;;  %v1800_v52 = vadd.f32 %v1790_v49, %v1703_v30 }
 0x3ae   : > { %v1783_v22 = vpop.permute.xlu1 %1782 }
 0x3af   : > { %v1791_v16 = vsel %vm1255_vm15, %v1781_v46, %v1783_v22  ;;  %v1802_v8 = vadd.f32 %v1783_v22, %v1705_v40 }
 0x3b0   : > { %v2125_v51 = vpop.permute.xlu0 %2124  ;;  %v1801_v39 = vadd.f32 %v1791_v16, %v1704_v59 }
 0x3b2   : > { %v1787_v33 = vpop.permute.xlu1 %1786 }
 0x3b3   : > { %v1792_v61 = vsel %vm1255_vm15, %v1785_v62, %v1787_v33  ;;  %v1793_v10 = vsel %vm1255_vm15, %v1787_v33, %v5852_v4  ;;  %vm2914_vm15 = vcmask 261120  }
 0x3b4   : > { %v2129_v9 = vpop.permute.xlu0 %2128  ;;  %v1803_v24 = vadd.f32 %v1792_v61, %v1706_v37  ;;  %v1804_v14 = vadd.f32 %v1793_v10, %v1707_v47 }
 0x3b6   : > { %v2006_v27 = vpop.permute.xlu1 %2005 }
 0x3b7   : > { %v2021_v20 = vsel %vm1498_vm2, %v2006_v27, %v2008_v25 }
 0x3b8   : > { %v2133_v32 = vpop.permute.xlu0 %2132  ;;  %v2033_v58 = vadd.f32 %v2021_v20, %v1800_v52 }
 0x3ba   : > { %v2010_v29 = vpop.permute.xlu1 %2009 }
 0x3bb   : > { %v2022_v60 = vsel %vm1498_vm2, %v2008_v25, %v2010_v29  ;;  %v2023_v0 = vsel %vm1498_vm2, %v2010_v29, %v2012_v18 }
 0x3bc   : > { %v2137_v42 = vpop.permute.xlu0 %2136  ;;  %v2034_v19 = vadd.f32 %v2022_v60, %v1801_v39  ;;  %v2035_v55 = vadd.f32 %v2023_v0, %v1802_v8 }
 0x3be   : > { %v2014_v1 = vpop.permute.xlu1 %2013 }
 0x3bf   : > { %v2024_v2 = vsel %vm1498_vm2, %v2014_v1, %v2016_v34 }
 0x3c0   : > { %v2242_v23 = vpop.permute.xlu0 %2241  ;;  %v2036_v25 = vadd.f32 %v2024_v2, %v1803_v24 }
 0x3c2   : > { %v2018_v54 = vpop.permute.xlu1 %2017 }
 0x3c3   : > { %v2025_v46 = vsel %vm1498_vm2, %v2016_v34, %v2018_v54 }
 0x3c4   : > { %v2246_v12 = vpop.permute.xlu0 %2245  ;;  %v2037_v47 = vadd.f32 %v2025_v46, %v1804_v14 }
 0x3c6   : > { %v5864_v13 = vpop.permute.xlu1 %2631 }
 0x3c8   : > { %v2250_v45 = vpop.permute.xlu0 %2249 }
 0x3ca   : > { %v2123_v15 = vpop.permute.xlu1 %2122 }
 0x3cb   : > { %v2138_v44 = vsel %vm1547_vm3, %v2123_v15, %v2125_v51 }
 0x3cc   : > { %v2150_v5 = vadd.f32 %v2138_v44, %v2033_v58  ;;  %v2254_v28 = vpop.permute.xlu0 %2253 }
 0x3ce   : > { %v2127_v31 = vpop.permute.xlu1 %2126 }
 0x3cf   : > { %v2139_v62 = vsel %vm1547_vm3, %v2125_v51, %v2127_v31  ;;  %v2140_v35 = vsel %vm1547_vm3, %v2127_v31, %v2129_v9 }
 0x3d0   : > { %v2151_v22 = vadd.f32 %v2139_v62, %v2034_v19  ;;  %v2152_v34 = vadd.f32 %v2140_v35, %v2035_v55  ;;  %v2667_v27 = vpop.permute.xlu0 %2666 }
 0x3d2   : > { %v2131_v57 = vpop.permute.xlu1 %2130 }
 0x3d3   : > { %v2141_v18 = vsel %vm1547_vm3, %v2131_v57, %v2133_v32 }
 0x3d4   : > { %v2153_v9 = vadd.f32 %v2141_v18, %v2036_v25 }
 0x3d6   : > { %v2135_v43 = vpop.permute.xlu1 %2134 }
 0x3d7   : > { %v2142_v33 = vsel %vm1547_vm3, %v2133_v32, %v2135_v43  ;;  %v2026_v32 = vsel %vm1498_vm2, %v2018_v54, %v5860_v21  ;;  %v2143_v20 = vsel %vm1547_vm3, %v2135_v43, %v2137_v42 }
 0x3d8   : > { %v2154_v15 = vadd.f32 %v2142_v33, %v2037_v47 }
 0x3da   : > { %v2240_v53 = vpop.permute.xlu1 %2239 }
 0x3db   : > { %v2255_v36 = vsel %vm1644_vm4, %v2240_v53, %v2242_v23 }
 0x3dc   : > { %v2267_v26 = vadd.f32 %v2255_v36, %v2150_v5 }
 0x3de   : > { %v2244_v63 = vpop.permute.xlu1 %2243  ;;  %v2639_v59 = vadd.f32 %v5864_v13, %v2267_v26  ;;  %v2731_v58 = vpop.permute.xlu0 %2730 }
 0x3df   : > { %v2256_v40 = vsel %vm1644_vm4, %v2242_v23, %v2244_v63  ;;  %v2257_v37 = vsel %vm1644_vm4, %v2244_v63, %v2246_v12  ;;  %v1805_v12 = vadd.f32 %v5852_v4, %v5846_v11 }
 0x3e0   : > { %v2268_v31 = vadd.f32 %v2256_v40, %v2151_v22  ;;  %v2269_v57 = vadd.f32 %v2257_v37, %v2152_v34  ;;  %v2645_v48 = vmax.f32 %v2639_v59, 0.0 }
 0x3e1   : > { %v2038_v52 = vadd.f32 %v2026_v32, %v1805_v12 }
 0x3e2   : > { %v2248_v3 = vpop.permute.xlu1 %2247  ;;  %v2640_v44 = vadd.f32 %v5864_v13, %v2268_v31 }
 0x3e3   : > { %v2258_v51 = vsel %vm1644_vm4, %v2248_v3, %v2250_v45  ;;  %v2155_v11 = vadd.f32 %v2143_v20, %v2038_v52 }
 0x3e4   : > { %v2270_v23 = vadd.f32 %v2258_v51, %v2153_v9  ;;  %v2646_v16 = vmax.f32 %v2640_v44, 0.0 }
 0x3e6   : > { %v2252_v29 = vpop.permute.xlu1 %2251  ;;  %v2642_v21 = vadd.f32 %v5862_v50, %v2270_v23 }
 0x3e7   : > { %v2259_v1 = vsel %vm1644_vm4, %v2250_v45, %v2252_v29  ;;  %v2641_v45 = vadd.f32 %v5864_v13, %v2269_v57  ;;  %v2260_v54 = vsel %vm1644_vm4, %v2252_v29, %v2254_v28 }
 0x3e8   : > { %v2271_v49 = vadd.f32 %v2259_v1, %v2154_v15  ;;  %v2272_v61 = vadd.f32 %v2260_v54, %v2155_v11  ;;  %v2735_v13 = vpop.permute.xlu0 %2734  ;;  %v2648_v10 = vmax.f32 %v2642_v21, 0.0  ;;  %v2802_v21 = vld [vmem:[%s4032_s20 + $0x10] sm:$0xff]  ;;  %v2803_v54 = vld [vmem:[%s4032_s20 + $0x18] sm:$0xff]  ;;  %v2906_v11 = vld [vmem:[%s4042_s4] sm:$0xff] }
 0x3e9   : > { %v2647_v5 = vmax.f32 %v2641_v45, 0.0  ;;  %3579 = vmatprep.mubr.msk.f32.mxu1 %vm2914_vm15, %v2906_v11 }
 0x3ea   : > { %v2665_v30 = vpop.permute.xlu1 %2664  ;;  %v2643_v4 = vadd.f32 %v5862_v50, %v2271_v49  ;;  %v2644_v24 = vadd.f32 %v5862_v50, %v2272_v61  ;;  %v2800_v49 = vld [vmem:[%s4032_s20] sm:$0xff] }
 0x3eb   : > { %v5894_v53 = vmul.f32 %v2665_v30, %v2645_v48  ;;  %v2671_v42 = vsel %vm2670_vm10, %v2665_v30, %v2667_v27  ;;  %v5912_v14 = vmul.f32 %v2665_v30, %v2648_v10  ;;  %3565 = vmatprep.mubr.msk.f32.mxu0 %vm2808_vm14, %v2800_v49 }
 0x3ec   : > { %v2649_v60 = vmax.f32 %v2643_v4, 0.0  ;;  %v5903_v0 = vmul.f32 %v2671_v42, %v2646_v16  ;;  %v2739_v62 = vpop.permute.xlu0 %2738  ;;  %v2650_v25 = vmax.f32 %v2644_v24, 0.0  ;;  %v2805_v4 = vld [vmem:[%s4037_s2 + $0x8] sm:$0xff] }
 0x3ed   : > { %v2753_v36 = vadd.f32 %v2731_v58, %v5894_v53 }
 0x3ee   : > { %v2669_v63 = vpop.permute.xlu1 %2668  ;;  %v5914_v46 = vmul.f32 %v2671_v42, %v2649_v60 }
 0x3ef   : > { %v2672_v43 = vsel %vm2670_vm10, %v2667_v27, %v2669_v63  ;;  %2765 = vrot.lane.b32.xlu0 %v2753_v36, %s3900_s21  ;;  %v6377_v36 = vmov 0.0   ;;  %v2804_v63 = vld [vmem:[%s4037_s2] sm:$0xff] }
 0x3f0   : > { %v5905_v2 = vmul.f32 %v2672_v43, %v2647_v5  ;;  %v5921_v18 = vmul.f32 %v2672_v43, %v2650_v25  ;;  %v2806_v5 = vld [vmem:[%s4037_s2 + $0x10] sm:$0xff]  ;;  %v2913_v25 = vld [vmem:[%s4047_s15 + $0x18] sm:$0xff] }
 0x3f2   : > { %v2733_v26 = vpop.permute.xlu1 %2732 }
 0x3f3   : > { %v2743_v39 = vsel %vm2742_vm11, %v2731_v58, %v2733_v26  ;;  %v2744_v8 = vsel %vm2742_vm11, %v2733_v26, %v2735_v13  ;;  %v2801_v58 = vld [vmem:[%s4032_s20 + $0x8] sm:$0xff]  ;;  %v2807_v13 = vld [vmem:[%s4037_s2 + $0x18] sm:$0xff] }
 0x3f4   : > { %v2754_v28 = vadd.f32 %v2743_v39, %v5903_v0  ;;  %v2755_v3 = vadd.f32 %v2744_v8, %v5905_v2 }
 0x3f6   : > { %v2737_v35 = vpop.permute.xlu1 %2736  ;;  %2767 = vrot.lane.b32.xlu1 %v2754_v28, %s3900_s21  ;;  %2769 = vrot.lane.b32.xlu0 %v2755_v3, %s3900_s21  ;;  %v2907_v28 = vld [vmem:[%s4042_s4 + $0x8] sm:$0xff]  ;;  %v2908_v3 = vld [vmem:[%s4042_s4 + $0x10] sm:$0xff] }
 0x3f7   : > { %v2745_v19 = vsel %vm2742_vm11, %v2737_v35, %v2739_v62  ;;  %v2756_v55 = vadd.f32 %v2737_v35, %v5912_v14 }
 0x3f8   : > { %v2757_v50 = vadd.f32 %v2745_v19, %v5914_v46 }
 0x3fa   : > { %v2741_v33 = vpop.permute.xlu1 %2740  ;;  %2771 = vrot.lane.b32.xlu1 %v2756_v55, %s3900_s21  ;;  %2773 = vrot.lane.b32.xlu0 %v2757_v50, %s3900_s21  ;;  %v2911_v55 = vld [vmem:[%s4047_s15 + $0x8] sm:$0xff]  ;;  %v2910_v50 = vld [vmem:[%s4047_s15] sm:$0xff] }
 0x3fb   : > { %v2746_v59 = vsel %vm2742_vm11, %v2739_v62, %v2741_v33  ;;  %v2909_v62 = vld [vmem:[%s4042_s4 + $0x18] sm:$0xff]  ;;  %v2912_v33 = vld [vmem:[%s4047_s15 + $0x10] sm:$0xff] }
 0x3fc   : > { %v2758_v40 = vadd.f32 %v2746_v59, %v5921_v18 }
 0x3fe   : > { %2775 = vrot.lane.b32.xlu1 %v2758_v40, %s3900_s21 }
 0x461   : > { %v2766_v37 = vpop.permute.xlu0 %2765 }
 0x468   : > { %v2768_v47 = vpop.permute.xlu1 %2767  ;;  %v2770_v22 = vpop.permute.xlu0 %2769 }
 0x469   : > { %v2778_v34 = vsel %vm2777_vm13, %v2766_v37, %v2768_v47  ;;  %v2779_v27 = vsel %vm2777_vm13, %v2768_v47, %v2770_v22  ;;  %v2789_v29 = vsel %vm2313_vm8, %v2770_v22, 0.0 }
 0x46a   : > { %v2788_v51 = vadd.f32 %v2779_v27, %v2778_v34 }
 0x46c   : > { %v2790_v9 = vadd.f32 %v2789_v29, %v2788_v51  ;;  %v2772_v1 = vpop.permute.xlu1 %2771  ;;  %v2774_v15 = vpop.permute.xlu0 %2773 }
 0x46d   : > { %v2780_v57 = vsel %vm2777_vm13, %v2772_v1, %v2774_v15 }
 0x46e   : > { %2791 = vadd.xlane.f32.xlu0 %v2790_v9 }
 0x470   : > { %v2776_v31 = vpop.permute.xlu1 %2775 }
 0x471   : > { %v2781_v32 = vsel %vm2777_vm13, %v2774_v15, %v2776_v31  ;;  %v2794_v23 = vsel %vm2313_vm8, %v2776_v31, 0.0 }
 0x472   : > { %v2793_v48 = vadd.f32 %v2781_v32, %v2780_v57 }
 0x474   : > { %v2795_v12 = vadd.f32 %v2794_v23, %v2793_v48 }
 0x476   : > { %2796 = vadd.xlane.f32.xlu1 %v2795_v12 }
 0x4fb   : > { %v2792_v30 = vpop.xlane.xlu0 %2791 }
 0x4fc   : > { %v2798_v52 = vmul.f32 0.00390625, %v2792_v30 }
 0x503   : > { %v2797_v20 = vpop.xlane.xlu1 %2796 }
 0x504   : > { %v2799_v44 = vmul.f32 0.00390625, %v2797_v20 }
 0x506   : > { %v3592_v45 = vpack.c.bf16 %v2799_v44, %v2798_v52 }
 0x508   : > { %3593 = vmatprep.subr.bf16.mxu0 %v3592_v45 }
 0x509   : > { %3595 = vmatpush3.bf16.msra.mxu0 %v3592_v45 }
 0x50c   : > { %3566 = vmatmul.mubr.msk.f32.vlgmr.msra.gmra.mrb[6].mxu0 %vm2808_vm14, %v2801_v58 }
 0x50d   : > { %3568 = vmatprep.mubr.msk.f32.mxu0 %vm2808_vm14, %v2802_v21 }
 0x510   : > { %3569 = vmatmul.mubr.msk.f32.gmra.mrb[8].mxu0 %vm2808_vm14, %v2803_v54 }
 0x511   : > { %3196 = vmatprep.mubr.f32.mxu0 %v6377_v36 }
 0x5df   : > { %v3567_v42 = vpop.f32.mrb[6].mxu0 }
 0x5e0   : > { %v2893_v43 = vadd.f32 %v3567_v42, %v2805_v4  ;;  %v2887_v16 = vpop.f32.mrb[7].mxu0 }
 0x5e1   : > { %v2888_v61 = vadd.f32 %v2887_v16, %v2804_v63 }
 0x5e3   : > { %v3596_v10 = vpack.c.bf16 %v2893_v43, %v2888_v61  ;;  %v3570_v60 = vpop.f32.mrb[8].mxu0 }
 0x5e4   : > { %v2903_v26 = vadd.f32 %v3570_v60, %v2807_v13  ;;  %v2897_v39 = vpop.f32.mrb[9].mxu0 }
 0x5e5   : > { %v2898_v8 = vadd.f32 %v2897_v39, %v2806_v5  ;;  %3597 = vmatprep.subr.bf16.mxu1 %v3596_v10 }
 0x5e6   : > { %3599 = vmatpush3.bf16.msra.mxu1 %v3596_v10 }
 0x5e7   : > { %v3600_v24 = vpack.c.bf16 %v2903_v26, %v2898_v8 }
 0x5e9   : > { %3601 = vmatprep.subr.bf16.mxu1 %v3600_v24 }
 0x5ea   : > { %3603 = vmatpush3.bf16.msra.mxu1 %v3600_v24 }
 0x5ed   : > { %3580 = vmatmul.mubr.msk.f32.vlgmr.msra.gmra.mrb[6].mxu1 %vm2914_vm15, %v2907_v28 }
 0x5ee   : > { %3582 = vmatprep.mubr.msk.f32.mxu1 %vm2914_vm15, %v2908_v3 }
 0x5f1   : > { %3583 = vmatmul.mubr.msk.f32.gmra.mrb[8].mxu1 %vm2914_vm15, %v2909_v62 }
 0x5f2   : > { %3589 = vmatprep.mubr.msk.f32.mxu1 %vm3847_vm5, %v6377_v36  ;;  %vm6379_vm5 = vcmask 1043456  }
 0x5f3   : > { %vm6381_vm2 = vmmov %vm6379_vm5 }
 0x5f4   : > { %vm6383_vm3 = vmmov %vm6381_vm2 }
 0x6c0   : > { %v3581_v35 = vpop.f32.mrb[6].mxu1 }
 0x6c1   : > { %v2993_v19 = vpop.f32.mrb[7].mxu1  ;;  %v2999_v40 = vadd.f32 %v3581_v35, %v2911_v55 }
 0x6c2   : > { %v2994_v22 = vadd.f32 %v2993_v19, %v2910_v50 }
 0x6c4   : > { %v3584_v59 = vpop.f32.mrb[8].mxu1 }
 0x6c5   : > { %v3009_v37 = vadd.f32 %v3584_v59, %v2913_v25  ;;  %v3003_v47 = vpop.f32.mrb[9].mxu1 }
 0x6c6   : > { %v3004_v34 = vadd.f32 %v3003_v47, %v2912_v33 }
 0x6c7   : > { %v3013_v27 = vmax.f32 %v2999_v40, %v3009_v37 }
 0x6c8   : > { %v3012_v51 = vmax.f32 %v2994_v22, %v3004_v34 }
 0x6c9   : > { %v3015_v29 = vsub.f32 %v2999_v40, %v3013_v27  ;;  %v3021_v9 = vsub.f32 %v3009_v37, %v3013_v27 }
 0x6ca   : > { %v3014_v1 = vsub.f32 %v2994_v22, %v3012_v51  ;;  %v3020_v15 = vsub.f32 %v3004_v34, %v3012_v51 }
 0x6cb   : > { %v3018_v31 = vmul.f32 1.442695, %v3015_v29  ;;  %v3024_v57 = vmul.f32 1.442695, %v3021_v9 }
 0x6cc   : > { %v3016_v32 = vmul.f32 1.442695, %v3014_v1  ;;  %v3022_v48 = vmul.f32 1.442695, %v3020_v15 }
 0x6cd   : > { %3781 = vpow2.f32 %v3018_v31 }
 0x6ce   : > { %3783 = vpow2.f32 %v3024_v57 }
 0x6cf   : > { %3785 = vpow2.f32 %v3016_v32 }
 0x6d0   : > { %3787 = vpow2.f32 %v3022_v48 }
 0x6d7   : > { %v3782_v23 = vpop.eup %3781 }
 0x6d8   : > { %v3784_v12 = vpop.eup %3783 }
 0x6d9   : > { %v3786_v49 = vpop.eup %3785  ;;  %v3027_v30 = vadd.f32 %v3784_v12, %v3782_v23 }
 0x6da   : > { %v3788_v20 = vpop.eup %3787 }
 0x6db   : > { %3789 = vrcp.f32 %v3027_v30  ;;  %v3026_v52 = vadd.f32 %v3788_v20, %v3786_v49 }
 0x6dd   : > { %3791 = vrcp.f32 %v3026_v52 }
 0x6e5   : > { %v3790_v44 = vpop.eup %3789 }
 0x6e6   : > { %v3049_v45 = vmul.f32 %v3790_v44, %v3784_v12  ;;  %v3031_v58 = vmul.f32 %v3790_v44, %v3782_v23  ;;  %v3100_v23 = vld [vmem:[%s4052_s27] sm:$0xf] }
 0x6e7   : > { %v3792_v21 = vpop.eup %3791 }
 0x6e8   : > { %3057 = vperm.xlu1 %3765, %v3049_v45   ;;  %v3048_v54 = vmul.f32 %v3792_v21, %v3788_v20  ;;  %v3030_v36 = vmul.f32 %v3792_v21, %v3786_v49  ;;  %v6378_v21 = vld [vmem:[#allocation10_spill] sm:$0xff] }
 0x6ea   : > { %3052 = vperm.xlu0 %3763, %v3048_v54  }
 0x6ec   : > { %3039 = vperm.xlu1 %3765, %v3031_v58  }
 0x6ee   : > { %3034 = vperm.xlu0 %3763, %v3030_v36  }
 0x767   : > { %v3058_v11 = vpop.permute.xlu1 %3057 }
 0x768   : > { %v3063_v4 = vmul.f32 %v3058_v11, %v5813_v41  ;;  %v3065_v61 = vmul.f32 %v3058_v11, %v5824_v38  ;;  %v3064_v13 = vmul.f32 %v3058_v11, %v5815_v17  ;;  %v3901_v17 = vmov 0.0|0.0  }
 0x769   : > { %v3053_v63 = vpop.permute.xlu0 %3052  ;;  %3608 = vmatprep.subr.bf16.mxu1 %v3901_v17 }
 0x76a   : > { %v3060_v42 = vmul.f32 %v3053_v63, %v5779_v6  ;;  %3078 = vrot.lane.b32.xlu1 %v3063_v4, %s3899_s6  ;;  %v3061_v43 = vmul.f32 %v3053_v63, %v5804_v7  ;;  %v3062_v16 = vmul.f32 %v3053_v63, %v5806_v56  ;;  %v6380_v4 = vld [vmem:[#allocation8_spill] sm:$0xff] }
 0x76b   : > { %v3040_v6 = vpop.permute.xlu1 %3039 }
 0x76c   : > { %3072 = vrot.lane.b32.xlu0 %v3060_v42, %s3899_s6  ;;  %v3045_v24 = vmul.f32 %v3040_v6, %v5912_v14  ;;  %v3046_v35 = vmul.f32 %v3040_v6, %v5914_v46  ;;  %v6382_v42 = vld [vmem:[#allocation9_spill] sm:$0xff] }
 0x76d   : > { %v3035_v41 = vpop.permute.xlu0 %3034 }
 0x76e   : > { %3074 = vrot.lane.b32.xlu1 %v3061_v43, %s3899_s6  ;;  %v3043_v10 = vmul.f32 %v3035_v41, %v5903_v0  ;;  %v3044_v26 = vmul.f32 %v3035_v41, %v5905_v2  ;;  %v3042_v28 = vmul.f32 %v3035_v41, %v5894_v53  ;;  %v3047_v0 = vmul.f32 %v3040_v6, %v5921_v18 }
 0x770   : > { %3076 = vrot.lane.b32.xlu0 %v3062_v16, %s3899_s6 }
 0x772   : > { %3082 = vrot.lane.b32.xlu1 %v3065_v61, %s3899_s6 }
 0x774   : > { %3080 = vrot.lane.b32.xlu0 %v3064_v13, %s3899_s6 }
 0x7dc   : > { %v3079_v5 = vpop.permute.xlu1 %3078 }
 0x7dd   : > { %v3097_v19 = vadd.f32 %v3079_v5, %v3045_v24 }
 0x7de   : > { %v3073_v7 = vpop.permute.xlu0 %3072 }
 0x7df   : > { %v3094_v55 = vadd.f32 %v3073_v7, %v3042_v28 }
 0x7e0   : > { %v3075_v60 = vpop.permute.xlu1 %3074 }
 0x7e1   : > { %v3084_v56 = vsel %vm2742_vm11, %v3073_v7, %v3075_v60  ;;  %v3776_v14 = vpack.i.bf16 %v3097_v19, %v3094_v55 }
 0x7e2   : > { %v3095_v38 = vadd.f32 %v3084_v56, %v3043_v10  ;;  %v3077_v39 = vpop.permute.xlu0 %3076 }
 0x7e3   : > { %v3085_v8 = vsel %vm2742_vm11, %v3075_v60, %v3077_v39 }
 0x7e4   : > { %v3096_v3 = vadd.f32 %v3085_v8, %v3044_v26  ;;  %v3083_v62 = vpop.permute.xlu1 %3082 }
 0x7e6   : > { %v3766_v25 = vpack.i.bf16 %v3096_v3, %v3095_v38  ;;  %v3081_v2 = vpop.permute.xlu0 %3080 }
 0x7e7   : > { %v3086_v50 = vsel %vm2742_vm11, %v3079_v5, %v3081_v2  ;;  %v3087_v33 = vsel %vm2742_vm11, %v3081_v2, %v3083_v62 }
 0x7e8   : > { %v3098_v59 = vadd.f32 %v3086_v50, %v3046_v35  ;;  %v3099_v40 = vadd.f32 %v3087_v33, %v3047_v0  ;;  %3767 = vrot.lane.b32.xlu0 %v3766_v25, %s3900_s21 }
 0x7ea   : > { %v3771_v53 = vpack.i.bf16 %v3099_v40, %v3098_v59 }
 0x7ec   : > { %3777 = vrot.lane.b32.xlu0 %v3776_v14, %s3900_s21  ;;  %3772 = vrot.lane.b32.xlu1 %v3771_v53, %s3900_s21 }
 0x85a   : > { %v3768_v46 = vpop.permute.xlu0 %3767 }
 0x85b   : > { %v3770_v18 = vunpack.i.h.bf16 %v3768_v46  ;;  %v3769_v37 = vunpack.i.l.bf16 %v3768_v46 }
 0x85d   : > { %v3120_v9 = vsel %vm2777_vm13, %v3769_v37, %v3770_v18 }
 0x85e   : > { %v3773_v47 = vpop.permute.xlu1 %3772  ;;  %v3778_v22 = vpop.permute.xlu0 %3777 }
 0x85f   : > { %v3775_v34 = vunpack.i.h.bf16 %v3773_v47  ;;  %v3774_v27 = vunpack.i.l.bf16 %v3773_v47  ;;  %v3780_v51 = vunpack.i.h.bf16 %v3778_v22  ;;  %v3779_v29 = vunpack.i.l.bf16 %v3778_v22 }
 0x861   : > { %v3609_v1 = vpack.c.bf16 %v3775_v34, %v3770_v18  ;;  %v3121_v15 = vsel %vm2777_vm13, %v3780_v51, %v3774_v27  ;;  %v3119_v31 = vsel %vm2777_vm13, %v3779_v29, %v3769_v37  ;;  %v3122_v57 = vsel %vm2777_vm13, %v3774_v27, %v3775_v34 }
 0x862   : > { %v3606_v32 = vpack.c.bf16 %v3121_v15, %v3119_v31  ;;  %v3604_v48 = vpack.c.bf16 %v3122_v57, %v3120_v9 }
 0x863   : > { %3610 = vmatpush3.bf16.msra.mxu1 %v3609_v1 }
 0x864   : > { %3605 = vmatprep.subr.bf16.mxu0 %v3604_v48 }
 0x865   : > { %3607 = vmatpush1.bf16.msra.mxu0 %v3606_v32 }
 0x866   : > { %3590 = vmatmul.mubr.msk.f32.vlgmr.msra.gmra.mrb[10].mxu1 %vm2808_vm14, %v3100_v23 }
 0x868   : > { %3517 = vmatmul.mubr.msk.f32.vlgmr.msra.gmra.mrb[10].mxu0 %vm2808_vm14, %v3100_v23 }
 0x939   : > { %v3269_v12 = vpop.f32.mrb[10].mxu1 }
 0x93a   : > { %v3275_v49 = vmax.f32 %v3269_v12, 0.0  ;;  %v3591_v30 = vpop.f32.mrb[11].mxu1 }
 0x93b   : > { %v3198_v20 = vpop.f32.mrb[10].mxu0 }
 0x93c   : > { %v3281_v52 = vrot.slane %v3275_v49, 4  ;;  %v3273_v44 = vmax.f32 %v3198_v20, 0.0  ;;  %v3200_v45 = vpop.f32.mrb[11].mxu0 }
 0x93d   : > { %v3274_v58 = vmax.f32 %v3200_v45, 0.0 }
 0x93e   : > { %v3287_v54 = vsel %vm6379_vm5, %v6378_v21, %v3281_v52  ;;  %v3279_v36 = vrot.slane %v3273_v44, 4 }
 0x93f   : > { %3290 = vst.msk [vmem:[%s4057_s23 + $0x10] sm:$0xff] %vm2313_vm8, %v3287_v54  ;;  %v3280_v11 = vrot.slane %v3274_v58, 4 }
 0x940   : > { %v3285_v63 = vsel %vm6381_vm2, %v6380_v4, %v3279_v36 }
 0x941   : > { %3288 = vst [vmem:[%s4057_s23] sm:$0xff] %v3285_v63  ;;  %v3286_v43 = vsel %vm6383_vm3, %v6382_v42, %v3280_v11 }
 0x942   : > { %3289 = vst [vmem:[%s4057_s23 + $0x8] sm:$0xff] %v3286_v43 }
 0x943 PF: > { %s6384_s2 = sld [smem:[#allocation5_spill]]  ;;  %s6385_s21 = sld [smem:[#allocation3_spill]] }
 0x944   : > { %s6386_s22 = sld [smem:[#allocation4_spill]]  ;;  %s6387_s23 = sld [smem:[#allocation6_spill]] }
 0x945   : > { %s6388_s24 = sld [smem:[#allocation7_spill]] }
 0x949   : > { %s22_s25 = sadd.s32 1, %s6384_s2  }
 0x94a   : > { %p19_p8 = scmp.ge.s32.totalorder %s22_s25, 6  }
 0x94c   :  { %21 = sbr.rel (!%p19_p8) target bundleno = 8 (0x8), region = 132 }

// kernel: model_forward.3
= control target key start
LH: loop header
LB: loop body
LE: loop exit
PB: predicated region body
PF: predicated region fallthrough
CT: control target
= control target key end

     0   :  { %s1217_s15 = smov 0   ;;  %s1576_s0 = inlined_call_operand.vmem [shape: f32[2,3,440], index: 0, kind: input, shape index: {}]   ;;  %s1577_s1 = inlined_call_operand.vmem [shape: f32[1,320], index: 1, kind: input, shape index: {}]   ;;  %s1578_s2 = inlined_call_operand.vmem [shape: f32[20,75], index: 2, kind: input, shape index: {}]   ;;  %s1579_s3 = inlined_call_operand.vmem [shape: f32[2,8,320], index: 3, kind: output, shape index: {0}]   ;;  %s1580_s4 = inlined_call_operand.vmem [shape: f32[2,12,320], index: 4, kind: output, shape index: {1}]  }
   0x1 LB: > { %s1011_s16 = sadd.s32 4294967295, %s1161_s15   ;;  %p1015_p0 = scmp.ge.s32.totalorder %s1161_s15, 1  ;;  %s1161_s15 = sphi %s1217_s15, %s15_s15  }
   0x2   : > { %p165_p1 = scmp.lt.s32.totalorder %s1161_s15, 3 }
   0x4   : > { %p166_p2 = pnand %p1015_p0, %p165_p1 }
   0x5   : > { %p196_p3 = scmp.lt.s32.totalorder (!%p166_p2), %s1011_s16, 1  ;;  %s1163_s21 = smov (!%p166_p2), 110   ;;  %v1168_v12 = vmov (!%p166_p2), 0.0|0.0   ;;  %vm230_vm0 = vcmask (!%p166_p2), 518144   ;;  %vm249_vm1 = vcmask (!%p166_p2), 521219   ;;  %vm222_vm2 = vcmask (!%p166_p2), 900096  }
   0x6   : > { %169 = sbr.rel (%p166_p2) target bundleno = 535 (0x217), region = 32  ;;  %s1164_s22 = smov (!%p166_p2), 109   ;;  %1096 = vmatprep.subr.bf16.mxu1 (!%p166_p2), %v1168_v12  ;;  %vm268_vm3 = vcmask (!%p166_p2), 523270   ;;  %vm272_vm4 = vcmask (!%p166_p2), 516096   ;;  %vm260_vm5 = vcmask (!%p166_p2), 883712   ;;  %vm241_vm6 = vcmask (!%p166_p2), 891904  }
   0x7   : > { %s1165_s23 = smov (!%p166_p2), 108   ;;  %s1166_s24 = smov (!%p166_p2), 107   ;;  %vm283_vm7 = vcmask (!%p166_p2), 875520   ;;  %vm291_vm8 = vcmask (!%p166_p2), 519169   ;;  %vm301_vm9 = vcmask (!%p166_p2), 867328   ;;  %vm309_vm10 = vcmask (!%p166_p2), 522244  }
   0x8   : > { %s1167_s25 = smov (!%p166_p2), 106   ;;  %s1169_s26 = smov (!%p166_p2), 90   ;;  %vm320_vm11 = vcmask (!%p166_p2), 736256   ;;  %vm328_vm12 = vcmask (!%p166_p2), 523271   ;;  %vm332_vm13 = vcmask (!%p166_p2), 517120   ;;  %vm343_vm14 = vcmask (!%p166_p2), 728064  }
   0x9   : > { %s1170_s27 = smov (!%p166_p2), 89   ;;  %s1171_s28 = smov (!%p166_p2), 88   ;;  %vm351_vm15 = vcmask (!%p166_p2), 520194  }
   0xa   : > { %s1172_s29 = smov (!%p166_p2), 87   ;;  %s1173_s30 = smov (!%p166_p2), 86  }
   0xb   : > { %s1174_s5 = smov (!%p166_p2), 70   ;;  %s1175_s6 = smov (!%p166_p2), 69  }
   0xc   : > { %s1176_s7 = smov (!%p166_p2), 68   ;;  %s1177_s8 = smov (!%p166_p2), 67  }
   0xd   : > { %s1587_s16 = smov (!%p196_p3, %s1011_s16), 1  ;;  %s1178_s9 = smov 66  }
   0xe   : > { %s1031_s17 = sshll.u32 %s1587_s16, 4  ;;  %s1179_s10 = smov 50  }
   0xf   : > { %s200_s20 = scalar_lea.vmem %s1576_s0, %s1031_s17  ;;  %s1180_s11 = smov 49  }
  0x10   : > { %v1231_v0 = vld [vmem:[%s200_s20 + $0x8] sm:$0x77]  ;;  %v1233_v1 = vld [vmem:[%s200_s20] sm:$0x77]  ;;  %s1181_s12 = smov 48   ;;  %s1182_s13 = smov 47  }
  0x11   : > { %220 = vrot.lane.b32.xlu0 %v1231_v0, %s1163_s21  ;;  %v1238_v2 = vrot.slane %v1231_v0, 5  ;;  %v1242_v3 = vcombine.high %v1233_v1, %v1233_v1  ;;  %v1246_v4 = vrot.slane %v1231_v0, 2  ;;  %v1263_v8 = vrot.slane %v1231_v0, 7  ;;  %s1183_s14 = smov 46   ;;  %s1184_s17 = smov 30  }
  0x12   : > { %v1269_v9 = vcombine.low %v1231_v0, %v1231_v0  ;;  %v1277_v11 = vrot.slane %v1231_v0, 1  ;;  %v1283_v13 = vrot.slane %v1233_v1, 5  ;;  %v1288_v14 = vrot.slane %v1233_v1, 2  ;;  %s1185_s18 = smov 29   ;;  %s1186_s19 = smov 28  }
  0x13   : > { %239 = vrot.lane.b32.xlu1 %v1238_v2, %s1164_s22  ;;  %v1251_v5 = vrot.slane %v1242_v3, 2  ;;  %v1255_v6 = vrot.slane %v1242_v3, 5  ;;  %v1259_v7 = vrot.slane %v1242_v3, 7  ;;  %v1273_v10 = vrot.slane %v1242_v3, 1  ;;  %s1187_s20 = smov 27  }
  0x14   : > { %v1292_v15 = vrot.slane %v1233_v1, 7  ;;  %v1297_v16 = vcombine.low %v1233_v1, %v1233_v1  ;;  %v1301_v17 = vrot.slane %v1233_v1, 1  ;;  %v1305_v18 = vrot.slane %v1242_v3, 6 }
  0x15   : > { %218 = vrot.lane.b32.xlu0 %v1242_v3, %s1163_s21  ;;  %v1309_v19 = vrot.slane %v1231_v0, 6  ;;  %v1313_v20 = vrot.slane %v1242_v3, 3  ;;  %v1317_v21 = vrot.slane %v1231_v0, 3  ;;  %v1327_v22 = vrot.slane %v1233_v1, 6 }
  0x16   : > { %v1331_v23 = vrot.slane %v1233_v1, 3  ;;  %v1352_v24 = vcombine.high %v1231_v0, %v1231_v0 }
  0x17   : > { %258 = vrot.lane.b32.xlu1 %v1246_v4, %s1165_s23 }
  0x18   : > { %v484_v25 = vrot.slane %v1352_v24, 3  ;;  %v521_v40 = vrot.slane %v1352_v24, 5  ;;  %v540_v43 = vrot.slane %v1352_v24, 2  ;;  %v562_v45 = vrot.slane %v1352_v24, 7 }
  0x19   : > { %256 = vrot.lane.b32.xlu0 %v1251_v5, %s1165_s23  ;;  %v599_v50 = vrot.slane %v1352_v24, 1 }
  0x1b   : > { %237 = vrot.lane.b32.xlu1 %v1255_v6, %s1164_s22 }
  0x1d   : > { %279 = vrot.lane.b32.xlu0 %v1259_v7, %s1166_s24 }
  0x1f   : > { %281 = vrot.lane.b32.xlu1 %v1263_v8, %s1166_s24 }
  0x21   : > { %297 = vrot.lane.b32.xlu0 %v1233_v1, %s1167_s25 }
  0x23   : > { %299 = vrot.lane.b32.xlu1 %v1269_v9, %s1167_s25 }
  0x25   : > { %316 = vrot.lane.b32.xlu0 %v1273_v10, %s1169_s26 }
  0x27   : > { %318 = vrot.lane.b32.xlu1 %v1277_v11, %s1169_s26 }
  0x29   : > { %216 = vrot.lane.b32.xlu0 %v1233_v1, %s1163_s21  ;;  %s1188_s21 = smov 26  }
  0x2b   : > { %235 = vrot.lane.b32.xlu1 %v1283_v13, %s1164_s22 }
  0x2d   : > { %254 = vrot.lane.b32.xlu0 %v1288_v14, %s1165_s23 }
  0x2f   : > { %277 = vrot.lane.b32.xlu1 %v1292_v15, %s1166_s24 }
  0x31   : > { %295 = vrot.lane.b32.xlu0 %v1297_v16, %s1167_s25 }
  0x33   : > { %314 = vrot.lane.b32.xlu1 %v1301_v17, %s1169_s26 }
  0x35   : > { %339 = vrot.lane.b32.xlu0 %v1305_v18, %s1170_s27 }
  0x37   : > { %341 = vrot.lane.b32.xlu1 %v1309_v19, %s1170_s27 }
  0x39   : > { %358 = vrot.lane.b32.xlu0 %v1313_v20, %s1171_s28 }
  0x3b   : > { %360 = vrot.lane.b32.xlu1 %v1317_v21, %s1171_s28 }
  0x3d   : > { %374 = vrot.lane.b32.xlu0 %v1242_v3, %s1172_s29 }
  0x3f   : > { %376 = vrot.lane.b32.xlu1 %v1231_v0, %s1172_s29 }
  0x41   : > { %389 = vrot.lane.b32.xlu0 %v1255_v6, %s1173_s30 }
  0x43   : > { %391 = vrot.lane.b32.xlu1 %v1238_v2, %s1173_s30 }
  0x45   : > { %404 = vrot.lane.b32.xlu0 %v1251_v5, %s1174_s5 }
  0x47   : > { %406 = vrot.lane.b32.xlu1 %v1246_v4, %s1174_s5 }
  0x49   : > { %337 = vrot.lane.b32.xlu0 %v1327_v22, %s1170_s27 }
  0x4b   : > { %356 = vrot.lane.b32.xlu1 %v1331_v23, %s1171_s28 }
  0x4d   : > { %372 = vrot.lane.b32.xlu0 %v1233_v1, %s1172_s29 }
  0x4f   : > { %387 = vrot.lane.b32.xlu1 %v1283_v13, %s1173_s30  ;;  %s1112_s30 = smul.u32 24, %s1587_s16 }
  0x51   : > { %402 = vrot.lane.b32.xlu0 %v1288_v14, %s1174_s5  ;;  %s1113_s5 = smul.u32 48, %s1587_s16 }
  0x53   : > { %422 = vrot.lane.b32.xlu1 %v1259_v7, %s1175_s6 }
  0x55   : > { %424 = vrot.lane.b32.xlu0 %v1263_v8, %s1175_s6 }
  0x57   : > { %437 = vrot.lane.b32.xlu1 %v1233_v1, %s1176_s7 }
  0x59   : > { %439 = vrot.lane.b32.xlu0 %v1269_v9, %s1176_s7 }
  0x5b   : > { %452 = vrot.lane.b32.xlu1 %v1273_v10, %s1177_s8 }
  0x5d   : > { %454 = vrot.lane.b32.xlu0 %v1277_v11, %s1177_s8 }
  0x5f   : > { %470 = vrot.lane.b32.xlu1 %v1305_v18, %s1178_s9 }
  0x61   : > { %472 = vrot.lane.b32.xlu0 %v1309_v19, %s1178_s9 }
  0x63   : > { %487 = vrot.lane.b32.xlu1 %v1313_v20, %s1179_s10 }
  0x65   : > { %489 = vrot.lane.b32.xlu0 %v1317_v21, %s1179_s10 }
  0x67   : > { %420 = vrot.lane.b32.xlu1 %v1292_v15, %s1175_s6 }
  0x69   : > { %435 = vrot.lane.b32.xlu0 %v1297_v16, %s1176_s7 }
  0x6b   : > { %450 = vrot.lane.b32.xlu1 %v1301_v17, %s1177_s8  ;;  %s205_s8 = scalar_lea.vmem %s1579_s3, %s1112_s30 }
  0x6d   : > { %468 = vrot.lane.b32.xlu0 %v1327_v22, %s1178_s9 }
  0x6f   : > { %485 = vrot.lane.b32.xlu1 %v1331_v23, %s1179_s10 }
  0x71   : > { %491 = vrot.lane.b32.xlu0 %v484_v25, %s1179_s10 }
  0x73   : > { %505 = vrot.lane.b32.xlu1 %v1242_v3, %s1180_s11 }
  0x75   : > { %507 = vrot.lane.b32.xlu0 %v1231_v0, %s1180_s11 }
  0x77   : > { %524 = vrot.lane.b32.xlu1 %v1255_v6, %s1181_s12 }
  0x79   : > { %526 = vrot.lane.b32.xlu0 %v1238_v2, %s1181_s12 }
  0x7b   : > { %543 = vrot.lane.b32.xlu1 %v1251_v5, %s1182_s13 }
  0x7d   : > { %545 = vrot.lane.b32.xlu0 %v1246_v4, %s1182_s13 }
  0x7f   : > { %565 = vrot.lane.b32.xlu1 %v1259_v7, %s1183_s14 }
  0x81   : > { %567 = vrot.lane.b32.xlu0 %v1263_v8, %s1183_s14 }
  0x83   : > { %v221_v26 = vpop.permute.xlu0 %220  ;;  %583 = vrot.lane.b32.xlu1 %v1233_v1, %s1184_s17 }
  0x84   : > { %231 = vst.msk [vmem:[#allocation2 + $0x10] sm:$0x7] %vm230_vm0, %v221_v26 }
  0x85   : > { %v240_v27 = vpop.permute.xlu1 %239  ;;  %585 = vrot.lane.b32.xlu0 %v1269_v9, %s1184_s17 }
  0x86   : > { %250 = vst.msk [vmem:[#allocation2 + $0x10] sm:$0x38] %vm249_vm1, %v240_v27 }
  0x87   : > { %v219_v28 = vpop.permute.xlu0 %218  ;;  %602 = vrot.lane.b32.xlu1 %v1273_v10, %s1185_s18 }
  0x88   : > { %v224_v29 = vsel %vm222_vm2, %v219_v28, %v221_v26 }
  0x89   : > { %229 = vst [vmem:[#allocation2 + $0x8] sm:$0x7] %v224_v29  ;;  %v259_v30 = vpop.permute.xlu1 %258  ;;  %604 = vrot.lane.b32.xlu0 %v1277_v11, %s1185_s18 }
  0x8a   : > { %269 = vst.msk [vmem:[#allocation2 + $0x10] sm:$0xc0] %vm268_vm3, %v259_v30 }
  0x8b   : > { %273 = vst.msk [vmem:[#allocation2 + $0x28] sm:$0x1] %vm272_vm4, %v259_v30  ;;  %v257_v31 = vpop.permute.xlu0 %256  ;;  %503 = vrot.lane.b32.xlu1 %v1233_v1, %s1180_s11 }
  0x8c   : > { %v262_v32 = vsel %vm260_vm5, %v257_v31, %v259_v30 }
  0x8d   : > { %267 = vst [vmem:[#allocation2 + $0x20] ss:$-20 sps:$4 sm:$0xc1] %v262_v32   ;;  %522 = vrot.lane.b32.xlu0 %v1283_v13, %s1181_s12  ;;  %v238_v33 = vpop.permute.xlu1 %237 }
  0x8e   : > { %v243_v34 = vsel %vm241_vm6, %v238_v33, %v240_v27 }
  0x8f   : > { %248 = vst [vmem:[#allocation2 + $0x8] sm:$0x38] %v243_v34  ;;  %v280_v35 = vpop.permute.xlu0 %279  ;;  %541 = vrot.lane.b32.xlu1 %v1288_v14, %s1182_s13 }
  0x91   : > { %563 = vrot.lane.b32.xlu0 %v1292_v15, %s1183_s14  ;;  %v282_v36 = vpop.permute.xlu1 %281  ;;  %v681_v55 = vld [vmem:[#allocation2 + $0x10] sm:$0xff] }
  0x92   : > { %v285_v37 = vsel %vm283_vm7, %v280_v35, %v282_v36  ;;  %292 = vst.msk [vmem:[#allocation2 + $0x28] sm:$0xe] %vm291_vm8, %v282_v36 }
  0x93   : > { %290 = vst [vmem:[#allocation2 + $0x20] sm:$0xe] %v285_v37  ;;  %v298_v38 = vpop.permute.xlu0 %297  ;;  %581 = vrot.lane.b32.xlu1 %v1297_v16, %s1184_s17 }
  0x95   : > { %600 = vrot.lane.b32.xlu0 %v1301_v17, %s1185_s18  ;;  %v300_v39 = vpop.permute.xlu1 %299  ;;  %v1189_v17 = vmov 0.0  }
  0x96   : > { %v303_v41 = vsel %vm301_vm9, %v298_v38, %v300_v39  ;;  %310 = vst.msk [vmem:[#allocation2 + $0x28] sm:$0x70] %vm309_vm10, %v300_v39  ;;  %v680_v59 = vld [vmem:[#allocation2 + $0x8] sm:$0xff]  ;;  %793 = vmatprep.mubr.f32.mxu0 %v1189_v17 }
  0x97   : > { %308 = vst [vmem:[#allocation2 + $0x20] sm:$0x70] %v303_v41  ;;  %v317_v42 = vpop.permute.xlu0 %316  ;;  %509 = vrot.lane.b32.xlu1 %v1352_v24, %s1180_s11  ;;  %s210_s11 = scalar_lea.vmem %s1580_s4, %s1113_s5 }
  0x99   : > { %528 = vrot.lane.b32.xlu0 %v521_v40, %s1181_s12  ;;  %v319_v44 = vpop.permute.xlu1 %318 }
  0x9a   : > { %v322_v46 = vsel %vm320_vm11, %v317_v42, %v319_v44  ;;  %329 = vst.msk [vmem:[#allocation2 + $0x28] sm:$0x80] %vm328_vm12, %v319_v44 }
  0x9b   : > { %333 = vst.msk [vmem:[#allocation2 + $0x40] sm:$0x3] %vm332_vm13, %v319_v44  ;;  %327 = vst [vmem:[#allocation2 + $0x38] ss:$-20 sps:$4 sm:$0x83] %v322_v46   ;;  %v217_v47 = vpop.permute.xlu0 %216  ;;  %547 = vrot.lane.b32.xlu1 %v540_v43, %s1182_s13 }
  0x9c   : > { %v223_v48 = vsel %vm222_vm2, %v217_v47, %v219_v28  ;;  %vm362_vm2 = vcmask 719872  }
  0x9d   : > { %228 = vst [vmem:[#allocation2] sm:$0x7] %v223_v48  ;;  %569 = vrot.lane.b32.xlu0 %v562_v45, %s1183_s14  ;;  %v236_v49 = vpop.permute.xlu1 %235 }
  0x9e   : > { %v242_v51 = vsel %vm241_vm6, %v236_v49, %v238_v33  ;;  %vm378_vm6 = vcmask 711680  }
  0x9f   : > { %247 = vst [vmem:[#allocation2] sm:$0x38] %v242_v51  ;;  %v255_v52 = vpop.permute.xlu0 %254  ;;  %587 = vrot.lane.b32.xlu1 %v1231_v0, %s1184_s17 }
  0xa0   : > { %v261_v53 = vsel %vm260_vm5, %v255_v52, %v257_v31  ;;  %vm370_vm5 = vcmask 523269  }
  0xa1   : > { %266 = vst [vmem:[#allocation2 + $0x18] ss:$-20 sps:$4 sm:$0xc1] %v261_v53   ;;  %606 = vrot.lane.b32.xlu0 %v599_v50, %s1185_s18  ;;  %v278_v54 = vpop.permute.xlu1 %277  ;;  %v684_v56 = vld [vmem:[#allocation2 + $0x28] sm:$0xff] }
  0xa2   : > { %v284_v57 = vsel %vm283_vm7, %v278_v54, %v280_v35  ;;  %v1097_v58 = vpack.c.bf16 %v684_v56, %v681_v55  ;;  %v683_v60 = vld [vmem:[#allocation2 + $0x20] sm:$0xff]  ;;  %vm393_vm7 = vcmask 703488  }
  0xa3   : > { %289 = vst [vmem:[#allocation2 + $0x18] sm:$0xe] %v284_v57  ;;  %v296_v61 = vpop.permute.xlu0 %295  ;;  %624 = vrot.lane.b32.xlu1 %v1305_v18, %s1186_s19  ;;  %v1074_v62 = vpack.c.bf16 %v683_v60, %v680_v59 }
  0xa4   : > { %v302_v63 = vsel %vm301_vm9, %v296_v61, %v298_v38  ;;  %1098 = vmatpush3.bf16.msra.mxu1 %v1097_v58  ;;  %vm408_vm9 = vcmask 572416  }
  0xa5   : > { %307 = vst [vmem:[#allocation2 + $0x18] sm:$0x70] %v302_v63  ;;  %626 = vrot.lane.b32.xlu0 %v1309_v19, %s1186_s19  ;;  %1075 = vmatprep.subr.bf16.mxu0 %v1074_v62  ;;  %v315_v2 = vpop.permute.xlu1 %314 }
  0xa6   : > { %v321_v4 = vsel %vm320_vm11, %v315_v2, %v317_v42  ;;  %1099 = vmatprep.subr.bf16.mxu1 %v1168_v12  ;;  %vm1581_vm11 = vmmov 0  }
  0xa7   : > { %326 = vst [vmem:[#allocation2 + $0x30] ss:$-20 sps:$4 sm:$0x83] %v321_v4   ;;  %v340_v5 = vpop.permute.xlu0 %339  ;;  %642 = vrot.lane.b32.xlu1 %v1313_v20, %s1187_s20  ;;  %1065 = vmatprep.mubr.msk.f32.mxu1 %vm1581_vm11, %v1189_v17  ;;  %vm608_vm11 = vcmask 236544  }
  0xa8   : > { %v679_v11 = vld [vmem:[#allocation2] sm:$0xff] }
  0xa9   : > { %644 = vrot.lane.b32.xlu0 %v1317_v21, %s1187_s20  ;;  %v342_v6 = vpop.permute.xlu1 %341 }
  0xaa   : > { %v345_v7 = vsel %vm343_vm14, %v340_v5, %v342_v6  ;;  %352 = vst.msk [vmem:[#allocation2 + $0x40] sm:$0x1c] %vm351_vm15, %v342_v6 }
  0xab   : > { %350 = vst [vmem:[#allocation2 + $0x38] sm:$0x1c] %v345_v7  ;;  %v359_v8 = vpop.permute.xlu0 %358  ;;  %660 = vrot.lane.b32.xlu1 %v1242_v3, %s1188_s21 }
  0xad   : > { %662 = vrot.lane.b32.xlu0 %v1231_v0, %s1188_s21  ;;  %v361_v9 = vpop.permute.xlu1 %360  ;;  %v621_v0 = vrot.slane %v1352_v24, 6 }
  0xae   : > { %v364_v10 = vsel %vm362_vm2, %v359_v8, %v361_v9  ;;  %371 = vst.msk [vmem:[#allocation2 + $0x40] sm:$0xe0] %vm370_vm5, %v361_v9  ;;  %v682_v13 = vld [vmem:[#allocation2 + $0x18] sm:$0xff] }
  0xaf   : > { %369 = vst [vmem:[#allocation2 + $0x38] sm:$0xe0] %v364_v10  ;;  %v375_v14 = vpop.permute.xlu0 %374  ;;  %622 = vrot.lane.b32.xlu1 %v1327_v22, %s1186_s19  ;;  %v1076_v15 = vpack.c.bf16 %v682_v13, %v679_v11 }
  0xb1   : > { %640 = vrot.lane.b32.xlu0 %v1331_v23, %s1187_s20  ;;  %1077 = vmatpush1.bf16.msra.mxu0 %v1076_v15  ;;  %v377_v3 = vpop.permute.xlu1 %376 }
  0xb2   : > { %v380_v16 = vsel %vm378_vm6, %v375_v14, %v377_v3  ;;  %386 = vst.msk [vmem:[#allocation2 + $0x58] sm:$0x7] %vm230_vm0, %v377_v3 }
  0xb3   : > { %385 = vst [vmem:[#allocation2 + $0x50] sm:$0x7] %v380_v16  ;;  %v390_v18 = vpop.permute.xlu0 %389  ;;  %658 = vrot.lane.b32.xlu1 %v1233_v1, %s1188_s21 }
  0xb5   : > { %628 = vrot.lane.b32.xlu0 %v621_v0, %s1186_s19  ;;  %v392_v19 = vpop.permute.xlu1 %391  ;;  %v687_v30 = vld [vmem:[#allocation2 + $0x40] sm:$0xff] }
  0xb6   : > { %v395_v20 = vsel %vm393_vm7, %v390_v18, %v392_v19  ;;  %401 = vst.msk [vmem:[#allocation2 + $0x58] sm:$0x38] %vm249_vm1, %v392_v19  ;;  %v686_v34 = vld [vmem:[#allocation2 + $0x38] sm:$0xff] }
  0xb7   : > { %400 = vst [vmem:[#allocation2 + $0x50] sm:$0x38] %v395_v20  ;;  %v405_v21 = vpop.permute.xlu0 %404  ;;  %646 = vrot.lane.b32.xlu1 %v484_v25, %s1187_s20 }
  0xb9   : > { %664 = vrot.lane.b32.xlu0 %v1352_v24, %s1188_s21  ;;  %v407_v1 = vpop.permute.xlu1 %406 }
  0xba   : > { %v410_v22 = vsel %vm408_vm9, %v405_v21, %v407_v1  ;;  %416 = vst.msk [vmem:[#allocation2 + $0x58] sm:$0xc0] %vm268_vm3, %v407_v1 }
  0xbb   : > { %419 = vst.msk [vmem:[#allocation2 + $0x70] sm:$0x1] %vm272_vm4, %v407_v1  ;;  %415 = vst [vmem:[#allocation2 + $0x68] ss:$-20 sps:$4 sm:$0xc1] %v410_v22   ;;  %v338_v23 = vpop.permute.xlu0 %337 }
  0xbc   : > { %v344_v26 = vsel %vm343_vm14, %v338_v23, %v340_v5  ;;  %vm426_vm14 = vcmask 564224  }
  0xbd   : > { %349 = vst [vmem:[#allocation2 + $0x30] sm:$0x1c] %v344_v26  ;;  %v357_v25 = vpop.permute.xlu1 %356 }
  0xbe   : > { %v363_v27 = vsel %vm362_vm2, %v357_v25, %v359_v8  ;;  %vm441_vm2 = vcmask 556032  }
  0xbf   : > { %368 = vst [vmem:[#allocation2 + $0x30] sm:$0xe0] %v363_v27  ;;  %v373_v28 = vpop.permute.xlu0 %372 }
  0xc0   : > { %v379_v29 = vsel %vm378_vm6, %v373_v28, %v375_v14  ;;  %vm456_vm6 = vcmask 547840  }
  0xc1   : > { %384 = vst [vmem:[#allocation2 + $0x48] sm:$0x7] %v379_v29  ;;  %v388_v24 = vpop.permute.xlu1 %387  ;;  %v690_v31 = vld [vmem:[#allocation2 + $0x58] sm:$0xff] }
  0xc2   : > { %v394_v32 = vsel %vm393_vm7, %v388_v24, %v390_v18  ;;  %v1100_v33 = vpack.c.bf16 %v690_v31, %v687_v30  ;;  %v689_v35 = vld [vmem:[#allocation2 + $0x50] sm:$0xff]  ;;  %vm474_vm7 = vcmask 539648  }
  0xc3   : > { %399 = vst [vmem:[#allocation2 + $0x48] sm:$0x38] %v394_v32  ;;  %v403_v36 = vpop.permute.xlu0 %402  ;;  %v1078_v37 = vpack.c.bf16 %v689_v35, %v686_v34 }
  0xc4   : > { %v409_v38 = vsel %vm408_vm9, %v403_v36, %v405_v21  ;;  %1101 = vmatpush3.bf16.msra.mxu1 %v1100_v33  ;;  %vm493_vm9 = vcmask 408576  }
  0xc5   : > { %414 = vst [vmem:[#allocation2 + $0x60] ss:$-20 sps:$4 sm:$0xc1] %v409_v38   ;;  %1079 = vmatprep.subr.bf16.mxu0 %v1078_v37  ;;  %v423_v39 = vpop.permute.xlu1 %422  ;;  %1102 = vmatprep.subr.bf16.mxu1 %v1168_v12 }
  0xc6   : > { %v685_v45 = vld [vmem:[#allocation2 + $0x30] sm:$0xff] }
  0xc7   : > { %v425_v40 = vpop.permute.xlu0 %424 }
  0xc8   : > { %v428_v41 = vsel %vm426_vm14, %v423_v39, %v425_v40  ;;  %434 = vst.msk [vmem:[#allocation2 + $0x70] sm:$0xe] %vm291_vm8, %v425_v40 }
  0xc9   : > { %433 = vst [vmem:[#allocation2 + $0x68] sm:$0xe] %v428_v41  ;;  %v438_v42 = vpop.permute.xlu1 %437 }
  0xcb   : > { %v440_v43 = vpop.permute.xlu0 %439 }
  0xcc   : > { %v443_v44 = vsel %vm441_vm2, %v438_v42, %v440_v43  ;;  %449 = vst.msk [vmem:[#allocation2 + $0x70] sm:$0x70] %vm309_vm10, %v440_v43  ;;  %v688_v46 = vld [vmem:[#allocation2 + $0x48] sm:$0xff] }
  0xcd   : > { %448 = vst [vmem:[#allocation2 + $0x68] sm:$0x70] %v443_v44  ;;  %v453_v47 = vpop.permute.xlu1 %452  ;;  %v1080_v48 = vpack.c.bf16 %v688_v46, %v685_v45 }
  0xcf   : > { %v455_v49 = vpop.permute.xlu0 %454  ;;  %1081 = vmatpush1.bf16.msra.mxu0 %v1080_v48 }
  0xd0   : > { %v458_v50 = vsel %vm456_vm6, %v453_v47, %v455_v49  ;;  %464 = vst.msk [vmem:[#allocation2 + $0x70] sm:$0x80] %vm328_vm12, %v455_v49 }
  0xd1   : > { %467 = vst.msk [vmem:[#allocation2 + $0x88] sm:$0x3] %vm332_vm13, %v455_v49  ;;  %463 = vst [vmem:[#allocation2 + $0x80] ss:$-20 sps:$4 sm:$0x83] %v458_v50   ;;  %v471_v51 = vpop.permute.xlu1 %470 }
  0xd3   : > { %v473_v52 = vpop.permute.xlu0 %472 }
  0xd4   : > { %v476_v53 = vsel %vm474_vm7, %v471_v51, %v473_v52  ;;  %482 = vst.msk [vmem:[#allocation2 + $0x88] sm:$0x1c] %vm351_vm15, %v473_v52 }
  0xd5   : > { %481 = vst [vmem:[#allocation2 + $0x80] sm:$0x1c] %v476_v53  ;;  %v488_v54 = vpop.permute.xlu1 %487 }
  0xd7   : > { %v490_v55 = vpop.permute.xlu0 %489  ;;  %v693_v20 = vld [vmem:[#allocation2 + $0x70] sm:$0xff] }
  0xd8   : > { %v495_v56 = vsel %vm493_vm9, %v488_v54, %v490_v55  ;;  %v692_v4 = vld [vmem:[#allocation2 + $0x68] sm:$0xff] }
  0xd9   : > { %501 = vst [vmem:[#allocation2 + $0x80] sm:$0xe0] %v495_v56  ;;  %v421_v57 = vpop.permute.xlu1 %420 }
  0xda   : > { %v427_v58 = vsel %vm426_vm14, %v421_v57, %v423_v39  ;;  %vm511_vm14 = vcmask 400384  }
  0xdb   : > { %432 = vst [vmem:[#allocation2 + $0x60] sm:$0xe] %v427_v58  ;;  %v436_v59 = vpop.permute.xlu0 %435 }
  0xdc   : > { %v442_v60 = vsel %vm441_vm2, %v436_v59, %v438_v42  ;;  %vm530_vm2 = vcmask 392192  }
  0xdd   : > { %447 = vst [vmem:[#allocation2 + $0x60] sm:$0x70] %v442_v60  ;;  %v451_v61 = vpop.permute.xlu1 %450 }
  0xde   : > { %v457_v62 = vsel %vm456_vm6, %v451_v61, %v453_v47  ;;  %vm549_vm6 = vcmask 384000  }
  0xdf   : > { %462 = vst [vmem:[#allocation2 + $0x78] ss:$-20 sps:$4 sm:$0x83] %v457_v62   ;;  %v469_v63 = vpop.permute.xlu0 %468 }
  0xe0   : > { %v475_v2 = vsel %vm474_vm7, %v469_v63, %v471_v51  ;;  %v695_v5 = vld [vmem:[#allocation2 + $0x80] sm:$0xff]  ;;  %vm571_vm7 = vcmask 375808  }
  0xe1   : > { %480 = vst [vmem:[#allocation2 + $0x78] sm:$0x1c] %v475_v2  ;;  %v486_v6 = vpop.permute.xlu1 %485  ;;  %v1082_v7 = vpack.c.bf16 %v695_v5, %v692_v4 }
  0xe2   : > { %v494_v8 = vsel %vm493_vm9, %v486_v6, %v488_v54 }
  0xe3   : > { %500 = vst [vmem:[#allocation2 + $0x78] sm:$0xe0] %v494_v8  ;;  %v492_v9 = vpop.permute.xlu0 %491  ;;  %1083 = vmatprep.subr.bf16.mxu0 %v1082_v7 }
  0xe4   : > { %v496_v10 = vsel %vm493_vm9, %v490_v55, %v492_v9  ;;  %vm589_vm9 = vcmask 244736  }
  0xe5   : > { %502 = vst.msk [vmem:[#allocation2 + $0x88] sm:$0xe0] %vm370_vm5, %v496_v10  ;;  %v506_v11 = vpop.permute.xlu1 %505 }
  0xe6   : > { %v691_v3 = vld [vmem:[#allocation2 + $0x60] sm:$0xff] }
  0xe7   : > { %v508_v13 = vpop.permute.xlu0 %507 }
  0xe8   : > { %v513_v14 = vsel %vm511_vm14, %v506_v11, %v508_v13 }
  0xe9   : > { %519 = vst [vmem:[#allocation2 + $0x98] sm:$0x7] %v513_v14  ;;  %v525_v15 = vpop.permute.xlu1 %524 }
  0xea   : > { %v694_v0 = vld [vmem:[#allocation2 + $0x78] sm:$0xff] }
  0xeb   : > { %v527_v16 = vpop.permute.xlu0 %526  ;;  %v1084_v18 = vpack.c.bf16 %v694_v0, %v691_v3 }
  0xec   : > { %v532_v19 = vsel %vm530_vm2, %v525_v15, %v527_v16  ;;  %v696_v21 = vld [vmem:[#allocation2 + $0x88] sm:$0xff] }
  0xed   : > { %538 = vst [vmem:[#allocation2 + $0x98] sm:$0x38] %v532_v19  ;;  %1085 = vmatpush1.bf16.msra.mxu0 %v1084_v18  ;;  %v544_v1 = vpop.permute.xlu1 %543  ;;  %v1103_v22 = vpack.c.bf16 %v696_v21, %v693_v20 }
  0xef   : > { %v546_v23 = vpop.permute.xlu0 %545  ;;  %1104 = vmatpush3.bf16.msra.mxu1 %v1103_v22 }
  0xf0   : > { %v551_v26 = vsel %vm549_vm6, %v544_v1, %v546_v23  ;;  %1105 = vmatprep.subr.bf16.mxu1 %v1168_v12 }
  0xf1   : > { %557 = vst [vmem:[#allocation2 + $0xb0] ss:$-20 sps:$4 sm:$0xc1] %v551_v26   ;;  %v566_v25 = vpop.permute.xlu1 %565 }
  0xf3   : > { %v568_v27 = vpop.permute.xlu0 %567 }
  0xf4   : > { %v573_v28 = vsel %vm571_vm7, %v566_v25, %v568_v27 }
  0xf5   : > { %579 = vst [vmem:[#allocation2 + $0xb0] sm:$0xe] %v573_v28  ;;  %v584_v29 = vpop.permute.xlu1 %583 }
  0xf7   : > { %v586_v24 = vpop.permute.xlu0 %585 }
  0xf8   : > { %v591_v30 = vsel %vm589_vm9, %v584_v29, %v586_v24  ;;  %v698_v42 = vld [vmem:[#allocation2 + $0x98] sm:$0xff] }
  0xf9   : > { %597 = vst [vmem:[#allocation2 + $0xb0] sm:$0x70] %v591_v30  ;;  %v603_v31 = vpop.permute.xlu1 %602 }
  0xfb   : > { %v605_v32 = vpop.permute.xlu0 %604 }
  0xfc   : > { %v610_v33 = vsel %vm608_vm11, %v603_v31, %v605_v32 }
  0xfd   : > { %616 = vst [vmem:[#allocation2 + $0xc8] ss:$-20 sps:$4 sm:$0x83] %v610_v33   ;;  %v504_v34 = vpop.permute.xlu1 %503 }
  0xfe   : > { %v512_v35 = vsel %vm511_vm14, %v504_v34, %v506_v11 }
  0xff   : > { %518 = vst [vmem:[#allocation2 + $0x90] sm:$0x7] %v512_v35  ;;  %v523_v36 = vpop.permute.xlu0 %522 }
 0x100   : > { %v531_v37 = vsel %vm530_vm2, %v523_v36, %v525_v15  ;;  %v677_v36 = vld [vmem:[%s1578_s2 + $0x8] sm:$0xff] }
 0x101   : > { %537 = vst [vmem:[#allocation2 + $0x90] sm:$0x38] %v531_v37  ;;  %v542_v38 = vpop.permute.xlu1 %541  ;;  %v678_v37 = vld [vmem:[%s1578_s2 + $0x10] sm:$0xf] }
 0x102   : > { %v550_v39 = vsel %vm549_vm6, %v542_v38, %v544_v1  ;;  %v894_v38 = vlaneseq }
 0x103   : > { %556 = vst [vmem:[#allocation2 + $0xa8] ss:$-20 sps:$4 sm:$0xc1] %v550_v39   ;;  %v564_v40 = vpop.permute.xlu0 %563 }
 0x104   : > { %v572_v41 = vsel %vm571_vm7, %v564_v40, %v566_v25  ;;  %v701_v43 = vld [vmem:[#allocation2 + $0xb0] sm:$0xff]  ;;  %v895_v39 = vshrl.u32 %v894_v38, 7 }
 0x105   : > { %578 = vst [vmem:[#allocation2 + $0xa8] sm:$0xe] %v572_v41  ;;  %v582_v44 = vpop.permute.xlu1 %581  ;;  %v1086_v45 = vpack.c.bf16 %v701_v43, %v698_v42  ;;  %v892_v41 = vld [vmem:[%s1577_s1] sm:$0x7] }
 0x106   : > { %v590_v46 = vsel %vm589_vm9, %v582_v44, %v584_v29  ;;  %v896_v40 = vsub.s32 0, %v895_v39  ;;  %v900_v42 = vsub.s32 1, %v895_v39 }
 0x107   : > { %596 = vst [vmem:[#allocation2 + $0xa8] sm:$0x70] %v590_v46  ;;  %v601_v47 = vpop.permute.xlu0 %600  ;;  %1087 = vmatprep.subr.bf16.mxu0 %v1086_v45  ;;  %v904_v45 = vsub.s32 2, %v895_v39 }
 0x108   : > { %v609_v48 = vsel %vm608_vm11, %v601_v47, %v603_v31  ;;  %v897_v43 = vrot.slane %v892_v41, %v896_v40  ;;  %v901_v44 = vrot.slane %v892_v41, %v900_v42 }
 0x109   : > { %615 = vst [vmem:[#allocation2 + $0xc0] ss:$-20 sps:$4 sm:$0x83] %v609_v48   ;;  %v510_v49 = vpop.permute.xlu1 %509 }
 0x10a   : > { %v514_v50 = vsel %vm511_vm14, %v508_v13, %v510_v49  ;;  %v697_v57 = vld [vmem:[#allocation2 + $0x90] sm:$0xff]  ;;  %v905_v49 = vrot.slane %v892_v41, %v904_v45 }
 0x10b   : > { %520 = vst.msk [vmem:[#allocation2 + $0xa0] sm:$0x7] %vm230_vm0, %v514_v50  ;;  %v529_v51 = vpop.permute.xlu0 %528 }
 0x10c   : > { %v533_v52 = vsel %vm530_vm2, %v527_v16, %v529_v51 }
 0x10d   : > { %539 = vst.msk [vmem:[#allocation2 + $0xa0] sm:$0x38] %vm249_vm1, %v533_v52  ;;  %v548_v53 = vpop.permute.xlu1 %547  ;;  %vm630_vm1 = vcmask 228352  }
 0x10e   : > { %v552_v54 = vsel %vm549_vm6, %v546_v23, %v548_v53 }
 0x10f   : > { %558 = vst.msk [vmem:[#allocation2 + $0xa0] sm:$0xc0] %vm268_vm3, %v552_v54  ;;  %v570_v55 = vpop.permute.xlu0 %569  ;;  %vm648_vm3 = vcmask 220160  }
 0x110   : > { %561 = vst.msk [vmem:[#allocation2 + $0xb8] sm:$0x1] %vm272_vm4, %v552_v54  ;;  %v574_v56 = vsel %vm571_vm7, %v568_v27, %v570_v55  ;;  %v700_v58 = vld [vmem:[#allocation2 + $0xa8] sm:$0xff]  ;;  %vm666_vm4 = vcmask 211968  }
 0x111   : > { %580 = vst.msk [vmem:[#allocation2 + $0xb8] sm:$0xe] %vm291_vm8, %v574_v56  ;;  %v588_v59 = vpop.permute.xlu1 %587  ;;  %v1088_v60 = vpack.c.bf16 %v700_v58, %v697_v57  ;;  %vm719_vm8 = vcmask 1042432  }
 0x112   : > { %v592_v61 = vsel %vm589_vm9, %v586_v24, %v588_v59 }
 0x113   : > { %598 = vst.msk [vmem:[#allocation2 + $0xb8] sm:$0x70] %vm309_vm10, %v592_v61  ;;  %v607_v62 = vpop.permute.xlu0 %606  ;;  %1089 = vmatpush1.bf16.msra.mxu0 %v1088_v60  ;;  %vm1191_vm10 = vmmov 1  }
 0x114   : > { %v611_v63 = vsel %vm608_vm11, %v605_v32, %v607_v62  ;;  %v676_v32 = vld [vmem:[%s1578_s2] sm:$0xff] }
 0x115   : > { %617 = vst.msk [vmem:[#allocation2 + $0xb8] sm:$0x80] %vm328_vm12, %v611_v63  ;;  %v625_v2 = vpop.permute.xlu1 %624  ;;  %vm1526_vm12 = vmpackc.low %vm719_vm8, %vm1191_vm10 }
 0x116   : > { %620 = vst.msk [vmem:[#allocation2 + $0xd0] sm:$0x3] %vm332_vm13, %v611_v63  ;;  %v699_v9 = vld [vmem:[#allocation2 + $0xa0] sm:$0xff]  ;;  %vm709_vm13 = vcmask 613376  }
 0x117   : > { %v627_v4 = vpop.permute.xlu0 %626 }
 0x118   : > { %v632_v5 = vsel %vm630_vm1, %v625_v2, %v627_v4 }
 0x119   : > { %638 = vst [vmem:[#allocation2 + $0xc8] sm:$0x1c] %v632_v5  ;;  %v643_v6 = vpop.permute.xlu1 %642 }
 0x11b   : > { %v645_v7 = vpop.permute.xlu0 %644 }
 0x11c   : > { %v650_v8 = vsel %vm648_vm3, %v643_v6, %v645_v7  ;;  %v702_v10 = vld [vmem:[#allocation2 + $0xb8] sm:$0xff] }
 0x11d   : > { %656 = vst [vmem:[#allocation2 + $0xc8] sm:$0xe0] %v650_v8  ;;  %v661_v11 = vpop.permute.xlu1 %660  ;;  %v1106_v13 = vpack.c.bf16 %v702_v10, %v699_v9 }
 0x11f   : > { %v663_v14 = vpop.permute.xlu0 %662  ;;  %1107 = vmatpush3.bf16.msra.mxu1 %v1106_v13 }
 0x120   : > { %v668_v15 = vsel %vm666_vm4, %v661_v11, %v663_v14  ;;  %1108 = vmatprep.subr.bf16.mxu1 %v1168_v12 }
 0x121   : > { %674 = vst [vmem:[#allocation2 + $0xe0] sm:$0x7] %v668_v15  ;;  %v623_v3 = vpop.permute.xlu1 %622 }
 0x122   : > { %v631_v0 = vsel %vm630_vm1, %v623_v3, %v625_v2 }
 0x123   : > { %637 = vst [vmem:[#allocation2 + $0xc0] sm:$0x1c] %v631_v0  ;;  %v641_v16 = vpop.permute.xlu0 %640 }
 0x124   : > { %v649_v18 = vsel %vm648_vm3, %v641_v16, %v643_v6  ;;  %v704_v22 = vld [vmem:[#allocation2 + $0xc8] sm:$0xff] }
 0x125   : > { %655 = vst [vmem:[#allocation2 + $0xc0] sm:$0xe0] %v649_v18  ;;  %v659_v19 = vpop.permute.xlu1 %658 }
 0x126   : > { %v667_v20 = vsel %vm666_vm4, %v659_v19, %v661_v11 }
 0x127   : > { %673 = vst [vmem:[#allocation2 + $0xd8] sm:$0x7] %v667_v20  ;;  %v629_v21 = vpop.permute.xlu0 %628 }
 0x128   : > { %v633_v1 = vsel %vm630_vm1, %v627_v4, %v629_v21  ;;  %v707_v23 = vld [vmem:[#allocation2 + $0xe0] sm:$0x7] }
 0x129   : > { %639 = vst.msk [vmem:[#allocation2 + $0xd0] sm:$0x1c] %vm351_vm15, %v633_v1  ;;  %v647_v26 = vpop.permute.xlu1 %646  ;;  %v1090_v25 = vpack.c.bf16 %v707_v23, %v704_v22  ;;  %vm914_vm15 = vcmask 523264  }
 0x12a   : > { %v651_v27 = vsel %vm648_vm3, %v645_v7, %v647_v26 }
 0x12b   : > { %657 = vst.msk [vmem:[#allocation2 + $0xd0] sm:$0xe0] %vm370_vm5, %v651_v27  ;;  %v665_v28 = vpop.permute.xlu0 %664  ;;  %1092 = vmatprep.subr.msk.bf16.mxu0 %vm1526_vm12, %v1090_v25  ;;  %vm921_vm5 = vcmask 519168  }
 0x12c   : > { %v669_v29 = vsel %vm666_vm4, %v663_v14, %v665_v28  ;;  %v703_v24 = vld [vmem:[#allocation2 + $0xc0] sm:$0xff] }
 0x12d   : > { %675 = vst.msk [vmem:[#allocation2 + $0xe8] sm:$0x7] %vm230_vm0, %v669_v29  ;;  %vm1585_vm0 = vmmov 0  }
 0x12e   : > { %v706_v30 = vld [vmem:[#allocation2 + $0xd8] sm:$0x7] }
 0x12f   : > { %v1093_v31 = vpack.c.bf16 %v706_v30, %v703_v24 }
 0x131   : > { %1095 = vmatpush1.bf16.msk.msra.mxu0 %vm1526_vm12, %v1093_v31 }
 0x132   : > { %v705_v33 = vld [vmem:[#allocation2 + $0xd0] sm:$0xff] }
 0x134   : > { %v708_v34 = vld [vmem:[#allocation2 + $0xe8] sm:$0x7]  ;;  %1022 = vmatmul.mubr.msk.f32.vlgmr.msra.gmra.mrb[0].mxu0 %vm709_vm13, %v676_v32 }
 0x135   : > { %v1109_v35 = vpack.c.bf16 %v708_v34, %v705_v33  ;;  %799 = vmatprep.mubr.f32.mxu0 %v1189_v17 }
 0x137   : > { %1111 = vmatpush3.bf16.msk.msra.mxu1 %vm1526_vm12, %v1109_v35 }
 0x138   : > { %1023 = vmatmul.mubr.msk.f32.gmra.mrb[2].mxu0 %vm709_vm13, %v677_v36 }
 0x139   : > { %805 = vmatprep.mubr.f32.mxu0 %v1189_v17 }
 0x13a   : > { %1066 = vmatmul.mubr.msk.f32.vlgmr.msra.gmra.mrb[0].mxu1 %vm709_vm13, %v676_v32 }
 0x13b   : > { %1068 = vmatprep.mubr.msk.f32.mxu1 %vm1585_vm0, %v1189_v17 }
 0x13c   : > { %1024 = vmatmul.mubr.msk.f32.gmra.mrb[4].mxu0 %vm709_vm13, %v678_v37 }
 0x13e   : > { %1069 = vmatmul.mubr.msk.f32.gmra.mrb[2].mxu1 %vm709_vm13, %v677_v36 }
 0x13f   : > { %1071 = vmatprep.mubr.msk.f32.mxu1 %vm1585_vm0, %v1189_v17 }
 0x142   : > { %1072 = vmatmul.mubr.msk.f32.gmra.mrb[4].mxu1 %vm709_vm13, %v678_v37 }
 0x207   : > { %v795_v17 = vpop.f32.mrb[0].mxu0 }
 0x208   : > { %v909_v46 = vmul.f32 %v897_v43, %v795_v17  ;;  %v797_v47 = vpop.f32.mrb[1].mxu0 }
 0x209   : > { %v910_v48 = vmul.f32 %v901_v44, %v797_v47 }
 0x20a   : > { %912 = vst [vmem:[%s205_s8] sm:$0xff] %v909_v46 }
 0x20b   : > { %913 = vst [vmem:[%s205_s8 + $0x8] sm:$0xff] %v910_v48  ;;  %v801_v50 = vpop.f32.mrb[2].mxu0 }
 0x20c   : > { %916 = vst [vmem:[%s210_s11] sm:$0xff] %v801_v50  ;;  %v803_v51 = vpop.f32.mrb[3].mxu0 }
 0x20d   : > { %v878_v52 = vpop.f32.mrb[0].mxu1  ;;  %917 = vst [vmem:[%s210_s11 + $0x8] sm:$0xff] %v803_v51 }
 0x20e   : > { %v911_v53 = vmul.f32 %v905_v49, %v878_v52  ;;  %v1067_v54 = vpop.f32.mrb[1].mxu1 }
 0x20f   : > { %v807_v55 = vpop.f32.mrb[4].mxu0 }
 0x210   : > { %915 = vst.msk [vmem:[%s205_s8 + $0x10] sm:$0xff] %vm914_vm15, %v911_v53  ;;  %919 = vst [vmem:[%s210_s11 + $0x18] sm:$0xf] %v807_v55  ;;  %v809_v56 = vpop.f32.mrb[5].mxu0 }
 0x211   : > { %v883_v57 = vpop.f32.mrb[2].mxu1  ;;  %920 = vst [vmem:[%s210_s11 + $0x20] sm:$0xf] %v809_v56 }
 0x212   : > { %918 = vst.msk [vmem:[%s210_s11 + $0x10] sm:$0xff] %vm914_vm15, %v883_v57  ;;  %v1070_v58 = vpop.f32.mrb[3].mxu1 }
 0x215   : > { %v888_v59 = vpop.f32.mrb[4].mxu1 }
 0x216   : > { %922 = vst.msk [vmem:[%s210_s11 + $0x28] sm:$0xf] %vm921_vm5, %v888_v59  ;;  %v1073_v60 = vpop.f32.mrb[5].mxu1 }
 0x217 PF: > { %s15_s15 = sadd.s32 1, %s1161_s15  }
 0x218   : > { %p12_p4 = scmp.ge.s32.totalorder %s15_s15, 4  }
 0x21a   :  { %14 = sbr.rel (!%p12_p4) target bundleno = 1 (0x1), region = 74 }

</bundles_post_ra>
